<compile_context>
chip_gen: v5e
topology: v5e:2x2
jax: 0.10.0
libtpu: 0.0.40
codegen_flags: <defaults>
</compile_context>

<pallas_src>
import functools

import jax
import jax.numpy as jnp
from jax.experimental import pallas as pl
from jax.experimental.pallas import tpu as pltpu

_SQRT1_2 = 0.7071067811865476  # 1/sqrt(2)
_GN_EPS = 1e-5                 # nn.GroupNorm default eps


def _gelu_exact(x):
    # PyTorch nn.GELU()/F.gelu default = exact erf formulation.
    return 0.5 * x * (1.0 + jax.lax.erf(x * _SQRT1_2))


def _conv3x3(src_ref, w_ref, h, w):
    """3x3 / pad=1 / stride=1 conv of a zero-padded (h+2, w+2, Cin) VMEM ref with a
    (9, Cin, Cout) bf16 weight ref, as 9 shifted MXU matmuls with f32 accumulation.
    Returns f32 (h*w, Cout)."""
    cin, cout = w_ref.shape[1], w_ref.shape[2]
    acc = jnp.zeros((h * w, cout), jnp.float32)
    for k in range(9):
        ky, kx = divmod(k, 3)
        patch = src_ref[ky:ky + h, kx:kx + w, :]                # (h, w, cin) f32
        patch = patch.reshape(h * w, cin).astype(jnp.bfloat16)  # bf16 MXU operand
        acc = acc + jnp.dot(patch, w_ref[k], preferred_element_type=jnp.float32)
    return acc


def _groupnorm1(y, gamma, beta, eps, apply_gelu):
    """GroupNorm(num_groups=1) over the full (HW, C) sample, single-pass stats,
    per-channel affine, optional exact GELU.  All f32."""
    n = y.shape[0] * y.shape[1]
    s1 = jnp.sum(y)
    s2 = jnp.sum(y * y)
    mean = s1 / n
    var = jnp.maximum(s2 / n - mean * mean, 0.0)
    y = (y - mean) * jax.lax.rsqrt(var + eps)
    y = y * gamma + beta
    if apply_gelu:
        y = _gelu_exact(y)
    return y


def _down_kernel(xpad_ref,
                 w11_ref, g11_ref, b11_ref, w12_ref, g12_ref, b12_ref,
                 w21_ref, g21_ref, b21_ref, w22_ref, g22_ref, b22_ref,
                 emb_ref, out_ref, pad_a_ref, pad_b_ref, *, h, w, eps):
    """One batch element: DoubleConv(Cin,Cin,residual=True) -> DoubleConv(Cin,Cout) -> +emb."""
    hw = h * w
    cin = w11_ref.shape[1]
    cout = w22_ref.shape[2]

    # Zero the padded scratch buffers (borders must be zero; interiors get overwritten).
    pad_a_ref[...] = jnp.zeros_like(pad_a_ref)
    pad_b_ref[...] = jnp.zeros_like(pad_b_ref)

    # ---- DoubleConv(cin, cin, residual=True) --------------------------------
    y = _groupnorm1(_conv3x3(xpad_ref, w11_ref, h, w),
                    g11_ref[...], b11_ref[...], eps, apply_gelu=True)
    pad_a_ref[1:h + 1, 1:w + 1, :] = y.reshape(h, w, cin)
    y = _groupnorm1(_conv3x3(pad_a_ref, w12_ref, h, w),
                    g12_ref[...], b12_ref[...], eps, apply_gelu=False)
    res = xpad_ref[1:h + 1, 1:w + 1, :].reshape(hw, cin).astype(jnp.float32)
    y = _gelu_exact(res + y)                       # F.gelu(x + double_conv(x))

    # ---- DoubleConv(cin, cout)  (mid_channels defaults to cout) -------------
    pad_a_ref[1:h + 1, 1:w + 1, :] = y.reshape(h, w, cin)
    y = _groupnorm1(_conv3x3(pad_a_ref, w21_ref, h, w),
                    g21_ref[...], b21_ref[...], eps, apply_gelu=True)
    pad_b_ref[1:h + 1, 1:w + 1, :] = y.reshape(h, w, cout)
    y = _groupnorm1(_conv3x3(pad_b_ref, w22_ref, h, w),
                    g22_ref[...], b22_ref[...], eps, apply_gelu=False)

    # ---- + broadcast time embedding ------------------------------------------
    y = y + emb_ref[...]                            # (1, cout) broadcast over HW rows
    out_ref[...] = y.reshape(h, w, cout).astype(out_ref.dtype)


def down_forward(x_nchw, t, params):
    """Pallas implementation of Down.forward.
    x: (N, Cin, H, W) f32, t: (N, emb_dim) f32  ->  (N, Cout, H//2, W//2) f32."""
    n, cin, H, W = x_nchw.shape
    assert H % 2 == 0 and W % 2 == 0
    h, w = H // 2, W // 2
    hw = h * w
    cout = params["w22"].shape[-1]

    # MaxPool2d(2) in NCHW, then transpose the already-pooled (4x smaller) tensor.
    pooled = x_nchw.reshape(n, cin, h, 2, w, 2).max(axis=(3, 5))
    x_nhwc = jnp.transpose(pooled, (0, 2, 3, 1)).astype(jnp.float32)
    xpad = jnp.pad(x_nhwc, ((0, 0), (1, 1), (1, 1), (0, 0)))      # (n, h+2, w+2, cin)

    # Time embedding: Linear(SiLU(t)) -> (n, cout).  Tiny matmul, left in XLA; the
    # expensive broadcast-add over the feature map is fused into the kernel.
    emb = jax.nn.silu(t) @ params["emb_w"] + params["emb_b"]
    emb = emb.reshape(n, 1, cout).astype(jnp.float32)

    def wspec(name):
        wt = params[name]                                # (3, 3, ci, co) HWIO
        ci, co = wt.shape[2], wt.shape[3]
        return (wt.reshape(9, ci, co).astype(jnp.bfloat16),
                pl.BlockSpec((9, ci, co), lambda b: (0, 0, 0)))

    def vspec(name):
        v = params[name].reshape(1, -1).astype(jnp.float32)
        return v, pl.BlockSpec((1, v.shape[-1]), lambda b: (0, 0))

    args = [xpad]
    in_specs = [pl.BlockSpec((None, h + 2, w + 2, cin), lambda b: (b, 0, 0, 0))]
    for wn, gn_, bn in (("w11", "g11", "b11"), ("w12", "g12", "b12"),
                        ("w21", "g21", "b21"), ("w22", "g22", "b22")):
        a, s = wspec(wn); args.append(a); in_specs.append(s)
        a, s = vspec(gn_); args.append(a); in_specs.append(s)
        a, s = vspec(bn); args.append(a); in_specs.append(s)
    args.append(emb)
    in_specs.append(pl.BlockSpec((None, 1, cout), lambda b: (b, 0, 0)))

    kernel = functools.partial(_down_kernel, h=h, w=w, eps=_GN_EPS)

    flops = int(2 * n * hw * 9 * (cin * cin + cin * cin + cin * cout + cout * cout))
    transcendentals = int(n * hw * (2 * cin + cout))
    bytes_accessed = int(sum(int(a.size) * a.dtype.itemsize for a in args)
                         + n * hw * cout * 4)

    out_nhwc = pl.pallas_call(
        kernel,
        out_shape=jax.ShapeDtypeStruct((n, h, w, cout), jnp.float32),
        grid=(n,),
        in_specs=in_specs,
        out_specs=pl.BlockSpec((None, h, w, cout), lambda b: (b, 0, 0, 0)),
        scratch_shapes=[pltpu.VMEM((h + 2, w + 2, cin), jnp.float32),
                        pltpu.VMEM((h + 2, w + 2, cout), jnp.float32)],
        compiler_params=pltpu.CompilerParams(
            dimension_semantics=("parallel",)),
        cost_estimate=pl.CostEstimate(flops=flops,
                                      transcendentals=transcendentals,
                                      bytes_accessed=bytes_accessed),
    )(*args)
    return jnp.transpose(out_nhwc, (0, 3, 1, 2))    # NHWC -> NCHW


# ------------------------- plain-JAX reference ------------------------------
def _reference_down(x_nchw, t, params):
    n, cin, H, W = x_nchw.shape
    h, w = H // 2, W // 2
    pooled = x_nchw.reshape(n, cin, h, 2, w, 2).max(axis=(3, 5))
    x = jnp.transpose(pooled, (0, 2, 3, 1)).astype(jnp.float32)

    def conv(x, wt):  # bf16 operands / f32 accumulation, mirroring the MXU path
        return jax.lax.conv_general_dilated(
            x.astype(jnp.bfloat16), wt.astype(jnp.bfloat16),
            window_strides=(1, 1), padding="SAME",
            dimension_numbers=("NHWC", "HWIO", "NHWC"),
            preferred_element_type=jnp.float32)

    def gn1(y, g, b):  # GroupNorm(num_groups=1)
        mean = jnp.mean(y, axis=(1, 2, 3), keepdims=True)
        var = jnp.mean((y - mean) ** 2, axis=(1, 2, 3), keepdims=True)
        return (y - mean) * jax.lax.rsqrt(var + _GN_EPS) * g + b

    def double_conv(x, w1, g1, b1, w2, g2, b2, residual):
        y = _gelu_exact(gn1(conv(x, w1), g1, b1))
        y = gn1(conv(y, w2), g2, b2)
        if residual:
            y = _gelu_exact(x + y)
        return y

    h1 = double_conv(x, params["w11"], params["g11"], params["b11"],
                     params["w12"], params["g12"], params["b12"], residual=True)
    y = double_conv(h1, params["w21"], params["g21"], params["b21"],
                    params["w22"], params["g22"], params["b22"], residual=False)
    emb = jax.nn.silu(t) @ params["emb_w"] + params["emb_b"]
    y = y + emb[:, None, None, :]
    return jnp.transpose(y, (0, 3, 1, 2))


def _make_params(key, c_in, c_out, emb_dim):
    ks = jax.random.split(key, 14)

    def conv_w(k, ci, co):
        return jax.random.normal(k, (3, 3, ci, co), jnp.float32) / jnp.sqrt(9.0 * ci)

    def affine(kg, kb, c):
        g = 1.0 + 0.1 * jax.random.normal(kg, (c,), jnp.float32)
        b = 0.1 * jax.random.normal(kb, (c,), jnp.float32)
        return g, b

    p = {}
    p["w11"] = conv_w(ks[0], c_in, c_in)
    p["g11"], p["b11"] = affine(ks[1], ks[2], c_in)
    p["w12"] = conv_w(ks[3], c_in, c_in)
    p["g12"], p["b12"] = affine(ks[4], ks[5], c_in)
    p["w21"] = conv_w(ks[6], c_in, c_out)
    p["g21"], p["b21"] = affine(ks[7], ks[8], c_out)
    p["w22"] = conv_w(ks[9], c_out, c_out)
    p["g22"], p["b22"] = affine(ks[10], ks[11], c_out)
    p["emb_w"] = jax.random.normal(ks[12], (emb_dim, c_out), jnp.float32) / jnp.sqrt(1.0 * emb_dim)
    p["emb_b"] = 0.1 * jax.random.normal(ks[13], (c_out,), jnp.float32)
    return p


if __name__ == "__main__":
    key = jax.random.PRNGKey(0)
    kx, kt, kp = jax.random.split(key, 3)

    # Down(in_channels=4, out_channels=8, emb_dim=256), x: (2, 4, 16, 16), t: (2, 256)
    N, C_IN, H, W = 2, 4, 16, 16
    C_OUT, EMB = 8, 256

    x = jax.random.normal(kx, (N, C_IN, H, W), jnp.float32)
    t = jax.random.normal(kt, (N, EMB), jnp.float32)
    params = _make_params(kp, C_IN, C_OUT, EMB)

    out = jax.block_until_ready(down_forward(x, t, params))
    ref = jax.block_until_ready(_reference_down(x, t, params))

    assert out.shape == (N, C_OUT, H // 2, W // 2), out.shape
    assert jnp.allclose(out, ref, atol=5e-3, rtol=5e-3), (
        "max abs diff = %f" % float(jnp.max(jnp.abs(out - ref))))

    print("KERNEL_OK")
</pallas_src>

<mosaic_0001>
module attributes {stable_mosaic.version = 11 : i64} {
  func.func @_down_kernel(%arg0: i32, %arg1: memref<1x10x10x4xf32, #tpu.memory_space<vmem>>, %arg2: memref<9x4x4xbf16, #tpu.memory_space<vmem>>, %arg3: memref<1x4xf32, #tpu.memory_space<vmem>>, %arg4: memref<1x4xf32, #tpu.memory_space<vmem>>, %arg5: memref<9x4x4xbf16, #tpu.memory_space<vmem>>, %arg6: memref<1x4xf32, #tpu.memory_space<vmem>>, %arg7: memref<1x4xf32, #tpu.memory_space<vmem>>, %arg8: memref<9x4x8xbf16, #tpu.memory_space<vmem>>, %arg9: memref<1x8xf32, #tpu.memory_space<vmem>>, %arg10: memref<1x8xf32, #tpu.memory_space<vmem>>, %arg11: memref<9x8x8xbf16, #tpu.memory_space<vmem>>, %arg12: memref<1x8xf32, #tpu.memory_space<vmem>>, %arg13: memref<1x8xf32, #tpu.memory_space<vmem>>, %arg14: memref<1x1x8xf32, #tpu.memory_space<vmem>>, %arg15: memref<1x8x8x8xf32, #tpu.memory_space<vmem>>, %arg16: memref<10x10x4xf32, #tpu.memory_space<vmem>>, %arg17: memref<10x10x8xf32, #tpu.memory_space<vmem>>) attributes {dimension_semantics = [#tpu.dimension_semantics<parallel>], iteration_bounds = array<i64: 2>, scalar_prefetch = 0 : i64, scratch_operands = 2 : i64, tpu.core_type = #tpu.core_type<tc>, window_params = [{transform_indices = @transform_0, window_bounds = array<i64: 1, 10, 10, 4>}, {pipeline_mode = #tpu.pipeline_mode<synchronous>, transform_indices = @transform_1, window_bounds = array<i64: 9, 4, 4>}, {pipeline_mode = #tpu.pipeline_mode<synchronous>, transform_indices = @transform_2, window_bounds = array<i64: 1, 4>}, {pipeline_mode = #tpu.pipeline_mode<synchronous>, transform_indices = @transform_3, window_bounds = array<i64: 1, 4>}, {pipeline_mode = #tpu.pipeline_mode<synchronous>, transform_indices = @transform_4, window_bounds = array<i64: 9, 4, 4>}, {pipeline_mode = #tpu.pipeline_mode<synchronous>, transform_indices = @transform_5, window_bounds = array<i64: 1, 4>}, {pipeline_mode = #tpu.pipeline_mode<synchronous>, transform_indices = @transform_6, window_bounds = array<i64: 1, 4>}, {pipeline_mode = #tpu.pipeline_mode<synchronous>, transform_indices = @transform_7, window_bounds = array<i64: 9, 4, 8>}, {pipeline_mode = #tpu.pipeline_mode<synchronous>, transform_indices = @transform_8, window_bounds = array<i64: 1, 8>}, {pipeline_mode = #tpu.pipeline_mode<synchronous>, transform_indices = @transform_9, window_bounds = array<i64: 1, 8>}, {pipeline_mode = #tpu.pipeline_mode<synchronous>, transform_indices = @transform_10, window_bounds = array<i64: 9, 8, 8>}, {pipeline_mode = #tpu.pipeline_mode<synchronous>, transform_indices = @transform_11, window_bounds = array<i64: 1, 8>}, {pipeline_mode = #tpu.pipeline_mode<synchronous>, transform_indices = @transform_12, window_bounds = array<i64: 1, 8>}, {transform_indices = @transform_13, window_bounds = array<i64: 1, 1, 8>}, {transform_indices = @transform_14, window_bounds = array<i64: 1, 8, 8, 8>}]} {
    %cst = arith.constant 0.000000e+00 : f32
    %0 = vector.broadcast %cst : f32 to vector<10x10x4xf32>
    %c0 = arith.constant 0 : index
    %c0_0 = arith.constant 0 : index
    %c0_1 = arith.constant 0 : index
    %1 = vector.load %arg16[%c0, %c0_0, %c0_1] : memref<10x10x4xf32, #tpu.memory_space<vmem>>, vector<10x10x4xf32>
    tpu.vector_store %arg16[%c0, %c0_0, %c0_1], %0 {strides = array<i32>} : memref<10x10x4xf32, #tpu.memory_space<vmem>>, vector<10x10x4xf32>,
    %cst_2 = arith.constant 0.000000e+00 : f32
    %2 = vector.broadcast %cst_2 : f32 to vector<10x10x8xf32>
    %c0_3 = arith.constant 0 : index
    %c0_4 = arith.constant 0 : index
    %c0_5 = arith.constant 0 : index
    %3 = vector.load %arg17[%c0_3, %c0_4, %c0_5] : memref<10x10x8xf32, #tpu.memory_space<vmem>>, vector<10x10x8xf32>
    tpu.vector_store %arg17[%c0_3, %c0_4, %c0_5], %2 {strides = array<i32>} : memref<10x10x8xf32, #tpu.memory_space<vmem>>, vector<10x10x8xf32>,
    %cst_6 = arith.constant 0.000000e+00 : f32
    %4 = vector.broadcast %cst_6 : f32 to vector<64x4xf32>
    %c0_7 = arith.constant 0 : index
    %c0_8 = arith.constant 0 : index
    %c0_9 = arith.constant 0 : index
    %c0_10 = arith.constant 0 : index
    %5 = vector.load %arg1[%c0_7, %c0_8, %c0_9, %c0_10] : memref<1x10x10x4xf32, #tpu.memory_space<vmem>>, vector<1x8x8x4xf32>
    %6 = vector.shape_cast %5 : vector<1x8x8x4xf32> to vector<8x8x4xf32>
    %7 = vector.shape_cast %6 : vector<8x8x4xf32> to vector<64x4xf32>
    %8 = arith.truncf %7 : vector<64x4xf32> to vector<64x4xbf16>
    %c0_11 = arith.constant 0 : index
    %c0_12 = arith.constant 0 : index
    %c0_13 = arith.constant 0 : index
    %9 = vector.load %arg2[%c0_11, %c0_12, %c0_13] : memref<9x4x4xbf16, #tpu.memory_space<vmem>>, vector<1x4x4xbf16>
    %10 = vector.shape_cast %9 : vector<1x4x4xbf16> to vector<4x4xbf16>
    %cst_14 = arith.constant dense<0.000000e+00> : vector<64x4xf32>
    %11 = tpu.matmul %8, %10, %cst_14 {dimension_numbers = #tpu.dot_dimension_numbers<[1], [0], [0], [1], [0, 0, 1, 1], [], []>} : vector<64x4xbf16>, vector<4x4xbf16>, vector<64x4xf32> -> vector<64x4xf32>
    %12 = arith.addf %4, %11 : vector<64x4xf32>
    %c0_15 = arith.constant 0 : index
    %c0_16 = arith.constant 0 : index
    %c1 = arith.constant 1 : index
    %c0_17 = arith.constant 0 : index
    %13 = vector.load %arg1[%c0_15, %c0_16, %c1, %c0_17] : memref<1x10x10x4xf32, #tpu.memory_space<vmem>>, vector<1x8x8x4xf32>
    %14 = vector.shape_cast %13 : vector<1x8x8x4xf32> to vector<8x8x4xf32>
    %15 = vector.shape_cast %14 : vector<8x8x4xf32> to vector<64x4xf32>
    %16 = arith.truncf %15 : vector<64x4xf32> to vector<64x4xbf16>
    %c1_18 = arith.constant 1 : index
    %c0_19 = arith.constant 0 : index
    %c0_20 = arith.constant 0 : index
    %17 = vector.load %arg2[%c1_18, %c0_19, %c0_20] : memref<9x4x4xbf16, #tpu.memory_space<vmem>>, vector<1x4x4xbf16>
    %18 = vector.shape_cast %17 : vector<1x4x4xbf16> to vector<4x4xbf16>
    %cst_21 = arith.constant dense<0.000000e+00> : vector<64x4xf32>
    %19 = tpu.matmul %16, %18, %cst_21 {dimension_numbers = #tpu.dot_dimension_numbers<[1], [0], [0], [1], [0, 0, 1, 1], [], []>} : vector<64x4xbf16>, vector<4x4xbf16>, vector<64x4xf32> -> vector<64x4xf32>
    %20 = arith.addf %12, %19 : vector<64x4xf32>
    %c0_22 = arith.constant 0 : index
    %c0_23 = arith.constant 0 : index
    %c2 = arith.constant 2 : index
    %c0_24 = arith.constant 0 : index
    %21 = vector.load %arg1[%c0_22, %c0_23, %c2, %c0_24] : memref<1x10x10x4xf32, #tpu.memory_space<vmem>>, vector<1x8x8x4xf32>
    %22 = vector.shape_cast %21 : vector<1x8x8x4xf32> to vector<8x8x4xf32>
    %23 = vector.shape_cast %22 : vector<8x8x4xf32> to vector<64x4xf32>
    %24 = arith.truncf %23 : vector<64x4xf32> to vector<64x4xbf16>
    %c2_25 = arith.constant 2 : index
    %c0_26 = arith.constant 0 : index
    %c0_27 = arith.constant 0 : index
    %25 = vector.load %arg2[%c2_25, %c0_26, %c0_27] : memref<9x4x4xbf16, #tpu.memory_space<vmem>>, vector<1x4x4xbf16>
    %26 = vector.shape_cast %25 : vector<1x4x4xbf16> to vector<4x4xbf16>
    %cst_28 = arith.constant dense<0.000000e+00> : vector<64x4xf32>
    %27 = tpu.matmul %24, %26, %cst_28 {dimension_numbers = #tpu.dot_dimension_numbers<[1], [0], [0], [1], [0, 0, 1, 1], [], []>} : vector<64x4xbf16>, vector<4x4xbf16>, vector<64x4xf32> -> vector<64x4xf32>
    %28 = arith.addf %20, %27 : vector<64x4xf32>
    %c0_29 = arith.constant 0 : index
    %c1_30 = arith.constant 1 : index
    %c0_31 = arith.constant 0 : index
    %c0_32 = arith.constant 0 : index
    %29 = vector.load %arg1[%c0_29, %c1_30, %c0_31, %c0_32] : memref<1x10x10x4xf32, #tpu.memory_space<vmem>>, vector<1x8x8x4xf32>
    %30 = vector.shape_cast %29 : vector<1x8x8x4xf32> to vector<8x8x4xf32>
    %31 = vector.shape_cast %30 : vector<8x8x4xf32> to vector<64x4xf32>
    %32 = arith.truncf %31 : vector<64x4xf32> to vector<64x4xbf16>
    %c3 = arith.constant 3 : index
    %c0_33 = arith.constant 0 : index
    %c0_34 = arith.constant 0 : index
    %33 = vector.load %arg2[%c3, %c0_33, %c0_34] : memref<9x4x4xbf16, #tpu.memory_space<vmem>>, vector<1x4x4xbf16>
    %34 = vector.shape_cast %33 : vector<1x4x4xbf16> to vector<4x4xbf16>
    %cst_35 = arith.constant dense<0.000000e+00> : vector<64x4xf32>
    %35 = tpu.matmul %32, %34, %cst_35 {dimension_numbers = #tpu.dot_dimension_numbers<[1], [0], [0], [1], [0, 0, 1, 1], [], []>} : vector<64x4xbf16>, vector<4x4xbf16>, vector<64x4xf32> -> vector<64x4xf32>
    %36 = arith.addf %28, %35 : vector<64x4xf32>
    %c0_36 = arith.constant 0 : index
    %c1_37 = arith.constant 1 : index
    %c1_38 = arith.constant 1 : index
    %c0_39 = arith.constant 0 : index
    %37 = vector.load %arg1[%c0_36, %c1_37, %c1_38, %c0_39] : memref<1x10x10x4xf32, #tpu.memory_space<vmem>>, vector<1x8x8x4xf32>
    %38 = vector.shape_cast %37 : vector<1x8x8x4xf32> to vector<8x8x4xf32>
    %39 = vector.shape_cast %38 : vector<8x8x4xf32> to vector<64x4xf32>
    %40 = arith.truncf %39 : vector<64x4xf32> to vector<64x4xbf16>
    %c4 = arith.constant 4 : index
    %c0_40 = arith.constant 0 : index
    %c0_41 = arith.constant 0 : index
    %41 = vector.load %arg2[%c4, %c0_40, %c0_41] : memref<9x4x4xbf16, #tpu.memory_space<vmem>>, vector<1x4x4xbf16>
    %42 = vector.shape_cast %41 : vector<1x4x4xbf16> to vector<4x4xbf16>
    %cst_42 = arith.constant dense<0.000000e+00> : vector<64x4xf32>
    %43 = tpu.matmul %40, %42, %cst_42 {dimension_numbers = #tpu.dot_dimension_numbers<[1], [0], [0], [1], [0, 0, 1, 1], [], []>} : vector<64x4xbf16>, vector<4x4xbf16>, vector<64x4xf32> -> vector<64x4xf32>
    %44 = arith.addf %36, %43 : vector<64x4xf32>
    %c0_43 = arith.constant 0 : index
    %c1_44 = arith.constant 1 : index
    %c2_45 = arith.constant 2 : index
    %c0_46 = arith.constant 0 : index
    %45 = vector.load %arg1[%c0_43, %c1_44, %c2_45, %c0_46] : memref<1x10x10x4xf32, #tpu.memory_space<vmem>>, vector<1x8x8x4xf32>
    %46 = vector.shape_cast %45 : vector<1x8x8x4xf32> to vector<8x8x4xf32>
    %47 = vector.shape_cast %46 : vector<8x8x4xf32> to vector<64x4xf32>
    %48 = arith.truncf %47 : vector<64x4xf32> to vector<64x4xbf16>
    %c5 = arith.constant 5 : index
    %c0_47 = arith.constant 0 : index
    %c0_48 = arith.constant 0 : index
    %49 = vector.load %arg2[%c5, %c0_47, %c0_48] : memref<9x4x4xbf16, #tpu.memory_space<vmem>>, vector<1x4x4xbf16>
    %50 = vector.shape_cast %49 : vector<1x4x4xbf16> to vector<4x4xbf16>
    %cst_49 = arith.constant dense<0.000000e+00> : vector<64x4xf32>
    %51 = tpu.matmul %48, %50, %cst_49 {dimension_numbers = #tpu.dot_dimension_numbers<[1], [0], [0], [1], [0, 0, 1, 1], [], []>} : vector<64x4xbf16>, vector<4x4xbf16>, vector<64x4xf32> -> vector<64x4xf32>
    %52 = arith.addf %44, %51 : vector<64x4xf32>
    %c0_50 = arith.constant 0 : index
    %c2_51 = arith.constant 2 : index
    %c0_52 = arith.constant 0 : index
    %c0_53 = arith.constant 0 : index
    %53 = vector.load %arg1[%c0_50, %c2_51, %c0_52, %c0_53] : memref<1x10x10x4xf32, #tpu.memory_space<vmem>>, vector<1x8x8x4xf32>
    %54 = vector.shape_cast %53 : vector<1x8x8x4xf32> to vector<8x8x4xf32>
    %55 = vector.shape_cast %54 : vector<8x8x4xf32> to vector<64x4xf32>
    %56 = arith.truncf %55 : vector<64x4xf32> to vector<64x4xbf16>
    %c6 = arith.constant 6 : index
    %c0_54 = arith.constant 0 : index
    %c0_55 = arith.constant 0 : index
    %57 = vector.load %arg2[%c6, %c0_54, %c0_55] : memref<9x4x4xbf16, #tpu.memory_space<vmem>>, vector<1x4x4xbf16>
    %58 = vector.shape_cast %57 : vector<1x4x4xbf16> to vector<4x4xbf16>
    %cst_56 = arith.constant dense<0.000000e+00> : vector<64x4xf32>
    %59 = tpu.matmul %56, %58, %cst_56 {dimension_numbers = #tpu.dot_dimension_numbers<[1], [0], [0], [1], [0, 0, 1, 1], [], []>} : vector<64x4xbf16>, vector<4x4xbf16>, vector<64x4xf32> -> vector<64x4xf32>
    %60 = arith.addf %52, %59 : vector<64x4xf32>
    %c0_57 = arith.constant 0 : index
    %c2_58 = arith.constant 2 : index
    %c1_59 = arith.constant 1 : index
    %c0_60 = arith.constant 0 : index
    %61 = vector.load %arg1[%c0_57, %c2_58, %c1_59, %c0_60] : memref<1x10x10x4xf32, #tpu.memory_space<vmem>>, vector<1x8x8x4xf32>
    %62 = vector.shape_cast %61 : vector<1x8x8x4xf32> to vector<8x8x4xf32>
    %63 = vector.shape_cast %62 : vector<8x8x4xf32> to vector<64x4xf32>
    %64 = arith.truncf %63 : vector<64x4xf32> to vector<64x4xbf16>
    %c7 = arith.constant 7 : index
    %c0_61 = arith.constant 0 : index
    %c0_62 = arith.constant 0 : index
    %65 = vector.load %arg2[%c7, %c0_61, %c0_62] : memref<9x4x4xbf16, #tpu.memory_space<vmem>>, vector<1x4x4xbf16>
    %66 = vector.shape_cast %65 : vector<1x4x4xbf16> to vector<4x4xbf16>
    %cst_63 = arith.constant dense<0.000000e+00> : vector<64x4xf32>
    %67 = tpu.matmul %64, %66, %cst_63 {dimension_numbers = #tpu.dot_dimension_numbers<[1], [0], [0], [1], [0, 0, 1, 1], [], []>} : vector<64x4xbf16>, vector<4x4xbf16>, vector<64x4xf32> -> vector<64x4xf32>
    %68 = arith.addf %60, %67 : vector<64x4xf32>
    %c0_64 = arith.constant 0 : index
    %c2_65 = arith.constant 2 : index
    %c2_66 = arith.constant 2 : index
    %c0_67 = arith.constant 0 : index
    %69 = vector.load %arg1[%c0_64, %c2_65, %c2_66, %c0_67] : memref<1x10x10x4xf32, #tpu.memory_space<vmem>>, vector<1x8x8x4xf32>
    %70 = vector.shape_cast %69 : vector<1x8x8x4xf32> to vector<8x8x4xf32>
    %71 = vector.shape_cast %70 : vector<8x8x4xf32> to vector<64x4xf32>
    %72 = arith.truncf %71 : vector<64x4xf32> to vector<64x4xbf16>
    %c8 = arith.constant 8 : index
    %c0_68 = arith.constant 0 : index
    %c0_69 = arith.constant 0 : index
    %73 = vector.load %arg2[%c8, %c0_68, %c0_69] : memref<9x4x4xbf16, #tpu.memory_space<vmem>>, vector<1x4x4xbf16>
    %74 = vector.shape_cast %73 : vector<1x4x4xbf16> to vector<4x4xbf16>
    %cst_70 = arith.constant dense<0.000000e+00> : vector<64x4xf32>
    %75 = tpu.matmul %72, %74, %cst_70 {dimension_numbers = #tpu.dot_dimension_numbers<[1], [0], [0], [1], [0, 0, 1, 1], [], []>} : vector<64x4xbf16>, vector<4x4xbf16>, vector<64x4xf32> -> vector<64x4xf32>
    %76 = arith.addf %68, %75 : vector<64x4xf32>
    %c0_71 = arith.constant 0 : index
    %c0_72 = arith.constant 0 : index
    %77 = vector.load %arg3[%c0_71, %c0_72] : memref<1x4xf32, #tpu.memory_space<vmem>>, vector<1x4xf32>
    %c0_73 = arith.constant 0 : index
    %c0_74 = arith.constant 0 : index
    %78 = vector.load %arg4[%c0_73, %c0_74] : memref<1x4xf32, #tpu.memory_space<vmem>>, vector<1x4xf32>
    %79 = vector.shape_cast %76 : vector<64x4xf32> to vector<1x64x4xf32>
    %cst_75 = arith.constant dense<0.000000e+00> : vector<1xf32>
    %80 = vector.multi_reduction <add>, %79, %cst_75 [1, 2] : vector<1x64x4xf32> to vector<1xf32>
    %81 = vector.shape_cast %80 : vector<1xf32> to vector<1x1x1xf32>
    %82 = vector.extract %81[0, 0, 0] : f32 from vector<1x1x1xf32>
    %83 = arith.mulf %76, %76 : vector<64x4xf32>
    %84 = vector.shape_cast %83 : vector<64x4xf32> to vector<1x64x4xf32>
    %cst_76 = arith.constant dense<0.000000e+00> : vector<1xf32>
    %85 = vector.multi_reduction <add>, %84, %cst_76 [1, 2] : vector<1x64x4xf32> to vector<1xf32>
    %86 = vector.shape_cast %85 : vector<1xf32> to vector<1x1x1xf32>
    %87 = vector.extract %86[0, 0, 0] : f32 from vector<1x1x1xf32>
    %cst_77 = arith.constant 2.560000e+02 : f32
    %88 = arith.divf %82, %cst_77 : f32
    %cst_78 = arith.constant 2.560000e+02 : f32
    %89 = arith.divf %87, %cst_78 : f32
    %90 = arith.mulf %88, %88 : f32
    %91 = arith.subf %89, %90 : f32
    %cst_79 = arith.constant 0.000000e+00 : f32
    %92 = arith.maximumf %91, %cst_79 : f32
    %93 = vector.broadcast %88 : f32 to vector<64x4xf32>
    %94 = arith.subf %76, %93 : vector<64x4xf32>
    %cst_80 = arith.constant 9.99999974E-6 : f32
    %95 = arith.addf %92, %cst_80 : f32
    %96 = math.rsqrt %95 : f32
    %97 = vector.broadcast %96 : f32 to vector<64x4xf32>
    %98 = arith.mulf %94, %97 : vector<64x4xf32>
    %99 = vector.broadcast %77 : vector<1x4xf32> to vector<64x4xf32>
    %100 = arith.mulf %98, %99 : vector<64x4xf32>
    %101 = vector.broadcast %78 : vector<1x4xf32> to vector<64x4xf32>
    %102 = arith.addf %100, %101 : vector<64x4xf32>
    %cst_81 = arith.constant 5.000000e-01 : f32
    %103 = vector.broadcast %cst_81 : f32 to vector<64x4xf32>
    %104 = arith.mulf %103, %102 : vector<64x4xf32>
    %cst_82 = arith.constant 0.707106769 : f32
    %105 = vector.broadcast %cst_82 : f32 to vector<64x4xf32>
    %106 = arith.mulf %102, %105 : vector<64x4xf32>
    %107 = math.erf %106 : vector<64x4xf32>
    %cst_83 = arith.constant 1.000000e+00 : f32
    %108 = vector.broadcast %cst_83 : f32 to vector<64x4xf32>
    %109 = arith.addf %108, %107 : vector<64x4xf32>
    %110 = arith.mulf %104, %109 : vector<64x4xf32>
    %111 = vector.shape_cast %110 : vector<64x4xf32> to vector<8x8x4xf32>
    %c1_84 = arith.constant 1 : index
    %c1_85 = arith.constant 1 : index
    %c0_86 = arith.constant 0 : index
    %112 = vector.load %arg16[%c1_84, %c1_85, %c0_86] : memref<10x10x4xf32, #tpu.memory_space<vmem>>, vector<8x8x4xf32>
    tpu.vector_store %arg16[%c1_84, %c1_85, %c0_86], %111 {strides = array<i32>} : memref<10x10x4xf32, #tpu.memory_space<vmem>>, vector<8x8x4xf32>,
    %cst_87 = arith.constant 0.000000e+00 : f32
    %113 = vector.broadcast %cst_87 : f32 to vector<64x4xf32>
    %c0_88 = arith.constant 0 : index
    %c0_89 = arith.constant 0 : index
    %c0_90 = arith.constant 0 : index
    %114 = vector.load %arg16[%c0_88, %c0_89, %c0_90] : memref<10x10x4xf32, #tpu.memory_space<vmem>>, vector<8x8x4xf32>
    %115 = vector.shape_cast %114 : vector<8x8x4xf32> to vector<64x4xf32>
    %116 = arith.truncf %115 : vector<64x4xf32> to vector<64x4xbf16>
    %c0_91 = arith.constant 0 : index
    %c0_92 = arith.constant 0 : index
    %c0_93 = arith.constant 0 : index
    %117 = vector.load %arg5[%c0_91, %c0_92, %c0_93] : memref<9x4x4xbf16, #tpu.memory_space<vmem>>, vector<1x4x4xbf16>
    %118 = vector.shape_cast %117 : vector<1x4x4xbf16> to vector<4x4xbf16>
    %cst_94 = arith.constant dense<0.000000e+00> : vector<64x4xf32>
    %119 = tpu.matmul %116, %118, %cst_94 {dimension_numbers = #tpu.dot_dimension_numbers<[1], [0], [0], [1], [0, 0, 1, 1], [], []>} : vector<64x4xbf16>, vector<4x4xbf16>, vector<64x4xf32> -> vector<64x4xf32>
    %120 = arith.addf %113, %119 : vector<64x4xf32>
    %c0_95 = arith.constant 0 : index
    %c1_96 = arith.constant 1 : index
    %c0_97 = arith.constant 0 : index
    %121 = vector.load %arg16[%c0_95, %c1_96, %c0_97] : memref<10x10x4xf32, #tpu.memory_space<vmem>>, vector<8x8x4xf32>
    %122 = vector.shape_cast %121 : vector<8x8x4xf32> to vector<64x4xf32>
    %123 = arith.truncf %122 : vector<64x4xf32> to vector<64x4xbf16>
    %c1_98 = arith.constant 1 : index
    %c0_99 = arith.constant 0 : index
    %c0_100 = arith.constant 0 : index
    %124 = vector.load %arg5[%c1_98, %c0_99, %c0_100] : memref<9x4x4xbf16, #tpu.memory_space<vmem>>, vector<1x4x4xbf16>
    %125 = vector.shape_cast %124 : vector<1x4x4xbf16> to vector<4x4xbf16>
    %cst_101 = arith.constant dense<0.000000e+00> : vector<64x4xf32>
    %126 = tpu.matmul %123, %125, %cst_101 {dimension_numbers = #tpu.dot_dimension_numbers<[1], [0], [0], [1], [0, 0, 1, 1], [], []>} : vector<64x4xbf16>, vector<4x4xbf16>, vector<64x4xf32> -> vector<64x4xf32>
    %127 = arith.addf %120, %126 : vector<64x4xf32>
    %c0_102 = arith.constant 0 : index
    %c2_103 = arith.constant 2 : index
    %c0_104 = arith.constant 0 : index
    %128 = vector.load %arg16[%c0_102, %c2_103, %c0_104] : memref<10x10x4xf32, #tpu.memory_space<vmem>>, vector<8x8x4xf32>
    %129 = vector.shape_cast %128 : vector<8x8x4xf32> to vector<64x4xf32>
    %130 = arith.truncf %129 : vector<64x4xf32> to vector<64x4xbf16>
    %c2_105 = arith.constant 2 : index
    %c0_106 = arith.constant 0 : index
    %c0_107 = arith.constant 0 : index
    %131 = vector.load %arg5[%c2_105, %c0_106, %c0_107] : memref<9x4x4xbf16, #tpu.memory_space<vmem>>, vector<1x4x4xbf16>
    %132 = vector.shape_cast %131 : vector<1x4x4xbf16> to vector<4x4xbf16>
    %cst_108 = arith.constant dense<0.000000e+00> : vector<64x4xf32>
    %133 = tpu.matmul %130, %132, %cst_108 {dimension_numbers = #tpu.dot_dimension_numbers<[1], [0], [0], [1], [0, 0, 1, 1], [], []>} : vector<64x4xbf16>, vector<4x4xbf16>, vector<64x4xf32> -> vector<64x4xf32>
    %134 = arith.addf %127, %133 : vector<64x4xf32>
    %c1_109 = arith.constant 1 : index
    %c0_110 = arith.constant 0 : index
    %c0_111 = arith.constant 0 : index
    %135 = vector.load %arg16[%c1_109, %c0_110, %c0_111] : memref<10x10x4xf32, #tpu.memory_space<vmem>>, vector<8x8x4xf32>
    %136 = vector.shape_cast %135 : vector<8x8x4xf32> to vector<64x4xf32>
    %137 = arith.truncf %136 : vector<64x4xf32> to vector<64x4xbf16>
    %c3_112 = arith.constant 3 : index
    %c0_113 = arith.constant 0 : index
    %c0_114 = arith.constant 0 : index
    %138 = vector.load %arg5[%c3_112, %c0_113, %c0_114] : memref<9x4x4xbf16, #tpu.memory_space<vmem>>, vector<1x4x4xbf16>
    %139 = vector.shape_cast %138 : vector<1x4x4xbf16> to vector<4x4xbf16>
    %cst_115 = arith.constant dense<0.000000e+00> : vector<64x4xf32>
    %140 = tpu.matmul %137, %139, %cst_115 {dimension_numbers = #tpu.dot_dimension_numbers<[1], [0], [0], [1], [0, 0, 1, 1], [], []>} : vector<64x4xbf16>, vector<4x4xbf16>, vector<64x4xf32> -> vector<64x4xf32>
    %141 = arith.addf %134, %140 : vector<64x4xf32>
    %c1_116 = arith.constant 1 : index
    %c1_117 = arith.constant 1 : index
    %c0_118 = arith.constant 0 : index
    %142 = vector.load %arg16[%c1_116, %c1_117, %c0_118] : memref<10x10x4xf32, #tpu.memory_space<vmem>>, vector<8x8x4xf32>
    %143 = vector.shape_cast %142 : vector<8x8x4xf32> to vector<64x4xf32>
    %144 = arith.truncf %143 : vector<64x4xf32> to vector<64x4xbf16>
    %c4_119 = arith.constant 4 : index
    %c0_120 = arith.constant 0 : index
    %c0_121 = arith.constant 0 : index
    %145 = vector.load %arg5[%c4_119, %c0_120, %c0_121] : memref<9x4x4xbf16, #tpu.memory_space<vmem>>, vector<1x4x4xbf16>
    %146 = vector.shape_cast %145 : vector<1x4x4xbf16> to vector<4x4xbf16>
    %cst_122 = arith.constant dense<0.000000e+00> : vector<64x4xf32>
    %147 = tpu.matmul %144, %146, %cst_122 {dimension_numbers = #tpu.dot_dimension_numbers<[1], [0], [0], [1], [0, 0, 1, 1], [], []>} : vector<64x4xbf16>, vector<4x4xbf16>, vector<64x4xf32> -> vector<64x4xf32>
    %148 = arith.addf %141, %147 : vector<64x4xf32>
    %c1_123 = arith.constant 1 : index
    %c2_124 = arith.constant 2 : index
    %c0_125 = arith.constant 0 : index
    %149 = vector.load %arg16[%c1_123, %c2_124, %c0_125] : memref<10x10x4xf32, #tpu.memory_space<vmem>>, vector<8x8x4xf32>
    %150 = vector.shape_cast %149 : vector<8x8x4xf32> to vector<64x4xf32>
    %151 = arith.truncf %150 : vector<64x4xf32> to vector<64x4xbf16>
    %c5_126 = arith.constant 5 : index
    %c0_127 = arith.constant 0 : index
    %c0_128 = arith.constant 0 : index
    %152 = vector.load %arg5[%c5_126, %c0_127, %c0_128] : memref<9x4x4xbf16, #tpu.memory_space<vmem>>, vector<1x4x4xbf16>
    %153 = vector.shape_cast %152 : vector<1x4x4xbf16> to vector<4x4xbf16>
    %cst_129 = arith.constant dense<0.000000e+00> : vector<64x4xf32>
    %154 = tpu.matmul %151, %153, %cst_129 {dimension_numbers = #tpu.dot_dimension_numbers<[1], [0], [0], [1], [0, 0, 1, 1], [], []>} : vector<64x4xbf16>, vector<4x4xbf16>, vector<64x4xf32> -> vector<64x4xf32>
    %155 = arith.addf %148, %154 : vector<64x4xf32>
    %c2_130 = arith.constant 2 : index
    %c0_131 = arith.constant 0 : index
    %c0_132 = arith.constant 0 : index
    %156 = vector.load %arg16[%c2_130, %c0_131, %c0_132] : memref<10x10x4xf32, #tpu.memory_space<vmem>>, vector<8x8x4xf32>
    %157 = vector.shape_cast %156 : vector<8x8x4xf32> to vector<64x4xf32>
    %158 = arith.truncf %157 : vector<64x4xf32> to vector<64x4xbf16>
    %c6_133 = arith.constant 6 : index
    %c0_134 = arith.constant 0 : index
    %c0_135 = arith.constant 0 : index
    %159 = vector.load %arg5[%c6_133, %c0_134, %c0_135] : memref<9x4x4xbf16, #tpu.memory_space<vmem>>, vector<1x4x4xbf16>
    %160 = vector.shape_cast %159 : vector<1x4x4xbf16> to vector<4x4xbf16>
    %cst_136 = arith.constant dense<0.000000e+00> : vector<64x4xf32>
    %161 = tpu.matmul %158, %160, %cst_136 {dimension_numbers = #tpu.dot_dimension_numbers<[1], [0], [0], [1], [0, 0, 1, 1], [], []>} : vector<64x4xbf16>, vector<4x4xbf16>, vector<64x4xf32> -> vector<64x4xf32>
    %162 = arith.addf %155, %161 : vector<64x4xf32>
    %c2_137 = arith.constant 2 : index
    %c1_138 = arith.constant 1 : index
    %c0_139 = arith.constant 0 : index
    %163 = vector.load %arg16[%c2_137, %c1_138, %c0_139] : memref<10x10x4xf32, #tpu.memory_space<vmem>>, vector<8x8x4xf32>
    %164 = vector.shape_cast %163 : vector<8x8x4xf32> to vector<64x4xf32>
    %165 = arith.truncf %164 : vector<64x4xf32> to vector<64x4xbf16>
    %c7_140 = arith.constant 7 : index
    %c0_141 = arith.constant 0 : index
    %c0_142 = arith.constant 0 : index
    %166 = vector.load %arg5[%c7_140, %c0_141, %c0_142] : memref<9x4x4xbf16, #tpu.memory_space<vmem>>, vector<1x4x4xbf16>
    %167 = vector.shape_cast %166 : vector<1x4x4xbf16> to vector<4x4xbf16>
    %cst_143 = arith.constant dense<0.000000e+00> : vector<64x4xf32>
    %168 = tpu.matmul %165, %167, %cst_143 {dimension_numbers = #tpu.dot_dimension_numbers<[1], [0], [0], [1], [0, 0, 1, 1], [], []>} : vector<64x4xbf16>, vector<4x4xbf16>, vector<64x4xf32> -> vector<64x4xf32>
    %169 = arith.addf %162, %168 : vector<64x4xf32>
    %c2_144 = arith.constant 2 : index
    %c2_145 = arith.constant 2 : index
    %c0_146 = arith.constant 0 : index
    %170 = vector.load %arg16[%c2_144, %c2_145, %c0_146] : memref<10x10x4xf32, #tpu.memory_space<vmem>>, vector<8x8x4xf32>
    %171 = vector.shape_cast %170 : vector<8x8x4xf32> to vector<64x4xf32>
    %172 = arith.truncf %171 : vector<64x4xf32> to vector<64x4xbf16>
    %c8_147 = arith.constant 8 : index
    %c0_148 = arith.constant 0 : index
    %c0_149 = arith.constant 0 : index
    %173 = vector.load %arg5[%c8_147, %c0_148, %c0_149] : memref<9x4x4xbf16, #tpu.memory_space<vmem>>, vector<1x4x4xbf16>
    %174 = vector.shape_cast %173 : vector<1x4x4xbf16> to vector<4x4xbf16>
    %cst_150 = arith.constant dense<0.000000e+00> : vector<64x4xf32>
    %175 = tpu.matmul %172, %174, %cst_150 {dimension_numbers = #tpu.dot_dimension_numbers<[1], [0], [0], [1], [0, 0, 1, 1], [], []>} : vector<64x4xbf16>, vector<4x4xbf16>, vector<64x4xf32> -> vector<64x4xf32>
    %176 = arith.addf %169, %175 : vector<64x4xf32>
    %c0_151 = arith.constant 0 : index
    %c0_152 = arith.constant 0 : index
    %177 = vector.load %arg6[%c0_151, %c0_152] : memref<1x4xf32, #tpu.memory_space<vmem>>, vector<1x4xf32>
    %c0_153 = arith.constant 0 : index
    %c0_154 = arith.constant 0 : index
    %178 = vector.load %arg7[%c0_153, %c0_154] : memref<1x4xf32, #tpu.memory_space<vmem>>, vector<1x4xf32>
    %179 = vector.shape_cast %176 : vector<64x4xf32> to vector<1x64x4xf32>
    %cst_155 = arith.constant dense<0.000000e+00> : vector<1xf32>
    %180 = vector.multi_reduction <add>, %179, %cst_155 [1, 2] : vector<1x64x4xf32> to vector<1xf32>
    %181 = vector.shape_cast %180 : vector<1xf32> to vector<1x1x1xf32>
    %182 = vector.extract %181[0, 0, 0] : f32 from vector<1x1x1xf32>
    %183 = arith.mulf %176, %176 : vector<64x4xf32>
    %184 = vector.shape_cast %183 : vector<64x4xf32> to vector<1x64x4xf32>
    %cst_156 = arith.constant dense<0.000000e+00> : vector<1xf32>
    %185 = vector.multi_reduction <add>, %184, %cst_156 [1, 2] : vector<1x64x4xf32> to vector<1xf32>
    %186 = vector.shape_cast %185 : vector<1xf32> to vector<1x1x1xf32>
    %187 = vector.extract %186[0, 0, 0] : f32 from vector<1x1x1xf32>
    %cst_157 = arith.constant 2.560000e+02 : f32
    %188 = arith.divf %182, %cst_157 : f32
    %cst_158 = arith.constant 2.560000e+02 : f32
    %189 = arith.divf %187, %cst_158 : f32
    %190 = arith.mulf %188, %188 : f32
    %191 = arith.subf %189, %190 : f32
    %cst_159 = arith.constant 0.000000e+00 : f32
    %192 = arith.maximumf %191, %cst_159 : f32
    %193 = vector.broadcast %188 : f32 to vector<64x4xf32>
    %194 = arith.subf %176, %193 : vector<64x4xf32>
    %cst_160 = arith.constant 9.99999974E-6 : f32
    %195 = arith.addf %192, %cst_160 : f32
    %196 = math.rsqrt %195 : f32
    %197 = vector.broadcast %196 : f32 to vector<64x4xf32>
    %198 = arith.mulf %194, %197 : vector<64x4xf32>
    %199 = vector.broadcast %177 : vector<1x4xf32> to vector<64x4xf32>
    %200 = arith.mulf %198, %199 : vector<64x4xf32>
    %201 = vector.broadcast %178 : vector<1x4xf32> to vector<64x4xf32>
    %202 = arith.addf %200, %201 : vector<64x4xf32>
    %c0_161 = arith.constant 0 : index
    %c1_162 = arith.constant 1 : index
    %c1_163 = arith.constant 1 : index
    %c0_164 = arith.constant 0 : index
    %203 = vector.load %arg1[%c0_161, %c1_162, %c1_163, %c0_164] : memref<1x10x10x4xf32, #tpu.memory_space<vmem>>, vector<1x8x8x4xf32>
    %204 = vector.shape_cast %203 : vector<1x8x8x4xf32> to vector<8x8x4xf32>
    %205 = vector.shape_cast %204 : vector<8x8x4xf32> to vector<64x4xf32>
    %206 = arith.addf %205, %202 : vector<64x4xf32>
    %cst_165 = arith.constant 5.000000e-01 : f32
    %207 = vector.broadcast %cst_165 : f32 to vector<64x4xf32>
    %208 = arith.mulf %207, %206 : vector<64x4xf32>
    %cst_166 = arith.constant 0.707106769 : f32
    %209 = vector.broadcast %cst_166 : f32 to vector<64x4xf32>
    %210 = arith.mulf %206, %209 : vector<64x4xf32>
    %211 = math.erf %210 : vector<64x4xf32>
    %cst_167 = arith.constant 1.000000e+00 : f32
    %212 = vector.broadcast %cst_167 : f32 to vector<64x4xf32>
    %213 = arith.addf %212, %211 : vector<64x4xf32>
    %214 = arith.mulf %208, %213 : vector<64x4xf32>
    %215 = vector.shape_cast %214 : vector<64x4xf32> to vector<8x8x4xf32>
    %c1_168 = arith.constant 1 : index
    %c1_169 = arith.constant 1 : index
    %c0_170 = arith.constant 0 : index
    %216 = vector.load %arg16[%c1_168, %c1_169, %c0_170] : memref<10x10x4xf32, #tpu.memory_space<vmem>>, vector<8x8x4xf32>
    tpu.vector_store %arg16[%c1_168, %c1_169, %c0_170], %215 {strides = array<i32>} : memref<10x10x4xf32, #tpu.memory_space<vmem>>, vector<8x8x4xf32>,
    %cst_171 = arith.constant 0.000000e+00 : f32
    %217 = vector.broadcast %cst_171 : f32 to vector<64x8xf32>
    %c0_172 = arith.constant 0 : index
    %c0_173 = arith.constant 0 : index
    %c0_174 = arith.constant 0 : index
    %218 = vector.load %arg16[%c0_172, %c0_173, %c0_174] : memref<10x10x4xf32, #tpu.memory_space<vmem>>, vector<8x8x4xf32>
    %219 = vector.shape_cast %218 : vector<8x8x4xf32> to vector<64x4xf32>
    %220 = arith.truncf %219 : vector<64x4xf32> to vector<64x4xbf16>
    %c0_175 = arith.constant 0 : index
    %c0_176 = arith.constant 0 : index
    %c0_177 = arith.constant 0 : index
    %221 = vector.load %arg8[%c0_175, %c0_176, %c0_177] : memref<9x4x8xbf16, #tpu.memory_space<vmem>>, vector<1x4x8xbf16>
    %222 = vector.shape_cast %221 : vector<1x4x8xbf16> to vector<4x8xbf16>
    %cst_178 = arith.constant dense<0.000000e+00> : vector<64x8xf32>
    %223 = tpu.matmul %220, %222, %cst_178 {dimension_numbers = #tpu.dot_dimension_numbers<[1], [0], [0], [1], [0, 0, 1, 1], [], []>} : vector<64x4xbf16>, vector<4x8xbf16>, vector<64x8xf32> -> vector<64x8xf32>
    %224 = arith.addf %217, %223 : vector<64x8xf32>
    %c0_179 = arith.constant 0 : index
    %c1_180 = arith.constant 1 : index
    %c0_181 = arith.constant 0 : index
    %225 = vector.load %arg16[%c0_179, %c1_180, %c0_181] : memref<10x10x4xf32, #tpu.memory_space<vmem>>, vector<8x8x4xf32>
    %226 = vector.shape_cast %225 : vector<8x8x4xf32> to vector<64x4xf32>
    %227 = arith.truncf %226 : vector<64x4xf32> to vector<64x4xbf16>
    %c1_182 = arith.constant 1 : index
    %c0_183 = arith.constant 0 : index
    %c0_184 = arith.constant 0 : index
    %228 = vector.load %arg8[%c1_182, %c0_183, %c0_184] : memref<9x4x8xbf16, #tpu.memory_space<vmem>>, vector<1x4x8xbf16>
    %229 = vector.shape_cast %228 : vector<1x4x8xbf16> to vector<4x8xbf16>
    %cst_185 = arith.constant dense<0.000000e+00> : vector<64x8xf32>
    %230 = tpu.matmul %227, %229, %cst_185 {dimension_numbers = #tpu.dot_dimension_numbers<[1], [0], [0], [1], [0, 0, 1, 1], [], []>} : vector<64x4xbf16>, vector<4x8xbf16>, vector<64x8xf32> -> vector<64x8xf32>
    %231 = arith.addf %224, %230 : vector<64x8xf32>
    %c0_186 = arith.constant 0 : index
    %c2_187 = arith.constant 2 : index
    %c0_188 = arith.constant 0 : index
    %232 = vector.load %arg16[%c0_186, %c2_187, %c0_188] : memref<10x10x4xf32, #tpu.memory_space<vmem>>, vector<8x8x4xf32>
    %233 = vector.shape_cast %232 : vector<8x8x4xf32> to vector<64x4xf32>
    %234 = arith.truncf %233 : vector<64x4xf32> to vector<64x4xbf16>
    %c2_189 = arith.constant 2 : index
    %c0_190 = arith.constant 0 : index
    %c0_191 = arith.constant 0 : index
    %235 = vector.load %arg8[%c2_189, %c0_190, %c0_191] : memref<9x4x8xbf16, #tpu.memory_space<vmem>>, vector<1x4x8xbf16>
    %236 = vector.shape_cast %235 : vector<1x4x8xbf16> to vector<4x8xbf16>
    %cst_192 = arith.constant dense<0.000000e+00> : vector<64x8xf32>
    %237 = tpu.matmul %234, %236, %cst_192 {dimension_numbers = #tpu.dot_dimension_numbers<[1], [0], [0], [1], [0, 0, 1, 1], [], []>} : vector<64x4xbf16>, vector<4x8xbf16>, vector<64x8xf32> -> vector<64x8xf32>
    %238 = arith.addf %231, %237 : vector<64x8xf32>
    %c1_193 = arith.constant 1 : index
    %c0_194 = arith.constant 0 : index
    %c0_195 = arith.constant 0 : index
    %239 = vector.load %arg16[%c1_193, %c0_194, %c0_195] : memref<10x10x4xf32, #tpu.memory_space<vmem>>, vector<8x8x4xf32>
    %240 = vector.shape_cast %239 : vector<8x8x4xf32> to vector<64x4xf32>
    %241 = arith.truncf %240 : vector<64x4xf32> to vector<64x4xbf16>
    %c3_196 = arith.constant 3 : index
    %c0_197 = arith.constant 0 : index
    %c0_198 = arith.constant 0 : index
    %242 = vector.load %arg8[%c3_196, %c0_197, %c0_198] : memref<9x4x8xbf16, #tpu.memory_space<vmem>>, vector<1x4x8xbf16>
    %243 = vector.shape_cast %242 : vector<1x4x8xbf16> to vector<4x8xbf16>
    %cst_199 = arith.constant dense<0.000000e+00> : vector<64x8xf32>
    %244 = tpu.matmul %241, %243, %cst_199 {dimension_numbers = #tpu.dot_dimension_numbers<[1], [0], [0], [1], [0, 0, 1, 1], [], []>} : vector<64x4xbf16>, vector<4x8xbf16>, vector<64x8xf32> -> vector<64x8xf32>
    %245 = arith.addf %238, %244 : vector<64x8xf32>
    %c1_200 = arith.constant 1 : index
    %c1_201 = arith.constant 1 : index
    %c0_202 = arith.constant 0 : index
    %246 = vector.load %arg16[%c1_200, %c1_201, %c0_202] : memref<10x10x4xf32, #tpu.memory_space<vmem>>, vector<8x8x4xf32>
    %247 = vector.shape_cast %246 : vector<8x8x4xf32> to vector<64x4xf32>
    %248 = arith.truncf %247 : vector<64x4xf32> to vector<64x4xbf16>
    %c4_203 = arith.constant 4 : index
    %c0_204 = arith.constant 0 : index
    %c0_205 = arith.constant 0 : index
    %249 = vector.load %arg8[%c4_203, %c0_204, %c0_205] : memref<9x4x8xbf16, #tpu.memory_space<vmem>>, vector<1x4x8xbf16>
    %250 = vector.shape_cast %249 : vector<1x4x8xbf16> to vector<4x8xbf16>
    %cst_206 = arith.constant dense<0.000000e+00> : vector<64x8xf32>
    %251 = tpu.matmul %248, %250, %cst_206 {dimension_numbers = #tpu.dot_dimension_numbers<[1], [0], [0], [1], [0, 0, 1, 1], [], []>} : vector<64x4xbf16>, vector<4x8xbf16>, vector<64x8xf32> -> vector<64x8xf32>
    %252 = arith.addf %245, %251 : vector<64x8xf32>
    %c1_207 = arith.constant 1 : index
    %c2_208 = arith.constant 2 : index
    %c0_209 = arith.constant 0 : index
    %253 = vector.load %arg16[%c1_207, %c2_208, %c0_209] : memref<10x10x4xf32, #tpu.memory_space<vmem>>, vector<8x8x4xf32>
    %254 = vector.shape_cast %253 : vector<8x8x4xf32> to vector<64x4xf32>
    %255 = arith.truncf %254 : vector<64x4xf32> to vector<64x4xbf16>
    %c5_210 = arith.constant 5 : index
    %c0_211 = arith.constant 0 : index
    %c0_212 = arith.constant 0 : index
    %256 = vector.load %arg8[%c5_210, %c0_211, %c0_212] : memref<9x4x8xbf16, #tpu.memory_space<vmem>>, vector<1x4x8xbf16>
    %257 = vector.shape_cast %256 : vector<1x4x8xbf16> to vector<4x8xbf16>
    %cst_213 = arith.constant dense<0.000000e+00> : vector<64x8xf32>
    %258 = tpu.matmul %255, %257, %cst_213 {dimension_numbers = #tpu.dot_dimension_numbers<[1], [0], [0], [1], [0, 0, 1, 1], [], []>} : vector<64x4xbf16>, vector<4x8xbf16>, vector<64x8xf32> -> vector<64x8xf32>
    %259 = arith.addf %252, %258 : vector<64x8xf32>
    %c2_214 = arith.constant 2 : index
    %c0_215 = arith.constant 0 : index
    %c0_216 = arith.constant 0 : index
    %260 = vector.load %arg16[%c2_214, %c0_215, %c0_216] : memref<10x10x4xf32, #tpu.memory_space<vmem>>, vector<8x8x4xf32>
    %261 = vector.shape_cast %260 : vector<8x8x4xf32> to vector<64x4xf32>
    %262 = arith.truncf %261 : vector<64x4xf32> to vector<64x4xbf16>
    %c6_217 = arith.constant 6 : index
    %c0_218 = arith.constant 0 : index
    %c0_219 = arith.constant 0 : index
    %263 = vector.load %arg8[%c6_217, %c0_218, %c0_219] : memref<9x4x8xbf16, #tpu.memory_space<vmem>>, vector<1x4x8xbf16>
    %264 = vector.shape_cast %263 : vector<1x4x8xbf16> to vector<4x8xbf16>
    %cst_220 = arith.constant dense<0.000000e+00> : vector<64x8xf32>
    %265 = tpu.matmul %262, %264, %cst_220 {dimension_numbers = #tpu.dot_dimension_numbers<[1], [0], [0], [1], [0, 0, 1, 1], [], []>} : vector<64x4xbf16>, vector<4x8xbf16>, vector<64x8xf32> -> vector<64x8xf32>
    %266 = arith.addf %259, %265 : vector<64x8xf32>
    %c2_221 = arith.constant 2 : index
    %c1_222 = arith.constant 1 : index
    %c0_223 = arith.constant 0 : index
    %267 = vector.load %arg16[%c2_221, %c1_222, %c0_223] : memref<10x10x4xf32, #tpu.memory_space<vmem>>, vector<8x8x4xf32>
    %268 = vector.shape_cast %267 : vector<8x8x4xf32> to vector<64x4xf32>
    %269 = arith.truncf %268 : vector<64x4xf32> to vector<64x4xbf16>
    %c7_224 = arith.constant 7 : index
    %c0_225 = arith.constant 0 : index
    %c0_226 = arith.constant 0 : index
    %270 = vector.load %arg8[%c7_224, %c0_225, %c0_226] : memref<9x4x8xbf16, #tpu.memory_space<vmem>>, vector<1x4x8xbf16>
    %271 = vector.shape_cast %270 : vector<1x4x8xbf16> to vector<4x8xbf16>
    %cst_227 = arith.constant dense<0.000000e+00> : vector<64x8xf32>
    %272 = tpu.matmul %269, %271, %cst_227 {dimension_numbers = #tpu.dot_dimension_numbers<[1], [0], [0], [1], [0, 0, 1, 1], [], []>} : vector<64x4xbf16>, vector<4x8xbf16>, vector<64x8xf32> -> vector<64x8xf32>
    %273 = arith.addf %266, %272 : vector<64x8xf32>
    %c2_228 = arith.constant 2 : index
    %c2_229 = arith.constant 2 : index
    %c0_230 = arith.constant 0 : index
    %274 = vector.load %arg16[%c2_228, %c2_229, %c0_230] : memref<10x10x4xf32, #tpu.memory_space<vmem>>, vector<8x8x4xf32>
    %275 = vector.shape_cast %274 : vector<8x8x4xf32> to vector<64x4xf32>
    %276 = arith.truncf %275 : vector<64x4xf32> to vector<64x4xbf16>
    %c8_231 = arith.constant 8 : index
    %c0_232 = arith.constant 0 : index
    %c0_233 = arith.constant 0 : index
    %277 = vector.load %arg8[%c8_231, %c0_232, %c0_233] : memref<9x4x8xbf16, #tpu.memory_space<vmem>>, vector<1x4x8xbf16>
    %278 = vector.shape_cast %277 : vector<1x4x8xbf16> to vector<4x8xbf16>
    %cst_234 = arith.constant dense<0.000000e+00> : vector<64x8xf32>
    %279 = tpu.matmul %276, %278, %cst_234 {dimension_numbers = #tpu.dot_dimension_numbers<[1], [0], [0], [1], [0, 0, 1, 1], [], []>} : vector<64x4xbf16>, vector<4x8xbf16>, vector<64x8xf32> -> vector<64x8xf32>
    %280 = arith.addf %273, %279 : vector<64x8xf32>
    %c0_235 = arith.constant 0 : index
    %c0_236 = arith.constant 0 : index
    %281 = vector.load %arg9[%c0_235, %c0_236] : memref<1x8xf32, #tpu.memory_space<vmem>>, vector<1x8xf32>
    %c0_237 = arith.constant 0 : index
    %c0_238 = arith.constant 0 : index
    %282 = vector.load %arg10[%c0_237, %c0_238] : memref<1x8xf32, #tpu.memory_space<vmem>>, vector<1x8xf32>
    %283 = vector.shape_cast %280 : vector<64x8xf32> to vector<1x64x8xf32>
    %cst_239 = arith.constant dense<0.000000e+00> : vector<1xf32>
    %284 = vector.multi_reduction <add>, %283, %cst_239 [1, 2] : vector<1x64x8xf32> to vector<1xf32>
    %285 = vector.shape_cast %284 : vector<1xf32> to vector<1x1x1xf32>
    %286 = vector.extract %285[0, 0, 0] : f32 from vector<1x1x1xf32>
    %287 = arith.mulf %280, %280 : vector<64x8xf32>
    %288 = vector.shape_cast %287 : vector<64x8xf32> to vector<1x64x8xf32>
    %cst_240 = arith.constant dense<0.000000e+00> : vector<1xf32>
    %289 = vector.multi_reduction <add>, %288, %cst_240 [1, 2] : vector<1x64x8xf32> to vector<1xf32>
    %290 = vector.shape_cast %289 : vector<1xf32> to vector<1x1x1xf32>
    %291 = vector.extract %290[0, 0, 0] : f32 from vector<1x1x1xf32>
    %cst_241 = arith.constant 5.120000e+02 : f32
    %292 = arith.divf %286, %cst_241 : f32
    %cst_242 = arith.constant 5.120000e+02 : f32
    %293 = arith.divf %291, %cst_242 : f32
    %294 = arith.mulf %292, %292 : f32
    %295 = arith.subf %293, %294 : f32
    %cst_243 = arith.constant 0.000000e+00 : f32
    %296 = arith.maximumf %295, %cst_243 : f32
    %297 = vector.broadcast %292 : f32 to vector<64x8xf32>
    %298 = arith.subf %280, %297 : vector<64x8xf32>
    %cst_244 = arith.constant 9.99999974E-6 : f32
    %299 = arith.addf %296, %cst_244 : f32
    %300 = math.rsqrt %299 : f32
    %301 = vector.broadcast %300 : f32 to vector<64x8xf32>
    %302 = arith.mulf %298, %301 : vector<64x8xf32>
    %303 = vector.broadcast %281 : vector<1x8xf32> to vector<64x8xf32>
    %304 = arith.mulf %302, %303 : vector<64x8xf32>
    %305 = vector.broadcast %282 : vector<1x8xf32> to vector<64x8xf32>
    %306 = arith.addf %304, %305 : vector<64x8xf32>
    %cst_245 = arith.constant 5.000000e-01 : f32
    %307 = vector.broadcast %cst_245 : f32 to vector<64x8xf32>
    %308 = arith.mulf %307, %306 : vector<64x8xf32>
    %cst_246 = arith.constant 0.707106769 : f32
    %309 = vector.broadcast %cst_246 : f32 to vector<64x8xf32>
    %310 = arith.mulf %306, %309 : vector<64x8xf32>
    %311 = math.erf %310 : vector<64x8xf32>
    %cst_247 = arith.constant 1.000000e+00 : f32
    %312 = vector.broadcast %cst_247 : f32 to vector<64x8xf32>
    %313 = arith.addf %312, %311 : vector<64x8xf32>
    %314 = arith.mulf %308, %313 : vector<64x8xf32>
    %315 = vector.shape_cast %314 : vector<64x8xf32> to vector<8x8x8xf32>
    %c1_248 = arith.constant 1 : index
    %c1_249 = arith.constant 1 : index
    %c0_250 = arith.constant 0 : index
    %316 = vector.load %arg17[%c1_248, %c1_249, %c0_250] : memref<10x10x8xf32, #tpu.memory_space<vmem>>, vector<8x8x8xf32>
    tpu.vector_store %arg17[%c1_248, %c1_249, %c0_250], %315 {strides = array<i32>} : memref<10x10x8xf32, #tpu.memory_space<vmem>>, vector<8x8x8xf32>,
    %cst_251 = arith.constant 0.000000e+00 : f32
    %317 = vector.broadcast %cst_251 : f32 to vector<64x8xf32>
    %c0_252 = arith.constant 0 : index
    %c0_253 = arith.constant 0 : index
    %c0_254 = arith.constant 0 : index
    %318 = vector.load %arg17[%c0_252, %c0_253, %c0_254] : memref<10x10x8xf32, #tpu.memory_space<vmem>>, vector<8x8x8xf32>
    %319 = vector.shape_cast %318 : vector<8x8x8xf32> to vector<64x8xf32>
    %320 = arith.truncf %319 : vector<64x8xf32> to vector<64x8xbf16>
    %c0_255 = arith.constant 0 : index
    %c0_256 = arith.constant 0 : index
    %c0_257 = arith.constant 0 : index
    %321 = vector.load %arg11[%c0_255, %c0_256, %c0_257] : memref<9x8x8xbf16, #tpu.memory_space<vmem>>, vector<1x8x8xbf16>
    %322 = vector.shape_cast %321 : vector<1x8x8xbf16> to vector<8x8xbf16>
    %cst_258 = arith.constant dense<0.000000e+00> : vector<64x8xf32>
    %323 = tpu.matmul %320, %322, %cst_258 {dimension_numbers = #tpu.dot_dimension_numbers<[1], [0], [0], [1], [0, 0, 1, 1], [], []>} : vector<64x8xbf16>, vector<8x8xbf16>, vector<64x8xf32> -> vector<64x8xf32>
    %324 = arith.addf %317, %323 : vector<64x8xf32>
    %c0_259 = arith.constant 0 : index
    %c1_260 = arith.constant 1 : index
    %c0_261 = arith.constant 0 : index
    %325 = vector.load %arg17[%c0_259, %c1_260, %c0_261] : memref<10x10x8xf32, #tpu.memory_space<vmem>>, vector<8x8x8xf32>
    %326 = vector.shape_cast %325 : vector<8x8x8xf32> to vector<64x8xf32>
    %327 = arith.truncf %326 : vector<64x8xf32> to vector<64x8xbf16>
    %c1_262 = arith.constant 1 : index
    %c0_263 = arith.constant 0 : index
    %c0_264 = arith.constant 0 : index
    %328 = vector.load %arg11[%c1_262, %c0_263, %c0_264] : memref<9x8x8xbf16, #tpu.memory_space<vmem>>, vector<1x8x8xbf16>
    %329 = vector.shape_cast %328 : vector<1x8x8xbf16> to vector<8x8xbf16>
    %cst_265 = arith.constant dense<0.000000e+00> : vector<64x8xf32>
    %330 = tpu.matmul %327, %329, %cst_265 {dimension_numbers = #tpu.dot_dimension_numbers<[1], [0], [0], [1], [0, 0, 1, 1], [], []>} : vector<64x8xbf16>, vector<8x8xbf16>, vector<64x8xf32> -> vector<64x8xf32>
    %331 = arith.addf %324, %330 : vector<64x8xf32>
    %c0_266 = arith.constant 0 : index
    %c2_267 = arith.constant 2 : index
    %c0_268 = arith.constant 0 : index
    %332 = vector.load %arg17[%c0_266, %c2_267, %c0_268] : memref<10x10x8xf32, #tpu.memory_space<vmem>>, vector<8x8x8xf32>
    %333 = vector.shape_cast %332 : vector<8x8x8xf32> to vector<64x8xf32>
    %334 = arith.truncf %333 : vector<64x8xf32> to vector<64x8xbf16>
    %c2_269 = arith.constant 2 : index
    %c0_270 = arith.constant 0 : index
    %c0_271 = arith.constant 0 : index
    %335 = vector.load %arg11[%c2_269, %c0_270, %c0_271] : memref<9x8x8xbf16, #tpu.memory_space<vmem>>, vector<1x8x8xbf16>
    %336 = vector.shape_cast %335 : vector<1x8x8xbf16> to vector<8x8xbf16>
    %cst_272 = arith.constant dense<0.000000e+00> : vector<64x8xf32>
    %337 = tpu.matmul %334, %336, %cst_272 {dimension_numbers = #tpu.dot_dimension_numbers<[1], [0], [0], [1], [0, 0, 1, 1], [], []>} : vector<64x8xbf16>, vector<8x8xbf16>, vector<64x8xf32> -> vector<64x8xf32>
    %338 = arith.addf %331, %337 : vector<64x8xf32>
    %c1_273 = arith.constant 1 : index
    %c0_274 = arith.constant 0 : index
    %c0_275 = arith.constant 0 : index
    %339 = vector.load %arg17[%c1_273, %c0_274, %c0_275] : memref<10x10x8xf32, #tpu.memory_space<vmem>>, vector<8x8x8xf32>
    %340 = vector.shape_cast %339 : vector<8x8x8xf32> to vector<64x8xf32>
    %341 = arith.truncf %340 : vector<64x8xf32> to vector<64x8xbf16>
    %c3_276 = arith.constant 3 : index
    %c0_277 = arith.constant 0 : index
    %c0_278 = arith.constant 0 : index
    %342 = vector.load %arg11[%c3_276, %c0_277, %c0_278] : memref<9x8x8xbf16, #tpu.memory_space<vmem>>, vector<1x8x8xbf16>
    %343 = vector.shape_cast %342 : vector<1x8x8xbf16> to vector<8x8xbf16>
    %cst_279 = arith.constant dense<0.000000e+00> : vector<64x8xf32>
    %344 = tpu.matmul %341, %343, %cst_279 {dimension_numbers = #tpu.dot_dimension_numbers<[1], [0], [0], [1], [0, 0, 1, 1], [], []>} : vector<64x8xbf16>, vector<8x8xbf16>, vector<64x8xf32> -> vector<64x8xf32>
    %345 = arith.addf %338, %344 : vector<64x8xf32>
    %c1_280 = arith.constant 1 : index
    %c1_281 = arith.constant 1 : index
    %c0_282 = arith.constant 0 : index
    %346 = vector.load %arg17[%c1_280, %c1_281, %c0_282] : memref<10x10x8xf32, #tpu.memory_space<vmem>>, vector<8x8x8xf32>
    %347 = vector.shape_cast %346 : vector<8x8x8xf32> to vector<64x8xf32>
    %348 = arith.truncf %347 : vector<64x8xf32> to vector<64x8xbf16>
    %c4_283 = arith.constant 4 : index
    %c0_284 = arith.constant 0 : index
    %c0_285 = arith.constant 0 : index
    %349 = vector.load %arg11[%c4_283, %c0_284, %c0_285] : memref<9x8x8xbf16, #tpu.memory_space<vmem>>, vector<1x8x8xbf16>
    %350 = vector.shape_cast %349 : vector<1x8x8xbf16> to vector<8x8xbf16>
    %cst_286 = arith.constant dense<0.000000e+00> : vector<64x8xf32>
    %351 = tpu.matmul %348, %350, %cst_286 {dimension_numbers = #tpu.dot_dimension_numbers<[1], [0], [0], [1], [0, 0, 1, 1], [], []>} : vector<64x8xbf16>, vector<8x8xbf16>, vector<64x8xf32> -> vector<64x8xf32>
    %352 = arith.addf %345, %351 : vector<64x8xf32>
    %c1_287 = arith.constant 1 : index
    %c2_288 = arith.constant 2 : index
    %c0_289 = arith.constant 0 : index
    %353 = vector.load %arg17[%c1_287, %c2_288, %c0_289] : memref<10x10x8xf32, #tpu.memory_space<vmem>>, vector<8x8x8xf32>
    %354 = vector.shape_cast %353 : vector<8x8x8xf32> to vector<64x8xf32>
    %355 = arith.truncf %354 : vector<64x8xf32> to vector<64x8xbf16>
    %c5_290 = arith.constant 5 : index
    %c0_291 = arith.constant 0 : index
    %c0_292 = arith.constant 0 : index
    %356 = vector.load %arg11[%c5_290, %c0_291, %c0_292] : memref<9x8x8xbf16, #tpu.memory_space<vmem>>, vector<1x8x8xbf16>
    %357 = vector.shape_cast %356 : vector<1x8x8xbf16> to vector<8x8xbf16>
    %cst_293 = arith.constant dense<0.000000e+00> : vector<64x8xf32>
    %358 = tpu.matmul %355, %357, %cst_293 {dimension_numbers = #tpu.dot_dimension_numbers<[1], [0], [0], [1], [0, 0, 1, 1], [], []>} : vector<64x8xbf16>, vector<8x8xbf16>, vector<64x8xf32> -> vector<64x8xf32>
    %359 = arith.addf %352, %358 : vector<64x8xf32>
    %c2_294 = arith.constant 2 : index
    %c0_295 = arith.constant 0 : index
    %c0_296 = arith.constant 0 : index
    %360 = vector.load %arg17[%c2_294, %c0_295, %c0_296] : memref<10x10x8xf32, #tpu.memory_space<vmem>>, vector<8x8x8xf32>
    %361 = vector.shape_cast %360 : vector<8x8x8xf32> to vector<64x8xf32>
    %362 = arith.truncf %361 : vector<64x8xf32> to vector<64x8xbf16>
    %c6_297 = arith.constant 6 : index
    %c0_298 = arith.constant 0 : index
    %c0_299 = arith.constant 0 : index
    %363 = vector.load %arg11[%c6_297, %c0_298, %c0_299] : memref<9x8x8xbf16, #tpu.memory_space<vmem>>, vector<1x8x8xbf16>
    %364 = vector.shape_cast %363 : vector<1x8x8xbf16> to vector<8x8xbf16>
    %cst_300 = arith.constant dense<0.000000e+00> : vector<64x8xf32>
    %365 = tpu.matmul %362, %364, %cst_300 {dimension_numbers = #tpu.dot_dimension_numbers<[1], [0], [0], [1], [0, 0, 1, 1], [], []>} : vector<64x8xbf16>, vector<8x8xbf16>, vector<64x8xf32> -> vector<64x8xf32>
    %366 = arith.addf %359, %365 : vector<64x8xf32>
    %c2_301 = arith.constant 2 : index
    %c1_302 = arith.constant 1 : index
    %c0_303 = arith.constant 0 : index
    %367 = vector.load %arg17[%c2_301, %c1_302, %c0_303] : memref<10x10x8xf32, #tpu.memory_space<vmem>>, vector<8x8x8xf32>
    %368 = vector.shape_cast %367 : vector<8x8x8xf32> to vector<64x8xf32>
    %369 = arith.truncf %368 : vector<64x8xf32> to vector<64x8xbf16>
    %c7_304 = arith.constant 7 : index
    %c0_305 = arith.constant 0 : index
    %c0_306 = arith.constant 0 : index
    %370 = vector.load %arg11[%c7_304, %c0_305, %c0_306] : memref<9x8x8xbf16, #tpu.memory_space<vmem>>, vector<1x8x8xbf16>
    %371 = vector.shape_cast %370 : vector<1x8x8xbf16> to vector<8x8xbf16>
    %cst_307 = arith.constant dense<0.000000e+00> : vector<64x8xf32>
    %372 = tpu.matmul %369, %371, %cst_307 {dimension_numbers = #tpu.dot_dimension_numbers<[1], [0], [0], [1], [0, 0, 1, 1], [], []>} : vector<64x8xbf16>, vector<8x8xbf16>, vector<64x8xf32> -> vector<64x8xf32>
    %373 = arith.addf %366, %372 : vector<64x8xf32>
    %c2_308 = arith.constant 2 : index
    %c2_309 = arith.constant 2 : index
    %c0_310 = arith.constant 0 : index
    %374 = vector.load %arg17[%c2_308, %c2_309, %c0_310] : memref<10x10x8xf32, #tpu.memory_space<vmem>>, vector<8x8x8xf32>
    %375 = vector.shape_cast %374 : vector<8x8x8xf32> to vector<64x8xf32>
    %376 = arith.truncf %375 : vector<64x8xf32> to vector<64x8xbf16>
    %c8_311 = arith.constant 8 : index
    %c0_312 = arith.constant 0 : index
    %c0_313 = arith.constant 0 : index
    %377 = vector.load %arg11[%c8_311, %c0_312, %c0_313] : memref<9x8x8xbf16, #tpu.memory_space<vmem>>, vector<1x8x8xbf16>
    %378 = vector.shape_cast %377 : vector<1x8x8xbf16> to vector<8x8xbf16>
    %cst_314 = arith.constant dense<0.000000e+00> : vector<64x8xf32>
    %379 = tpu.matmul %376, %378, %cst_314 {dimension_numbers = #tpu.dot_dimension_numbers<[1], [0], [0], [1], [0, 0, 1, 1], [], []>} : vector<64x8xbf16>, vector<8x8xbf16>, vector<64x8xf32> -> vector<64x8xf32>
    %380 = arith.addf %373, %379 : vector<64x8xf32>
    %c0_315 = arith.constant 0 : index
    %c0_316 = arith.constant 0 : index
    %381 = vector.load %arg12[%c0_315, %c0_316] : memref<1x8xf32, #tpu.memory_space<vmem>>, vector<1x8xf32>
    %c0_317 = arith.constant 0 : index
    %c0_318 = arith.constant 0 : index
    %382 = vector.load %arg13[%c0_317, %c0_318] : memref<1x8xf32, #tpu.memory_space<vmem>>, vector<1x8xf32>
    %383 = vector.shape_cast %380 : vector<64x8xf32> to vector<1x64x8xf32>
    %cst_319 = arith.constant dense<0.000000e+00> : vector<1xf32>
    %384 = vector.multi_reduction <add>, %383, %cst_319 [1, 2] : vector<1x64x8xf32> to vector<1xf32>
    %385 = vector.shape_cast %384 : vector<1xf32> to vector<1x1x1xf32>
    %386 = vector.extract %385[0, 0, 0] : f32 from vector<1x1x1xf32>
    %387 = arith.mulf %380, %380 : vector<64x8xf32>
    %388 = vector.shape_cast %387 : vector<64x8xf32> to vector<1x64x8xf32>
    %cst_320 = arith.constant dense<0.000000e+00> : vector<1xf32>
    %389 = vector.multi_reduction <add>, %388, %cst_320 [1, 2] : vector<1x64x8xf32> to vector<1xf32>
    %390 = vector.shape_cast %389 : vector<1xf32> to vector<1x1x1xf32>
    %391 = vector.extract %390[0, 0, 0] : f32 from vector<1x1x1xf32>
    %cst_321 = arith.constant 5.120000e+02 : f32
    %392 = arith.divf %386, %cst_321 : f32
    %cst_322 = arith.constant 5.120000e+02 : f32
    %393 = arith.divf %391, %cst_322 : f32
    %394 = arith.mulf %392, %392 : f32
    %395 = arith.subf %393, %394 : f32
    %cst_323 = arith.constant 0.000000e+00 : f32
    %396 = arith.maximumf %395, %cst_323 : f32
    %397 = vector.broadcast %392 : f32 to vector<64x8xf32>
    %398 = arith.subf %380, %397 : vector<64x8xf32>
    %cst_324 = arith.constant 9.99999974E-6 : f32
    %399 = arith.addf %396, %cst_324 : f32
    %400 = math.rsqrt %399 : f32
    %401 = vector.broadcast %400 : f32 to vector<64x8xf32>
    %402 = arith.mulf %398, %401 : vector<64x8xf32>
    %403 = vector.broadcast %381 : vector<1x8xf32> to vector<64x8xf32>
    %404 = arith.mulf %402, %403 : vector<64x8xf32>
    %405 = vector.broadcast %382 : vector<1x8xf32> to vector<64x8xf32>
    %406 = arith.addf %404, %405 : vector<64x8xf32>
    %c0_325 = arith.constant 0 : index
    %c0_326 = arith.constant 0 : index
    %c0_327 = arith.constant 0 : index
    %407 = vector.load %arg14[%c0_325, %c0_326, %c0_327] : memref<1x1x8xf32, #tpu.memory_space<vmem>>, vector<1x1x8xf32>
    %408 = vector.shape_cast %407 : vector<1x1x8xf32> to vector<1x8xf32>
    %409 = vector.broadcast %408 : vector<1x8xf32> to vector<64x8xf32>
    %410 = arith.addf %406, %409 : vector<64x8xf32>
    %411 = vector.shape_cast %410 : vector<64x8xf32> to vector<8x8x8xf32>
    %c0_328 = arith.constant 0 : index
    %c0_329 = arith.constant 0 : index
    %c0_330 = arith.constant 0 : index
    %c0_331 = arith.constant 0 : index
    %412 = vector.load %arg15[%c0_328, %c0_329, %c0_330, %c0_331] : memref<1x8x8x8xf32, #tpu.memory_space<vmem>>, vector<1x8x8x8xf32>
    %413 = vector.shape_cast %412 : vector<1x8x8x8xf32> to vector<8x8x8xf32>
    %414 = vector.shape_cast %411 : vector<8x8x8xf32> to vector<1x8x8x8xf32>
    tpu.vector_store %arg15[%c0_328, %c0_329, %c0_330, %c0_331], %414 {strides = array<i32>} : memref<1x8x8x8xf32, #tpu.memory_space<vmem>>, vector<1x8x8x8xf32>,
    return
  }
  func.func @transform_0(%arg0: i32) -> (i32, i32, i32, i32) {
    %c0_i32 = arith.constant 0 : i32
    %c0_i32_0 = arith.constant 0 : i32
    %c0_i32_1 = arith.constant 0 : i32
    %c0_i32_2 = arith.constant 0 : i32
    return %arg0, %c0_i32, %c0_i32_0, %c0_i32_1 : i32, i32, i32, i32
  }
  func.func @transform_1(%arg0: i32) -> (i32, i32, i32) {
    %c0_i32 = arith.constant 0 : i32
    %c0_i32_0 = arith.constant 0 : i32
    %c0_i32_1 = arith.constant 0 : i32
    %c0_i32_2 = arith.constant 0 : i32
    return %c0_i32, %c0_i32_0, %c0_i32_1 : i32, i32, i32
  }
  func.func @transform_2(%arg0: i32) -> (i32, i32) {
    %c0_i32 = arith.constant 0 : i32
    %c0_i32_0 = arith.constant 0 : i32
    %c0_i32_1 = arith.constant 0 : i32
    return %c0_i32, %c0_i32_0 : i32, i32
  }
  func.func @transform_3(%arg0: i32) -> (i32, i32) {
    %c0_i32 = arith.constant 0 : i32
    %c0_i32_0 = arith.constant 0 : i32
    %c0_i32_1 = arith.constant 0 : i32
    return %c0_i32, %c0_i32_0 : i32, i32
  }
  func.func @transform_4(%arg0: i32) -> (i32, i32, i32) {
    %c0_i32 = arith.constant 0 : i32
    %c0_i32_0 = arith.constant 0 : i32
    %c0_i32_1 = arith.constant 0 : i32
    %c0_i32_2 = arith.constant 0 : i32
    return %c0_i32, %c0_i32_0, %c0_i32_1 : i32, i32, i32
  }
  func.func @transform_5(%arg0: i32) -> (i32, i32) {
    %c0_i32 = arith.constant 0 : i32
    %c0_i32_0 = arith.constant 0 : i32
    %c0_i32_1 = arith.constant 0 : i32
    return %c0_i32, %c0_i32_0 : i32, i32
  }
  func.func @transform_6(%arg0: i32) -> (i32, i32) {
    %c0_i32 = arith.constant 0 : i32
    %c0_i32_0 = arith.constant 0 : i32
    %c0_i32_1 = arith.constant 0 : i32
    return %c0_i32, %c0_i32_0 : i32, i32
  }
  func.func @transform_7(%arg0: i32) -> (i32, i32, i32) {
    %c0_i32 = arith.constant 0 : i32
    %c0_i32_0 = arith.constant 0 : i32
    %c0_i32_1 = arith.constant 0 : i32
    %c0_i32_2 = arith.constant 0 : i32
    return %c0_i32, %c0_i32_0, %c0_i32_1 : i32, i32, i32
  }
  func.func @transform_8(%arg0: i32) -> (i32, i32) {
    %c0_i32 = arith.constant 0 : i32
    %c0_i32_0 = arith.constant 0 : i32
    %c0_i32_1 = arith.constant 0 : i32
    return %c0_i32, %c0_i32_0 : i32, i32
  }
  func.func @transform_9(%arg0: i32) -> (i32, i32) {
    %c0_i32 = arith.constant 0 : i32
    %c0_i32_0 = arith.constant 0 : i32
    %c0_i32_1 = arith.constant 0 : i32
    return %c0_i32, %c0_i32_0 : i32, i32
  }
  func.func @transform_10(%arg0: i32) -> (i32, i32, i32) {
    %c0_i32 = arith.constant 0 : i32
    %c0_i32_0 = arith.constant 0 : i32
    %c0_i32_1 = arith.constant 0 : i32
    %c0_i32_2 = arith.constant 0 : i32
    return %c0_i32, %c0_i32_0, %c0_i32_1 : i32, i32, i32
  }
  func.func @transform_11(%arg0: i32) -> (i32, i32) {
    %c0_i32 = arith.constant 0 : i32
    %c0_i32_0 = arith.constant 0 : i32
    %c0_i32_1 = arith.constant 0 : i32
    return %c0_i32, %c0_i32_0 : i32, i32
  }
  func.func @transform_12(%arg0: i32) -> (i32, i32) {
    %c0_i32 = arith.constant 0 : i32
    %c0_i32_0 = arith.constant 0 : i32
    %c0_i32_1 = arith.constant 0 : i32
    return %c0_i32, %c0_i32_0 : i32, i32
  }
  func.func @transform_13(%arg0: i32) -> (i32, i32, i32) {
    %c0_i32 = arith.constant 0 : i32
    %c0_i32_0 = arith.constant 0 : i32
    %c0_i32_1 = arith.constant 0 : i32
    return %arg0, %c0_i32, %c0_i32_0 : i32, i32, i32
  }
  func.func @transform_14(%arg0: i32) -> (i32, i32, i32, i32) {
    %c0_i32 = arith.constant 0 : i32
    %c0_i32_0 = arith.constant 0 : i32
    %c0_i32_1 = arith.constant 0 : i32
    %c0_i32_2 = arith.constant 0 : i32
    return %arg0, %c0_i32, %c0_i32_0, %c0_i32_1 : i32, i32, i32, i32
  }
}

</mosaic_0001>

<bundles_post_ra>
// kernel: tpu_custom_call.1
= control target key start
LH: loop header
LB: loop body
LE: loop exit
PB: predicated region body
PF: predicated region fallthrough
CT: control target
= control target key end

     0   :  { %s7339_s0 = inlined_call_operand.vmem [shape: f32[2,10,10,4], index: 0, kind: input, shape index: {}]   ;;  %s7340_s1 = inlined_call_operand.vmem [shape: bf16[9,4,4], index: 1, kind: input, shape index: {}]   ;;  %s7341_s2 = inlined_call_operand.vmem [shape: f32[1,4], index: 2, kind: input, shape index: {}]   ;;  %s7342_s3 = inlined_call_operand.vmem [shape: f32[1,4], index: 3, kind: input, shape index: {}]   ;;  %s7343_s4 = inlined_call_operand.vmem [shape: bf16[9,4,4], index: 4, kind: input, shape index: {}]   ;;  %s7344_s5 = inlined_call_operand.vmem [shape: f32[1,4], index: 5, kind: input, shape index: {}]   ;;  %s7345_s6 = inlined_call_operand.vmem [shape: f32[1,4], index: 6, kind: input, shape index: {}]   ;;  %s7346_s7 = inlined_call_operand.vmem [shape: bf16[9,4,8], index: 7, kind: input, shape index: {}]   ;;  %s7347_s8 = inlined_call_operand.vmem [shape: f32[1,8], index: 8, kind: input, shape index: {}]   ;;  %s7348_s9 = inlined_call_operand.vmem [shape: f32[1,8], index: 9, kind: input, shape index: {}]   ;;  %s7349_s10 = inlined_call_operand.vmem [shape: bf16[9,8,8], index: 10, kind: input, shape index: {}]   ;;  %s7350_s11 = inlined_call_operand.vmem [shape: f32[1,8], index: 11, kind: input, shape index: {}]   ;;  %s7351_s12 = inlined_call_operand.vmem [shape: f32[1,8], index: 12, kind: input, shape index: {}]   ;;  %s7352_s13 = inlined_call_operand.vmem [shape: f32[2,1,8], index: 13, kind: input, shape index: {}]   ;;  %s7353_s14 = inlined_call_operand.hbm [shape: f32[2,8,8,8], index: 14, kind: output, shape index: {}]  }
   0x1   :  { %7354 = sst [smem:[#allocation8_spill]] %s7339_s0 }
   0x2   :  { %7355 = sst [smem:[#allocation9_spill]] %s7340_s1 }
   0x3   :  { %7356 = sst [smem:[#allocation10_spill]] %s7341_s2 }
   0x4   :  { %7357 = sst [smem:[#allocation11_spill]] %s7342_s3 }
   0x5   :  { %19 = vsyncpa [#allocation5], 0 }
   0x6   :  { %21 = vsyncpa [#allocation5 + $0x1], 0  ;;  %s5128_s29 = smov 0   ;;  %s5130_s30 = smov 0  }
   0x7   :  { %s5132_s15 = smov 0   ;;  %s5134_s16 = smov 0  }
   0x8 LB: > { %s5149_s17 = sadd.s32 4294967295, %s5045_s16   ;;  %s4572_s18 = sadd.s32 4294967294, %s5045_s16   ;;  %s5045_s16 = sphi %s5134_s16, %s7421_s16   ;;  %s5041_s15 = sphi %s5132_s15, %s7420_s15   ;;  %s5037_s30 = sphi %s5130_s30, %s7419_s30   ;;  %s5033_s29 = sphi %s5128_s29, %s7418_s29  }
   0x9   : > { %s5153_s19 = sadd.s32 1, %s5045_s16   ;;  %s338_s20 = sadd.s32 1, %s5041_s15 }
   0xa   : > { %s335_s21 = ssub.s32 %s5045_s16, %s5153_s19  ;;  %p348_p0 = scmp.ne.s32.totalorder %s5041_s15, %s5037_s30 }
   0xb   : > { %p336_p1 = scmp.eq.s32.totalorder %s335_s21, 0  ;;  %p349_p2 = scmp.eq.s32.totalorder %s5149_s17, 1 }
   0xc   : > { %p354_p3 = scmp.ne.s32.totalorder %s5037_s30, %s5033_s29  ;;  %p355_p4 = scmp.eq.s32.totalorder %s4572_s18, 1 }
   0xd   : > { %s5164_s22 = scalar_select %p336_p1, %s5041_s15, %s338_s20  }
   0xe   : > { %p5166_p5 = por %p349_p2, %p348_p0  ;;  %p5170_p6 = por %p355_p4, %p354_p3 }
   0xf   : > { %7358 = sst [smem:[#allocation7_spill]] %s5164_s22  ;;  %p4575_p7 = scmp.ge.s32.totalorder %s5045_s16, 1 }
  0x10   : > { %p423_p8 = scmp.lt.s32.totalorder %s5045_s16, 3 }
  0x12   : > { %p424_p9 = pnand %p4575_p7, %p423_p8 }
  0x13   : > { %s7361_s1 = sld [smem:[#allocation9_spill]] (!%p424_p9)  ;;  %p472_p10 = scmp.lt.s32.totalorder (!%p424_p9), %s5149_s17, 1 }
  0x14   : > { %427 = sbr.rel (%p424_p9) target bundleno = 2652 (0xa5c), region = 76  ;;  %s7362_s0 = sld [smem:[#allocation8_spill]] (!%p424_p9) }
  0x15   : > { %s7363_s2 = sld [smem:[#allocation10_spill]] (!%p424_p9) }
  0x16   : > { %s7364_s3 = sld [smem:[#allocation11_spill]] (!%p424_p9) }
  0x19   : > { %v4578_v0 = vld [vmem:[%s7361_s1 + $0x2] sm:$0x3]  ;;  %vm564_vm0 = vcmask 1041408   ;;  %v537_v1 = vld [vmem:[%s7361_s1] sm:$0x3]  ;;  %s5194_s25 = scalar_select %p472_p10, %s5149_s17, 1 }
  0x1a   : > { %v566_v2 = vsel %vm564_vm0, %v4578_v0, 0  ;;  %v610_v3 = vsel %vm564_vm0, %v537_v1, 0  ;;  %v4587_v4 = vld [vmem:[%s7361_s1 + $0x4] sm:$0x3]  ;;  %v4600_v5 = vld [vmem:[%s7361_s1 + $0x6] sm:$0x3] }
  0x1b   : > { %575 = vmatpush.bf16.msra.mxu0 %v566_v2  ;;  %619 = vmatpush.bf16.msra.mxu1 %v610_v3  ;;  %v668_v6 = vsel %vm564_vm0, %v4587_v4, 0  ;;  %v735_v7 = vsel %vm564_vm0, %v4600_v5, 0  ;;  %v4613_v8 = vld [vmem:[%s7361_s1 + $0x8] sm:$0x3]  ;;  %s4840_s28 = smul.u32 160, %s5194_s25  ;;  %vm481_vm1 = vcmask 31744  }
  0x1c   : > { %677 = vmatpush.bf16.msra.mxu2 %v668_v6  ;;  %744 = vmatpush.bf16.msra.mxu3 %v735_v7  ;;  %v801_v9 = vsel %vm564_vm0, %v4613_v8, 0  ;;  %v4639_v31 = vld [vmem:[%s7361_s1 + $0xc] sm:$0x3]  ;;  %v4652_v32 = vld [vmem:[%s7361_s1 + $0xe] sm:$0x3]  ;;  %vm483_vm3 = vcmask 25600  }
  0x1d   : > { %s5204_s20 = scalar_lea.vmem %s7362_s0, %s4840_s28  ;;  %v4626_v33 = vld [vmem:[%s7361_s1 + $0xa] sm:$0x3]  ;;  %v934_v34 = vsel %vm564_vm0, %v4639_v31, 0  ;;  %v1000_v35 = vsel %vm564_vm0, %v4652_v32, 0  ;;  %v4665_v47 = vld [vmem:[%s7361_s1 + $0x10] sm:$0x3] }
  0x1e   : > { %v538_v10 = vld [vmem:[%s5204_s20 + $0x1] sm:$0xff]  ;;  %v5208_v11 = vld [vmem:[%s5204_s20 + $0x11] sm:$0xff]  ;;  %v867_v36 = vsel %vm564_vm0, %v4626_v33, 0  ;;  %v1066_v48 = vsel %vm564_vm0, %v4665_v47, 0 }
  0x1f   : > { %810 = vmatpush.bf16.msrb.mxu0 %v801_v9  ;;  %v525_v12 = vld [vmem:[%s5204_s20] sm:$0xff]  ;;  %v546_v13 = vpack.c.bf16 %v5208_v11, %v538_v10  ;;  %v526_v14 = vld [vmem:[%s5204_s20 + $0x10] sm:$0xff]  ;;  %876 = vmatpush.bf16.msrb.mxu1 %v867_v36 }
  0x20   : > { %v641_v15 = vld [vmem:[%s5204_s20 + $0x2] sm:$0xff]  ;;  %v5215_v16 = vld [vmem:[%s5204_s20 + $0x12] sm:$0xff]  ;;  %v533_v17 = vpack.c.bf16 %v526_v14, %v525_v12  ;;  %943 = vmatpush.bf16.msrb.mxu2 %v934_v34  ;;  %1009 = vmatpush.bf16.msrb.mxu3 %v1000_v35 }
  0x21   : > { %v649_v18 = vpack.c.bf16 %v5215_v16, %v641_v15  ;;  %v4593_v19 = vld [vmem:[%s5204_s20 + $0x20] sm:$0xff]  ;;  %4579 = vmatmul.msk.bf16.vlgmr.msra.gmra.mxu0 %vm481_vm1, %v546_v13  ;;  %v541_v22 = vld [vmem:[%s5204_s20 + $0x31] sm:$0xff] }
  0x22   : > { %v716_v20 = vpack.c.bf16 %v4593_v19, %v526_v14  ;;  %4583 = vmatmul.msk.bf16.vlgmr.msra.gmra.mxu1 %vm481_vm1, %v533_v17  ;;  %v540_v21 = vld [vmem:[%s5204_s20 + $0x21] sm:$0xff]  ;;  %v528_v23 = vld [vmem:[%s5204_s20 + $0x30] sm:$0xff] }
  0x23   : > { %4588 = vmatmul.msk.bf16.vlgmr.msra.gmra.mxu2 %vm481_vm1, %v649_v18  ;;  %v643_v24 = vld [vmem:[%s5204_s20 + $0x22] sm:$0xff]  ;;  %v644_v25 = vld [vmem:[%s5204_s20 + $0x32] sm:$0xff]  ;;  %v547_v27 = vpack.c.bf16 %v541_v22, %v540_v21  ;;  %v534_v28 = vpack.c.bf16 %v528_v23, %v4593_v19  ;;  %1075 = vmatpush.bf16.msra.mxu0 %v1066_v48  ;;  %v782_v59 = vpack.c.bf16 %v540_v21, %v5208_v11 }
  0x24   : > { %4601 = vmatmul.msk.bf16.vlgmr.msra.gmra.mxu3 %vm481_vm1, %v716_v20  ;;  %v4595_v26 = vld [vmem:[%s5204_s20 + $0x40] sm:$0xff]  ;;  %v5229_v29 = vpack.c.bf16 %v644_v25, %v643_v24  ;;  %v543_v38 = vld [vmem:[%s5204_s20 + $0x51] sm:$0xff]  ;;  %v848_v60 = vpack.c.bf16 %v643_v24, %v5215_v16 }
  0x25   : > { %v717_v30 = vpack.c.bf16 %v4595_v26, %v528_v23  ;;  %v542_v37 = vld [vmem:[%s5204_s20 + $0x41] sm:$0xff]  ;;  %v530_v39 = vld [vmem:[%s5204_s20 + $0x50] sm:$0xff] }
  0x26   : > { %v645_v40 = vld [vmem:[%s5204_s20 + $0x42] sm:$0xff]  ;;  %v646_v41 = vld [vmem:[%s5204_s20 + $0x52] sm:$0xff]  ;;  %v548_v43 = vpack.c.bf16 %v543_v38, %v542_v37  ;;  %v535_v44 = vpack.c.bf16 %v530_v39, %v4595_v26  ;;  %v783_v61 = vpack.c.bf16 %v542_v37, %v541_v22 }
  0x27   : > { %v4597_v42 = vld [vmem:[%s5204_s20 + $0x60] sm:$0xff]  ;;  %v5254_v45 = vpack.c.bf16 %v646_v41, %v645_v40  ;;  %v545_v50 = vld [vmem:[%s5204_s20 + $0x71] sm:$0xff]  ;;  %v849_v62 = vpack.c.bf16 %v645_v40, %v644_v25 }
  0x28   : > { %v718_v46 = vpack.c.bf16 %v4597_v42, %v530_v39  ;;  %v544_v49 = vld [vmem:[%s5204_s20 + $0x61] sm:$0xff]  ;;  %v532_v51 = vld [vmem:[%s5204_s20 + $0x70] sm:$0xff] }
  0x29   : > { %v647_v52 = vld [vmem:[%s5204_s20 + $0x62] sm:$0xff]  ;;  %v648_v53 = vld [vmem:[%s5204_s20 + $0x72] sm:$0xff]  ;;  %v549_v55 = vpack.c.bf16 %v545_v50, %v544_v49  ;;  %v536_v56 = vpack.c.bf16 %v532_v51, %v4597_v42  ;;  %v784_v63 = vpack.c.bf16 %v544_v49, %v543_v38 }
  0x2a   : > { %v4599_v54 = vld [vmem:[%s5204_s20 + $0x80] sm:$0xff]  ;;  %v5271_v57 = vpack.c.bf16 %v648_v53, %v647_v52  ;;  %v850_v0 = vpack.c.bf16 %v647_v52, %v646_v41  ;;  %v4638_v2 = vld [vmem:[%s5204_s20 + $0x90] sm:$0xff] }
  0x2b   : > { %v719_v58 = vpack.c.bf16 %v4599_v54, %v532_v51  ;;  %v4612_v1 = vld [vmem:[%s5204_s20 + $0x81] sm:$0xff]  ;;  %v4651_v4 = vld [vmem:[%s5204_s20 + $0x91] sm:$0xff]  ;;  %v918_v6 = vpack.c.bf16 %v4638_v2, %v4599_v54 }
  0x2c   : > { %v4625_v3 = vld [vmem:[%s5204_s20 + $0x82] sm:$0xff]  ;;  %v785_v5 = vpack.c.bf16 %v4612_v1, %v545_v50  ;;  %v984_v8 = vpack.c.bf16 %v4651_v4, %v4612_v1  ;;  %v4664_v39 = vld [vmem:[%s5204_s20 + $0x92] sm:$0xff] }
  0x2d   : > { %v851_v7 = vpack.c.bf16 %v4625_v3, %v648_v53  ;;  %v1050_v40 = vpack.c.bf16 %v4664_v39, %v4625_v3 }
  0x31   : > { %4580 = vmatmul.msk.bf16.gmra.mxu0 %vm481_vm1, %v547_v27 }
  0x32   : > { %4584 = vmatmul.msk.bf16.gmra.mxu1 %vm481_vm1, %v534_v28 }
  0x33   : > { %4589 = vmatmul.msk.bf16.gmra.mxu2 %vm481_vm1, %v5229_v29 }
  0x34   : > { %4602 = vmatmul.msk.bf16.gmra.mxu3 %vm481_vm1, %v717_v30 }
  0x41   : > { %4581 = vmatmul.msk.bf16.gmra.mxu0 %vm481_vm1, %v548_v43 }
  0x42   : > { %4585 = vmatmul.msk.bf16.gmra.mxu1 %vm481_vm1, %v535_v44 }
  0x43   : > { %4590 = vmatmul.msk.bf16.gmra.mxu2 %vm481_vm1, %v5254_v45 }
  0x44   : > { %4603 = vmatmul.msk.bf16.gmra.mxu3 %vm481_vm1, %v718_v46 }
  0x51   : > { %4582 = vmatmul.msk.bf16.gmra.mxu0 %vm481_vm1, %v549_v55 }
  0x52   : > { %4586 = vmatmul.msk.bf16.gmra.mxu1 %vm481_vm1, %v536_v56 }
  0x53   : > { %4591 = vmatmul.msk.bf16.gmra.mxu2 %vm481_vm1, %v5271_v57 }
  0x54   : > { %4604 = vmatmul.msk.bf16.gmra.mxu3 %vm481_vm1, %v719_v58 }
  0x61   : > { %4614 = vmatmul.msk.bf16.vlgmr.msrb.gmra.mxu0 %vm481_vm1, %v782_v59 }
  0x62   : > { %4627 = vmatmul.msk.bf16.vlgmr.msrb.gmra.mxu1 %vm481_vm1, %v848_v60 }
  0x63   : > { %4640 = vmatmul.msk.bf16.vlgmr.msrb.gmra.mxu2 %vm481_vm1, %v534_v28 }
  0x64   : > { %4653 = vmatmul.msk.bf16.vlgmr.msrb.gmra.mxu3 %vm481_vm1, %v547_v27 }
  0x71   : > { %4615 = vmatmul.msk.bf16.gmra.mxu0 %vm481_vm1, %v783_v61 }
  0x72   : > { %4628 = vmatmul.msk.bf16.gmra.mxu1 %vm481_vm1, %v849_v62 }
  0x73   : > { %4641 = vmatmul.msk.bf16.gmra.mxu2 %vm481_vm1, %v535_v44 }
  0x74   : > { %4654 = vmatmul.msk.bf16.gmra.mxu3 %vm481_vm1, %v548_v43 }
  0x81   : > { %4616 = vmatmul.msk.bf16.gmra.mxu0 %vm481_vm1, %v784_v63 }
  0x82   : > { %4629 = vmatmul.msk.bf16.gmra.mxu1 %vm481_vm1, %v850_v0 }
  0x83   : > { %4642 = vmatmul.msk.bf16.gmra.mxu2 %vm481_vm1, %v536_v56 }
  0x84   : > { %4655 = vmatmul.msk.bf16.gmra.mxu3 %vm481_vm1, %v549_v55 }
  0x91   : > { %4617 = vmatmul.msk.bf16.gmra.mxu0 %vm481_vm1, %v785_v5 }
  0x92   : > { %4630 = vmatmul.msk.bf16.gmra.mxu1 %vm481_vm1, %v851_v7 }
  0x93   : > { %4643 = vmatmul.msk.bf16.gmra.mxu2 %vm481_vm1, %v918_v6 }
  0x94   : > { %4656 = vmatmul.msk.bf16.gmra.mxu3 %vm481_vm1, %v984_v8 }
  0x9e   : > { %v577_v9 = vpop.f32.mrf.mxu0 }
  0x9f   : > { %v621_v10 = vpop.f32.mrf.mxu1 }
  0xa0   : > { %v622_v11 = vadd.f32 %v621_v10, %v577_v9 }
  0xa1   : > { %4666 = vmatmul.msk.bf16.vlgmr.msra.gmra.mxu0 %vm481_vm1, %v5229_v29 }
  0xa6   : > { %v679_v12 = vpop.f32.mrf.mxu2  ;;  %v5302_v14 = vpop.f32.mrf.mxu0 }
  0xa7   : > { %v699_v13 = vadd.f32 %v679_v12, %v622_v11  ;;  %v746_v15 = vpop.f32.mrf.mxu3  ;;  %v5304_v16 = vpop.f32.mrf.mxu1 }
  0xa9   : > { %v766_v17 = vadd.f32 %v746_v15, %v699_v13 }
  0xae   : > { %v5306_v18 = vpop.f32.mrf.mxu2  ;;  %v582_v19 = vpop.f32.mrf.mxu0 }
  0xaf   : > { %v5308_v20 = vpop.f32.mrf.mxu3  ;;  %v626_v21 = vpop.f32.mrf.mxu1 }
  0xb0   : > { %v627_v22 = vadd.f32 %v626_v21, %v582_v19  ;;  %v624_v19 = vadd.f32 %v5304_v16, %v5302_v14 }
  0xb1   : > { %4667 = vmatmul.msk.bf16.gmra.mxu0 %vm481_vm1, %v5254_v45 }
  0xb6   : > { %v684_v23 = vpop.f32.mrf.mxu2  ;;  %v584_v25 = vpop.f32.mrf.mxu0 }
  0xb7   : > { %v701_v24 = vadd.f32 %v684_v23, %v627_v22  ;;  %v751_v26 = vpop.f32.mrf.mxu3  ;;  %v628_v27 = vpop.f32.mrf.mxu1  ;;  %v700_v22 = vadd.f32 %v5306_v18, %v624_v19 }
  0xb8   : > { %v629_v23 = vadd.f32 %v628_v27, %v584_v25 }
  0xb9   : > { %v768_v28 = vadd.f32 %v751_v26, %v701_v24 }
  0xbe   : > { %v686_v29 = vpop.f32.mrf.mxu2  ;;  %v587_v30 = vpop.f32.mrf.mxu0 }
  0xbf   : > { %v753_v31 = vpop.f32.mrf.mxu3  ;;  %v631_v32 = vpop.f32.mrf.mxu1 }
  0xc0   : > { %v632_v33 = vadd.f32 %v631_v32, %v587_v30  ;;  %v767_v30 = vadd.f32 %v5308_v20, %v700_v22 }
  0xc1   : > { %4668 = vmatmul.msk.bf16.gmra.mxu0 %vm481_vm1, %v5271_v57 }
  0xc6   : > { %v689_v34 = vpop.f32.mrf.mxu2  ;;  %v589_v36 = vpop.f32.mrf.mxu0 }
  0xc7   : > { %v703_v35 = vadd.f32 %v689_v34, %v632_v33  ;;  %v756_v37 = vpop.f32.mrf.mxu3  ;;  %v633_v46 = vpop.f32.mrf.mxu1 }
  0xc8   : > { %v634_v33 = vadd.f32 %v633_v46, %v589_v36 }
  0xc9   : > { %v770_v38 = vadd.f32 %v756_v37, %v703_v35 }
  0xce   : > { %v592_v41 = vpop.f32.mrf.mxu0  ;;  %v691_v47 = vpop.f32.mrf.mxu2 }
  0xcf   : > { %v758_v48 = vpop.f32.mrf.mxu3  ;;  %v636_v51 = vpop.f32.mrf.mxu1  ;;  %v704_v37 = vadd.f32 %v691_v47, %v634_v33 }
  0xd1   : > { %4669 = vmatmul.msk.bf16.gmra.mxu0 %vm481_vm1, %v1050_v40 }
  0xd6   : > { %v594_v42 = vpop.f32.mrf.mxu0  ;;  %v694_v52 = vpop.f32.mrf.mxu2 }
  0xd7   : > { %v761_v54 = vpop.f32.mrf.mxu3  ;;  %v638_v55 = vpop.f32.mrf.mxu1 }
  0xd8   : > { %v639_v19 = vadd.f32 %v638_v55, %v594_v42 }
  0xde   : > { %v812_v43 = vpop.f32.mrf.mxu0  ;;  %v696_v56 = vpop.f32.mrf.mxu2 }
  0xdf   : > { %v832_v44 = vadd.f32 %v812_v43, %v766_v17  ;;  %v5316_v59 = vpop.f32.mrf.mxu3  ;;  %v878_v60 = vpop.f32.mrf.mxu1 }
  0xe1   : > { %v898_v16 = vadd.f32 %v878_v60, %v832_v44 }
  0xe6   : > { %v814_v45 = vpop.f32.mrf.mxu0  ;;  %v945_v62 = vpop.f32.mrf.mxu2 }
  0xe7   : > { %v1011_v63 = vpop.f32.mrf.mxu3  ;;  %v880_v1 = vpop.f32.mrf.mxu1  ;;  %v833_v34 = vadd.f32 %v814_v45, %v767_v30 }
  0xe9   : > { %v899_v14 = vadd.f32 %v880_v1, %v833_v34 }
  0xee   : > { %v817_v49 = vpop.f32.mrf.mxu0  ;;  %v947_v2 = vpop.f32.mrf.mxu2 }
  0xef   : > { %v834_v50 = vadd.f32 %v817_v49, %v768_v28  ;;  %v1013_v3 = vpop.f32.mrf.mxu3  ;;  %v883_v5 = vpop.f32.mrf.mxu1  ;;  %v702_v28 = vadd.f32 %v686_v29, %v629_v23  ;;  %v966_v18 = vadd.f32 %v947_v2, %v899_v14  ;;  %v965_v29 = vadd.f32 %v945_v62, %v898_v16 }
  0xf1   : > { %v769_v35 = vadd.f32 %v753_v31, %v702_v28  ;;  %v900_v25 = vadd.f32 %v883_v5, %v834_v50  ;;  %v706_v31 = vadd.f32 %v696_v56, %v639_v19 }
  0xf3   : > { %v773_v42 = vadd.f32 %v5316_v59, %v706_v31 }
  0xf6   : > { %v819_v53 = vpop.f32.mrf.mxu0  ;;  %v950_v6 = vpop.f32.mrf.mxu2 }
  0xf7   : > { %v1016_v8 = vpop.f32.mrf.mxu3  ;;  %v885_v9 = vpop.f32.mrf.mxu1  ;;  %v835_v40 = vadd.f32 %v819_v53, %v769_v35  ;;  %v967_v22 = vadd.f32 %v950_v6, %v900_v25  ;;  %v1031_v53 = vadd.f32 %v1011_v63, %v965_v29 }
  0xf9   : > { %v901_v23 = vadd.f32 %v885_v9, %v835_v40  ;;  %v1033_v1 = vadd.f32 %v1016_v8, %v967_v22 }
  0xfe   : > { %v822_v57 = vpop.f32.mrf.mxu0  ;;  %v952_v10 = vpop.f32.mrf.mxu2 }
  0xff   : > { %v836_v58 = vadd.f32 %v822_v57, %v770_v38  ;;  %v1018_v12 = vpop.f32.mrf.mxu3  ;;  %v888_v13 = vpop.f32.mrf.mxu1  ;;  %v637_v38 = vadd.f32 %v636_v51, %v592_v41  ;;  %v771_v57 = vadd.f32 %v758_v48, %v704_v37  ;;  %v968_v46 = vadd.f32 %v952_v10, %v901_v23 }
 0x100   : > { %v1032_v41 = vadd.f32 %v1013_v3, %v966_v18 }
 0x101   : > { %v705_v49 = vadd.f32 %v694_v52, %v637_v38  ;;  %v902_v47 = vadd.f32 %v888_v13, %v836_v58  ;;  %v1034_v55 = vadd.f32 %v1018_v12, %v968_v46 }
 0x103   : > { %v772_v20 = vadd.f32 %v761_v54, %v705_v49 }
 0x106   : > { %v824_v61 = vpop.f32.mrf.mxu0  ;;  %v955_v17 = vpop.f32.mrf.mxu2 }
 0x107   : > { %v1021_v21 = vpop.f32.mrf.mxu3  ;;  %v890_v26 = vpop.f32.mrf.mxu1  ;;  %v837_v36 = vadd.f32 %v824_v61, %v771_v57  ;;  %v969_v44 = vadd.f32 %v955_v17, %v902_v47 }
 0x109   : > { %v903_v48 = vadd.f32 %v890_v26, %v837_v36  ;;  %v1035_v58 = vadd.f32 %v1021_v21, %v969_v44 }
 0x10e   : > { %v827_v0 = vpop.f32.mrf.mxu0  ;;  %v957_v32 = vpop.f32.mrf.mxu2 }
 0x10f   : > { %v1023_v39 = vpop.f32.mrf.mxu3  ;;  %v893_v27 = vpop.f32.mrf.mxu1  ;;  %v838_v51 = vadd.f32 %v827_v0, %v772_v20  ;;  %v970_v54 = vadd.f32 %v957_v32, %v903_v48 }
 0x111   : > { %v904_v62 = vadd.f32 %v893_v27, %v838_v51  ;;  %v1036_v6 = vadd.f32 %v1023_v39, %v970_v54 }
 0x116   : > { %v829_v4 = vpop.f32.mrf.mxu0  ;;  %v960_v45 = vpop.f32.mrf.mxu2 }
 0x117   : > { %v1026_v60 = vpop.f32.mrf.mxu3  ;;  %v839_v2 = vadd.f32 %v829_v4, %v773_v42  ;;  %v971_v0 = vadd.f32 %v960_v45, %v904_v62  ;;  %v895_v63 = vpop.f32.mrf.mxu1 }
 0x119   : > { %v905_v10 = vadd.f32 %v895_v63, %v839_v2  ;;  %v1037_v12 = vadd.f32 %v1026_v60, %v971_v0  ;;  %v5047_v60 = vmov 256.0  }
 0x11a   : > { %4923 = vrcp.f32 %v5047_v60 }
 0x11e   : > { %v1077_v7 = vpop.f32.mrf.mxu0  ;;  %v962_v8 = vpop.f32.mrf.mxu2 }
 0x11f   : > { %v5325_v61 = vadd.f32 %v1077_v7, %v1031_v53  ;;  %v972_v21 = vadd.f32 %v962_v8, %v905_v10  ;;  %v1028_v26 = vpop.f32.mrf.mxu3 }
 0x120   : > { %v4924_v42 = vpop.eup %4923 }
 0x121   : > { %v1107_v59 = vsel %vm481_vm1, %v5325_v61, 0.0  ;;  %v1131_v28 = vmul.f32 %v5325_v61, %v5325_v61  ;;  %v1038_v39 = vadd.f32 %v1028_v26, %v972_v21  ;;  %v1164_v2 = vmul.f32 256.0, %v4924_v42 }
 0x122   : > { %vm1168_vm2 = vweird.f32 %v4924_v42 }
 0x123   : > { %v1165_v63 = vsub.f32 1.0, %v1164_v2 }
 0x125   : > { %v1166_v10 = vmul.f32 %v4924_v42, %v1165_v63 }
 0x126   : > { %v1079_v11 = vpop.f32.mrf.mxu0 }
 0x127   : > { %v5322_v50 = vadd.f32 %v1079_v11, %v1032_v41 }
 0x129   : > { %v1108_v3 = vsel %vm481_vm1, %v5322_v50, 0.0  ;;  %v1132_v13 = vmul.f32 %v5322_v50, %v5322_v50 }
 0x12a   : > { %v1109_v4 = vadd.f32 %v1108_v3, %v1107_v59 }
 0x12b   : > { %v1140_v35 = vsel %vm481_vm1, %v1132_v13, 0.0 }
 0x12e   : > { %v1082_v15 = vpop.f32.mrf.mxu0 }
 0x12f   : > { %v5327_v56 = vadd.f32 %v1082_v15, %v1033_v1 }
 0x131   : > { %v1110_v7 = vsel %vm481_vm1, %v5327_v56, 0.0  ;;  %v1133_v30 = vmul.f32 %v5327_v56, %v5327_v56 }
 0x133   : > { %v1142_v49 = vsel %vm481_vm1, %v1133_v30, 0.0 }
 0x136   : > { %v1084_v24 = vpop.f32.mrf.mxu0 }
 0x137   : > { %v5331_v5 = vadd.f32 %v1084_v24, %v1034_v55  ;;  %v1111_v24 = vadd.f32 %v1110_v7, %v1109_v4 }
 0x139   : > { %v1112_v15 = vsel %vm481_vm1, %v5331_v5, 0.0  ;;  %v1134_v37 = vmul.f32 %v5331_v5, %v5331_v5 }
 0x13a   : > { %v1113_v34 = vadd.f32 %v1112_v15, %v1111_v24  ;;  %v5048_v24 = vmov 0.0  }
 0x13b   : > { %v1144_v27 = vsel %vm481_vm1, %v1134_v37, 0.0  ;;  %485 = vst.msk [vmem:[#allocation2 + $0x10] sm:$0xff] %vm481_vm1, %v5048_v24 }
 0x13c   : > { %486 = vst.msk [vmem:[#allocation2 + $0x18] sm:$0x3] %vm483_vm3, %v5048_v24 }
 0x13d   : > { %487 = vst.msk [vmem:[#allocation2 + $0x20] sm:$0xff] %vm481_vm1, %v5048_v24 }
 0x13e   : > { %v1087_v43 = vpop.f32.mrf.mxu0  ;;  %488 = vst.msk [vmem:[#allocation2 + $0x28] sm:$0x3] %vm483_vm3, %v5048_v24 }
 0x13f   : > { %v5337_v9 = vadd.f32 %v1087_v43, %v1035_v58  ;;  %v1139_v43 = vsel %vm481_vm1, %v1131_v28, 0.0  ;;  %489 = vst.msk [vmem:[#allocation2 + $0x30] sm:$0xff] %vm481_vm1, %v5048_v24 }
 0x140   : > { %v1141_v57 = vadd.f32 %v1140_v35, %v1139_v43  ;;  %490 = vst.msk [vmem:[#allocation2 + $0x38] sm:$0x3] %vm483_vm3, %v5048_v24 }
 0x141   : > { %v1114_v32 = vsel %vm481_vm1, %v5337_v9, 0.0  ;;  %v1135_v14 = vmul.f32 %v5337_v9, %v5337_v9  ;;  %491 = vst.msk [vmem:[#allocation2 + $0x40] sm:$0xff] %vm481_vm1, %v5048_v24 }
 0x142   : > { %v1115_v40 = vadd.f32 %v1114_v32, %v1113_v34  ;;  %v1143_v23 = vadd.f32 %v1142_v49, %v1141_v57  ;;  %492 = vst.msk [vmem:[#allocation2 + $0x48] sm:$0x3] %vm483_vm3, %v5048_v24 }
 0x143   : > { %v1146_v22 = vsel %vm481_vm1, %v1135_v14, 0.0  ;;  %493 = vst.msk [vmem:[#allocation2 + $0x50] sm:$0xff] %vm481_vm1, %v5048_v24 }
 0x144   : > { %v1145_v31 = vadd.f32 %v1144_v27, %v1143_v23  ;;  %494 = vst.msk [vmem:[#allocation2 + $0x58] sm:$0x3] %vm483_vm3, %v5048_v24 }
 0x145   : > { %495 = vst.msk [vmem:[#allocation2 + $0x60] sm:$0xff] %vm481_vm1, %v5048_v24 }
 0x146   : > { %v1089_v52 = vpop.f32.mrf.mxu0  ;;  %v1147_v51 = vadd.f32 %v1146_v22, %v1145_v31  ;;  %496 = vst.msk [vmem:[#allocation2 + $0x68] sm:$0x3] %vm483_vm3, %v5048_v24 }
 0x147   : > { %v5343_v17 = vadd.f32 %v1089_v52, %v1036_v6  ;;  %497 = vst.msk [vmem:[#allocation2 + $0x70] sm:$0xff] %vm481_vm1, %v5048_v24 }
 0x148   : > { %498 = vst.msk [vmem:[#allocation2 + $0x78] sm:$0x3] %vm483_vm3, %v5048_v24 }
 0x149   : > { %v1116_v38 = vsel %vm481_vm1, %v5343_v17, 0.0  ;;  %v1136_v19 = vmul.f32 %v5343_v17, %v5343_v17  ;;  %499 = vst.msk [vmem:[#allocation2 + $0x80] sm:$0xff] %vm481_vm1, %v5048_v24 }
 0x14a   : > { %v1117_v25 = vadd.f32 %v1116_v38, %v1115_v40  ;;  %500 = vst.msk [vmem:[#allocation2 + $0x88] sm:$0x3] %vm483_vm3, %v5048_v24 }
 0x14b   : > { %v1148_v47 = vsel %vm481_vm1, %v1136_v19, 0.0  ;;  %482 = vst.msk [vmem:[#allocation2] sm:$0xff] %vm481_vm1, %v5048_v24 }
 0x14c   : > { %v1149_v52 = vadd.f32 %v1148_v47, %v1147_v51  ;;  %484 = vst.msk [vmem:[#allocation2 + $0x8] sm:$0x3] %vm483_vm3, %v5048_v24 }
 0x14d   : > { %501 = vst.msk [vmem:[#allocation2 + $0x90] sm:$0xff] %vm481_vm1, %v5048_v24 }
 0x14e   : > { %v1092_v11 = vpop.f32.mrf.mxu0  ;;  %502 = vst.msk [vmem:[#allocation2 + $0x98] sm:$0x3] %vm483_vm3, %v5048_v24 }
 0x14f   : > { %v5351_v33 = vadd.f32 %v1092_v11, %v1037_v12  ;;  %v1167_v12 = vadd.f32 %v4924_v42, %v1166_v10 }
 0x151   : > { %v1118_v16 = vsel %vm481_vm1, %v5351_v33, 0.0  ;;  %v1137_v36 = vmul.f32 %v5351_v33, %v5351_v33  ;;  %v1169_v21 = vsel %vm1168_vm2, %v4924_v42, %v1167_v12 }
 0x152   : > { %v1119_v20 = vadd.f32 %v1118_v16, %v1117_v25  ;;  %v5442_v16 = vld [vmem:[%s7363_s2] ss:$0 sm:$0xff] }
 0x153   : > { %v1150_v53 = vsel %vm481_vm1, %v1137_v36, 0.0 }
 0x154   : > { %v1151_v44 = vadd.f32 %v1150_v53, %v1149_v52 }
 0x156   : > { %v1094_v18 = vpop.f32.mrf.mxu0 }
 0x157   : > { %v5367_v29 = vadd.f32 %v1094_v18, %v1038_v39 }
 0x159   : > { %v1120_v45 = vsel %vm481_vm1, %v5367_v29, 0.0  ;;  %v1138_v41 = vmul.f32 %v5367_v29, %v5367_v29 }
 0x15a   : > { %v1121_v46 = vadd.f32 %v1120_v45, %v1119_v20 }
 0x15b   : > { %v1152_v1 = vsel %vm481_vm1, %v1138_v41, 0.0 }
 0x15c   : > { %1122 = vadd.xlane.f32.xlu0 %v1121_v46  ;;  %v1153_v48 = vadd.f32 %v1152_v1, %v1151_v44 }
 0x164   : > { %1154 = vadd.xlane.f32.xlu0 %v1153_v48 }
 0x1cf   : > { %v1123_v55 = vpop.xlane.xlu0 %1122 }
 0x1d0   : > { %v1124_v54 = vrot.slane %v1123_v55, 4 }
 0x1d2   : > { %v1125_v62 = vadd.f32 %v1124_v54, %v1123_v55 }
 0x1d4   : > { %v1126_v58 = vrot.slane %v1125_v62, 2 }
 0x1d6   : > { %v1127_v0 = vadd.f32 %v1126_v58, %v1125_v62 }
 0x1d7   : > { %v1155_v3 = vpop.xlane.xlu0 %1154 }
 0x1d8   : > { %v1156_v6 = vrot.slane %v1155_v3, 4  ;;  %v1128_v8 = vrot.slane %v1127_v0, 1 }
 0x1da   : > { %v1157_v59 = vadd.f32 %v1156_v6, %v1155_v3  ;;  %v1129_v7 = vadd.f32 %v1128_v8, %v1127_v0 }
 0x1dc   : > { %v1158_v4 = vrot.slane %v1157_v59, 2  ;;  %4841 = vpush %v1129_v7 }
 0x1de   : > { %v1159_v11 = vadd.f32 %v1158_v4, %v1157_v59 }
 0x1e0   : > { %v1160_v13 = vrot.slane %v1159_v11, 1 }
 0x1e2   : > { %v1161_v15 = vadd.f32 %v1160_v13, %v1159_v11 }
 0x1e4   : > { %4843 = vpush %v1161_v15 }
 0x1e5   : > { %4845 = vpush %v1169_v21 }
 0x20d   : > { %s4842_s27 = spop %4841 }
 0x215   : > { %s4844_s28 = spop %4843 }
 0x216   : > { %s5383_s22 = spop %4845 }
 0x217   : > { %s5388_s18 = smul.f32 %s5383_s22, %s4842_s27  ;;  %s5049_s27 = smov 0.0  }
 0x218   : > { %s1180_s21 = smul.f32 %s5383_s22, %s4844_s28 }
 0x219   : > { %s1181_s26 = smul.f32 %s5388_s18, %s5388_s18  ;;  %v5429_v39 = vstv %s5388_s18 }
 0x21a   : > { %v1185_v40 = vsub.f32 %v5325_v61, %v5429_v39  ;;  %v1186_v43 = vsub.f32 %v5322_v50, %v5429_v39  ;;  %v1187_v49 = vsub.f32 %v5327_v56, %v5429_v39  ;;  %v1188_v14 = vsub.f32 %v5331_v5, %v5429_v39  ;;  %v5453_v56 = vld [vmem:[%s7364_s3] ss:$0 sm:$0xff] }
 0x21b   : > { %s1182_s0 = ssub.f32 %s1180_s21, %s1181_s26  ;;  %v1189_v52 = vsub.f32 %v5337_v9, %v5429_v39  ;;  %v1190_v62 = vsub.f32 %v5343_v17, %v5429_v39  ;;  %v1191_v0 = vsub.f32 %v5351_v33, %v5429_v39 }
 0x21d   : > { %s1183_s28 = smax.f32 %s5049_s27, %s1182_s0 }
 0x21e   : > { %s1193_s1 = sadd.f32 1e-05, %s1183_s28 }
 0x220   : > { %v1194_v26 = vstv %s1193_s1 }
 0x221   : > { %4925 = vrsqrt.f32 %v1194_v26  ;;  %vm1201_vm5 = vweird.f32 %v1194_v26 }
 0x227   : > { %v4926_v28 = vpop.eup %4925 }
 0x228   : > { %v1196_v30 = vmul.f32 %v4926_v28, %v1194_v26  ;;  %vm1202_vm4 = vweird.f32 %v4926_v28 }
 0x229   : > { %vm1203_vm6 = vmor %vm1201_vm5, %vm1202_vm4 }
 0x22a   : > { %v1197_v32 = vmul.f32 %v4926_v28, %v1196_v30 }
 0x22c   : > { %v1198_v34 = vmul.f32 0.5, %v1197_v32 }
 0x22e   : > { %v1199_v35 = vsub.f32 1.5, %v1198_v34 }
 0x230   : > { %v1200_v37 = vmul.f32 %v4926_v28, %v1199_v35 }
 0x232   : > { %v1204_v38 = vsel %vm1203_vm6, %v4926_v28, %v1200_v37 }
 0x233   : > { %4847 = vpush %v1204_v38 }
 0x264   : > { %s4848_s0 = spop %4847 }
 0x265   : > { %v5444_v57 = vstv %s4848_s0 }
 0x266   : > { %v1207_v18 = vmul.f32 %v5444_v57, %v1185_v40  ;;  %v1208_v61 = vmul.f32 %v5444_v57, %v1186_v43  ;;  %v1209_v50 = vmul.f32 %v5444_v57, %v1187_v49  ;;  %v1210_v25 = vmul.f32 %v5444_v57, %v1188_v14 }
 0x267   : > { %v1211_v42 = vmul.f32 %v5444_v57, %v1189_v52  ;;  %v1212_v8 = vmul.f32 %v5444_v57, %v1190_v62  ;;  %v1192_v40 = vsub.f32 %v5367_v29, %v5429_v39  ;;  %v1213_v62 = vmul.f32 %v5444_v57, %v1191_v0 }
 0x268   : > { %v1218_v5 = vmul.f32 %v5442_v16, %v1207_v18  ;;  %v1219_v27 = vmul.f32 %v5442_v16, %v1208_v61  ;;  %v1220_v19 = vmul.f32 %v5442_v16, %v1209_v50  ;;  %v1221_v23 = vmul.f32 %v5442_v16, %v1210_v25 }
 0x269   : > { %v1222_v10 = vmul.f32 %v5442_v16, %v1211_v42  ;;  %v1223_v34 = vmul.f32 %v5442_v16, %v1212_v8 }
 0x26a   : > { %v5460_v20 = vadd.f32 %v5453_v56, %v1218_v5  ;;  %v5463_v22 = vadd.f32 %v5453_v56, %v1219_v27  ;;  %v5466_v36 = vadd.f32 %v5453_v56, %v1220_v19  ;;  %v5469_v45 = vadd.f32 %v5453_v56, %v1221_v23 }
 0x26b   : > { %v1233_v5 = vadd.f32 %v5453_v56, %v1222_v10 }
 0x26c   : > { %v5472_v31 = vmul.f32 0.70710677, %v5460_v20  ;;  %v5475_v46 = vmul.f32 0.70710677, %v5463_v22  ;;  %v5478_v41 = vmul.f32 0.70710677, %v5466_v36 }
 0x26d   : > { %v5481_v47 = vmul.f32 0.70710677, %v5469_v45 }
 0x26e   : > { %v1253_v51 = vmul.f32 %v5472_v31, %v5472_v31  ;;  %v1293_v53 = vmul.f32 %v5475_v46, %v5475_v46  ;;  %v1333_v1 = vmul.f32 %v5478_v41, %v5478_v41 }
 0x26f   : > { %v1373_v44 = vmul.f32 %v5481_v47, %v5481_v47 }
 0x270   : > { %v5493_v48 = vmin.f32 %v1253_v51, 16.0  ;;  %v5495_v60 = vmin.f32 %v1293_v53, 16.0  ;;  %v5498_v55 = vmin.f32 %v1333_v1, 16.0  ;;  %v5532_v51 = vadd.f32 %v5453_v56, %v1223_v34 }
 0x271   : > { %v5500_v54 = vmin.f32 %v1373_v44, 16.0 }
 0x272   : > { %v1255_v9 = vmul.f32 2.1237322e-06, %v5493_v48  ;;  %v1266_v2 = vmul.f32 3.8918573e-05, %v5493_v48  ;;  %v1295_v58 = vmul.f32 2.1237322e-06, %v5495_v60 }
 0x273   : > { %v1306_v63 = vmul.f32 3.8918573e-05, %v5495_v60  ;;  %v1335_v3 = vmul.f32 2.1237322e-06, %v5498_v55  ;;  %v1346_v6 = vmul.f32 3.8918573e-05, %v5498_v55 }
 0x274   : > { %v1256_v59 = vadd.f32 0.00028619796, %v1255_v9  ;;  %v1267_v7 = vadd.f32 0.001143296, %v1266_v2  ;;  %v1296_v17 = vadd.f32 0.00028619796, %v1295_v58 }
 0x275   : > { %v1307_v4 = vadd.f32 0.001143296, %v1306_v63  ;;  %v1336_v11 = vadd.f32 0.00028619796, %v1335_v3  ;;  %v1347_v12 = vadd.f32 0.001143296, %v1346_v6 }
 0x276   : > { %v1257_v13 = vmul.f32 %v1256_v59, %v5493_v48  ;;  %v1268_v33 = vmul.f32 %v1267_v7, %v5493_v48  ;;  %v1297_v15 = vmul.f32 %v1296_v17, %v5495_v60  ;;  %v1375_v21 = vmul.f32 2.1237322e-06, %v5500_v54 }
 0x277   : > { %v1308_v26 = vmul.f32 %v1307_v4, %v5495_v60  ;;  %v1337_v28 = vmul.f32 %v1336_v11, %v5498_v55  ;;  %v1348_v30 = vmul.f32 %v1347_v12, %v5498_v55  ;;  %v1386_v32 = vmul.f32 3.8918573e-05, %v5500_v54 }
 0x278   : > { %v1258_v35 = vadd.f32 0.0036580483, %v1257_v13  ;;  %v1269_v37 = vadd.f32 0.014752088, %v1268_v33  ;;  %v1298_v38 = vadd.f32 0.0036580483, %v1297_v15  ;;  %v1214_v59 = vmul.f32 %v5444_v57, %v1192_v40 }
 0x279   : > { %v1309_v43 = vadd.f32 0.014752088, %v1308_v26  ;;  %v1338_v49 = vadd.f32 0.0036580483, %v1337_v28  ;;  %v1349_v14 = vadd.f32 0.014752088, %v1348_v30  ;;  %v1224_v30 = vmul.f32 %v5442_v16, %v1213_v62 }
 0x27a   : > { %v1259_v18 = vmul.f32 %v1258_v35, %v5493_v48  ;;  %v1270_v61 = vmul.f32 %v1269_v37, %v5493_v48  ;;  %v1299_v50 = vmul.f32 %v1298_v38, %v5495_v60  ;;  %v1376_v25 = vadd.f32 0.00028619796, %v1375_v21 }
 0x27b   : > { %v1310_v27 = vmul.f32 %v1309_v43, %v5495_v60  ;;  %v1350_v19 = vmul.f32 %v1349_v14, %v5498_v55  ;;  %v1387_v23 = vadd.f32 0.001143296, %v1386_v32  ;;  %v1339_v39 = vmul.f32 %v1338_v49, %v5498_v55 }
 0x27c   : > { %v1271_v29 = vadd.f32 0.112945676, %v1270_v61  ;;  %v1377_v53 = vmul.f32 %v1376_v25, %v5500_v54  ;;  %v1260_v52 = vadd.f32 0.05243302, %v1259_v18  ;;  %v1300_v2 = vadd.f32 0.05243302, %v1299_v50 }
 0x27d   : > { %v1311_v1 = vadd.f32 0.112945676, %v1310_v27  ;;  %v1351_v44 = vadd.f32 0.112945676, %v1350_v19  ;;  %v1388_v42 = vmul.f32 %v1387_v23, %v5500_v54  ;;  %v5539_v63 = vmul.f32 0.70710677, %v1233_v5 }
 0x27e   : > { %v1272_v9 = vmul.f32 %v1271_v29, %v5493_v48  ;;  %v1378_v58 = vadd.f32 0.0036580483, %v1377_v53  ;;  %v5545_v7 = vmul.f32 0.70710677, %v5532_v51  ;;  %v1340_v10 = vadd.f32 0.05243302, %v1339_v39 }
 0x27f   : > { %v1312_v3 = vmul.f32 %v1311_v1, %v5495_v60  ;;  %v1352_v6 = vmul.f32 %v1351_v44, %v5498_v55  ;;  %v1389_v8 = vadd.f32 0.014752088, %v1388_v42  ;;  %v1261_v0 = vmul.f32 %v1260_v52, %v5493_v48 }
 0x280   : > { %v1273_v17 = vadd.f32 0.4994258, %v1272_v9  ;;  %v1301_v33 = vmul.f32 %v1300_v2, %v5495_v60  ;;  %v1379_v15 = vmul.f32 %v1378_v58, %v5500_v54  ;;  %v1413_v28 = vmul.f32 %v5539_v63, %v5539_v63 }
 0x281   : > { %v1313_v4 = vadd.f32 0.4994258, %v1312_v3  ;;  %v1353_v11 = vadd.f32 0.4994258, %v1352_v6  ;;  %v1390_v12 = vmul.f32 %v1389_v8, %v5500_v54  ;;  %v1341_v34 = vmul.f32 %v1340_v10, %v5498_v55 }
 0x282   : > { %v1274_v13 = vmul.f32 %v1273_v17, %v5493_v48  ;;  %v1453_v35 = vmul.f32 %v5545_v7, %v5545_v7  ;;  %v1225_v37 = vmul.f32 %v5442_v16, %v1214_v59  ;;  %v1262_v38 = vadd.f32 0.18741608, %v1261_v0 }
 0x283   : > { %v1314_v21 = vmul.f32 %v1313_v4, %v5495_v60  ;;  %v1354_v57 = vmul.f32 %v1353_v11, %v5498_v55  ;;  %v1391_v26 = vadd.f32 0.112945676, %v1390_v12  ;;  %v1302_v49 = vadd.f32 0.18741608, %v1301_v33 }
 0x284   : > { %v5557_v32 = vadd.f32 1.0, %v1274_v13  ;;  %v1380_v14 = vadd.f32 0.05243302, %v1379_v15  ;;  %v5570_v61 = vmin.f32 %v1413_v28, 16.0  ;;  %v5573_v50 = vadd.f32 %v5453_v56, %v1224_v30 }
 0x285   : > { %v5563_v40 = vadd.f32 1.0, %v1314_v21  ;;  %v5565_v43 = vadd.f32 1.0, %v1354_v57  ;;  %v1392_v18 = vmul.f32 %v1391_v26, %v5500_v54  ;;  %v1342_v25 = vadd.f32 0.18741608, %v1341_v34 }
 0x286   : > { %4927 = vrcp.f32 %v5557_v32  ;;  %v5575_v16 = vmin.f32 %v1453_v35, 16.0  ;;  %v5578_v27 = vadd.f32 %v5453_v56, %v1225_v37  ;;  %v5581_v19 = vmul.f32 0.5, %v5460_v20 }
 0x287   : > { %4929 = vrcp.f32 %v5563_v40  ;;  %v1263_v23 = vmul.f32 %v1262_v38, %v5493_v48  ;;  %v5586_v29 = vmul.f32 0.5, %v5463_v22  ;;  %v5589_v39 = vmul.f32 0.5, %v5466_v36 }
 0x288   : > { %4931 = vrcp.f32 %v5565_v43  ;;  %v1303_v53 = vmul.f32 %v1302_v49, %v5495_v60  ;;  %v1381_v52 = vmul.f32 %v1380_v14, %v5500_v54  ;;  %v5594_v56 = vmul.f32 0.5, %v5469_v45 }
 0x289   : > { %v5596_v1 = vmul.f32 0.5, %v1233_v5  ;;  %v1393_v20 = vadd.f32 0.4994258, %v1392_v18  ;;  %v1415_v48 = vmul.f32 2.1237322e-06, %v5570_v61  ;;  %v1343_v36 = vmul.f32 %v1342_v25, %v5498_v55 }
 0x28a   : > { %v5602_v22 = vmul.f32 0.70710677, %v5573_v50  ;;  %v1426_v42 = vmul.f32 3.8918573e-05, %v5570_v61  ;;  %v1455_v60 = vmul.f32 2.1237322e-06, %v5575_v16  ;;  %vm1281_vm7 = vweird.f32 %v5557_v32 }
 0x28b   : > { %v1264_v45 = vadd.f32 1.1283791, %v1263_v23  ;;  %v1394_v9 = vmul.f32 %v1393_v20, %v5500_v54  ;;  %v1416_v2 = vadd.f32 0.00028619796, %v1415_v48  ;;  %v5613_v58 = vmul.f32 0.70710677, %v5578_v27 }
 0x28c   : > { %v5599_v44 = vpop.eup %4927  ;;  %v1304_v3 = vadd.f32 1.1283791, %v1303_v53  ;;  %v1382_v6 = vadd.f32 0.18741608, %v1381_v52  ;;  %v1427_v17 = vadd.f32 0.001143296, %v1426_v42  ;;  %v1493_v12 = vmul.f32 %v5602_v22, %v5602_v22 }
 0x28d   : > { %v5607_v62 = vpop.eup %4929  ;;  %v1277_v5 = vmul.f32 %v5599_v44, %v5557_v32  ;;  %v5617_v55 = vadd.f32 1.0, %v1394_v9  ;;  %v1417_v59 = vmul.f32 %v1416_v2, %v5570_v61  ;;  %v1456_v10 = vadd.f32 0.00028619796, %v1455_v60 }
 0x28e   : > { %v5615_v8 = vpop.eup %4931  ;;  %v1317_v4 = vmul.f32 %v5607_v62, %v5563_v40  ;;  %v1344_v11 = vadd.f32 1.1283791, %v1343_v36  ;;  %v5625_v13 = vmul.f32 %v1264_v45, %v5472_v31  ;;  %v1287_v33 = vand.u32 2147483648, %v5557_v32 }
 0x28f   : > { %v1278_v0 = vsub.f32 1.0, %v1277_v5  ;;  %v1357_v15 = vmul.f32 %v5615_v8, %v5565_v43  ;;  %4933 = vrcp.f32 %v5617_v55  ;;  %v1327_v21 = vand.u32 2147483648, %v5563_v40 }
 0x290   : > { %v1383_v57 = vmul.f32 %v1382_v6, %v5500_v54  ;;  %v1418_v26 = vadd.f32 0.0036580483, %v1417_v59  ;;  %v1285_v28 = vand.u32 2147483647, %v5557_v32  ;;  %v5636_v30 = vmul.f32 %v1304_v3, %v5475_v46 }
 0x291   : > { %v1428_v31 = vmul.f32 %v1427_v17, %v5570_v61  ;;  %v1457_v34 = vmul.f32 %v1456_v10, %v5575_v16  ;;  %v1279_v35 = vmul.f32 %v5599_v44, %v1278_v0  ;;  %v1318_v37 = vsub.f32 1.0, %v1317_v4 }
 0x292   : > { %v1325_v38 = vand.u32 2147483647, %v5563_v40  ;;  %v5643_v49 = vmul.f32 %v1344_v11, %v5478_v41  ;;  %v1288_v14 = vor.u32 1.1754944e-38, %v1287_v33  ;;  %v1358_v54 = vsub.f32 1.0, %v1357_v15 }
 0x293   : > { %v1367_v18 = vand.u32 2147483648, %v5565_v43  ;;  %v1429_v25 = vadd.f32 0.014752088, %v1428_v31  ;;  %vm1321_vm8 = vweird.f32 %v5563_v40  ;;  %v5647_v46 = vor.u32 1.1754944e-38, %v1327_v21 }
 0x294   : > { %v1365_v23 = vand.u32 2147483647, %v5565_v43  ;;  %v1384_v53 = vadd.f32 1.1283791, %v1383_v57  ;;  %v1419_v52 = vmul.f32 %v1418_v26, %v5570_v61  ;;  %vm5653_vm9 = vcmp.eq.f32.partialorder %v1285_v28, 8.507059e+37 }
 0x295   : > { %v5651_v20 = vpop.eup %4933  ;;  %vm1361_vm10 = vweird.f32 %v5565_v43  ;;  %v1430_v41 = vmul.f32 %v1429_v25, %v5570_v61  ;;  %v1458_v36 = vadd.f32 0.0036580483, %v1457_v34  ;;  %v1466_v42 = vmul.f32 3.8918573e-05, %v5575_v16 }
 0x296   : > { %v5660_v60 = vmin.f32 %v1493_v12, 16.0  ;;  %v1280_v45 = vadd.f32 %v5599_v44, %v1279_v35  ;;  %vm1282_vm11 = vweird.f32 %v5599_v44  ;;  %v1319_v5 = vmul.f32 %v5607_v62, %v1318_v37 }
 0x297   : > { %v1397_v9 = vmul.f32 %v5651_v20, %v5617_v55  ;;  %vm1322_vm12 = vweird.f32 %v5607_v62  ;;  %v1359_v2 = vmul.f32 %v5615_v8, %v1358_v54  ;;  %v1368_v3 = vor.u32 1.1754944e-38, %v1367_v18  ;;  %vm5675_vm14 = vmor %vm1281_vm7, %vm1282_vm11 }
 0x298   : > { %v1431_v6 = vadd.f32 0.112945676, %v1430_v41  ;;  %vm1362_vm13 = vweird.f32 %v5615_v8  ;;  %v5671_v59 = vmul.f32 %v1384_v53, %v5481_v47  ;;  %v1420_v10 = vadd.f32 0.05243302, %v1419_v52  ;;  %vm5706_vm4 = vmor %vm1321_vm8, %vm1322_vm12 }
 0x299   : > { %v1398_v17 = vsub.f32 1.0, %v1397_v9  ;;  %v1459_v11 = vmul.f32 %v1458_v36, %v5575_v16  ;;  %v1467_v12 = vadd.f32 0.001143296, %v1466_v42  ;;  %v1495_v33 = vmul.f32 2.1237322e-06, %v5660_v60  ;;  %vm5721_vm5 = vmor %vm1361_vm10, %vm1362_vm13 }
 0x29a   : > { %v1432_v4 = vmul.f32 %v1431_v6, %v5570_v61  ;;  %v1284_v47 = vsel %vm5675_vm14, %v5599_v44, %v1280_v45  ;;  %v1320_v15 = vadd.f32 %v5607_v62, %v1319_v5  ;;  %vm5686_vm15 = vcmp.eq.f32.partialorder %v1325_v38, 8.507059e+37 }
 0x29b   : > { %vm5690_vm2 = vcmp.eq.f32.partialorder %v1365_v23, 8.507059e+37  ;;  %vm1401_vm3 = vweird.f32 %v5617_v55  ;;  %v1506_v57 = vmul.f32 3.8918573e-05, %v5660_v60  ;;  %v1360_v26 = vadd.f32 %v5615_v8, %v1359_v2 }
 0x29c   : > { %v1433_v28 = vadd.f32 0.4994258, %v1432_v4  ;;  %v1468_v31 = vmul.f32 %v1467_v12, %v5575_v16  ;;  %v1496_v44 = vadd.f32 0.00028619796, %v1495_v33  ;;  %v1399_v34 = vmul.f32 %v5651_v20, %v1398_v17 }
 0x29d   : > { %v1421_v35 = vmul.f32 %v1420_v10, %v5570_v61  ;;  %v1507_v37 = vadd.f32 0.001143296, %v1506_v57  ;;  %v1533_v38 = vmul.f32 %v5613_v58, %v5613_v58  ;;  %v1460_v25 = vadd.f32 0.05243302, %v1459_v11 }
 0x29e   : > { %v1434_v18 = vmul.f32 %v1433_v28, %v5570_v61  ;;  %v1469_v23 = vadd.f32 0.014752088, %v1468_v31  ;;  %v1497_v53 = vmul.f32 %v1496_v44, %v5660_v60  ;;  %v1289_v52 = vsel %vm5653_vm9, %v1288_v14, %v1284_v47 }
 0x29f   : > { %v1324_v41 = vsel %vm5706_vm4, %v5607_v62, %v1320_v15  ;;  %v1407_v36 = vand.u32 2147483648, %v5617_v55  ;;  %v1508_v42 = vmul.f32 %v1507_v37, %v5660_v60  ;;  %v1364_v14 = vsel %vm5721_vm5, %v5615_v8, %v1360_v26 }
 0x2a0   : > { %v5730_v48 = vadd.f32 1.0, %v1434_v18  ;;  %v1470_v62 = vmul.f32 %v1469_v23, %v5575_v16  ;;  %v5733_v45 = vmin.f32 %v1533_v38, 16.0  ;;  %v1400_v43 = vadd.f32 %v5651_v20, %v1399_v34 }
 0x2a1   : > { %vm1402_vm6 = vweird.f32 %v5651_v20  ;;  %v1498_v5 = vadd.f32 0.0036580483, %v1497_v53  ;;  %v1509_v9 = vadd.f32 0.014752088, %v1508_v42  ;;  %v1405_v2 = vand.u32 2147483647, %v5617_v55 }
 0x2a2   : > { %v1422_v6 = vadd.f32 0.18741608, %v1421_v35  ;;  %4935 = vrcp.f32 %v5730_v48  ;;  %v1461_v17 = vmul.f32 %v1460_v25, %v5575_v16  ;;  %v1290_v8 = vmul.f32 %v1289_v52, %v5625_v13  ;;  %vm5749_vm7 = vmor %vm1401_vm3, %vm1402_vm6 }
 0x2a3   : > { %v1408_v10 = vor.u32 1.1754944e-38, %v1407_v36  ;;  %v1471_v0 = vadd.f32 0.112945676, %v1470_v62  ;;  %v1499_v4 = vmul.f32 %v1498_v5, %v5660_v60  ;;  %v1329_v11 = vsel %vm5686_vm15, %v5647_v46, %v1324_v41 }
 0x2a4   : > { %v1369_v12 = vsel %vm5690_vm2, %v1368_v3, %v1364_v14  ;;  %v1510_v47 = vmul.f32 %v1509_v9, %v5660_v60  ;;  %v1535_v13 = vmul.f32 2.1237322e-06, %v5733_v45  ;;  %v1404_v15 = vsel %vm5749_vm7, %v5651_v20, %v1400_v43 }
 0x2a5   : > { %v1472_v21 = vmul.f32 %v1471_v0, %v5575_v16  ;;  %v1500_v46 = vadd.f32 0.05243302, %v1499_v4  ;;  %v1546_v32 = vmul.f32 3.8918573e-05, %v5733_v45  ;;  %v1423_v3 = vmul.f32 %v1422_v6, %v5570_v61 }
 0x2a6   : > { %v1462_v55 = vadd.f32 0.18741608, %v1461_v17  ;;  %v1511_v57 = vadd.f32 0.112945676, %v1510_v47  ;;  %v1536_v26 = vadd.f32 0.00028619796, %v1535_v13  ;;  %v1330_v28 = vmul.f32 %v1329_v11, %v5636_v30 }
 0x2a7   : > { %vm1406_vm8 = vcmp.eq.f32.partialorder %v1405_v2, 8.507059e+37  ;;  %v1473_v31 = vadd.f32 0.4994258, %v1472_v21  ;;  %v1547_v44 = vadd.f32 0.001143296, %v1546_v32  ;;  %v1501_v37 = vmul.f32 %v1500_v46, %v5660_v60 }
 0x2a8   : > { %v4936_v34 = vpop.eup %4935  ;;  %v1409_v35 = vsel %vm1406_vm8, %v1408_v10, %v1404_v15  ;;  %v1512_v20 = vmul.f32 %v1511_v57, %v5660_v60  ;;  %v1537_v38 = vmul.f32 %v1536_v26, %v5733_v45  ;;  %v4670_v54 = vclamps-f32 %v1290_v8, 1.0 }
 0x2a9   : > { %v1370_v18 = vmul.f32 %v1369_v12, %v5643_v49  ;;  %v1437_v61 = vmul.f32 %v4936_v34, %v5730_v48  ;;  %v1474_v25 = vmul.f32 %v1473_v31, %v5575_v16  ;;  %v1424_v23 = vadd.f32 1.1283791, %v1423_v3 }
 0x2aa   : > { %v1463_v30 = vmul.f32 %v1462_v55, %v5575_v16  ;;  %v1513_v53 = vadd.f32 0.4994258, %v1512_v20  ;;  %v1548_v52 = vmul.f32 %v1547_v44, %v5733_v45  ;;  %v1410_v41 = vmul.f32 %v1409_v35, %v5671_v59  ;;  %v1610_v20 = vld [vmem:[%s7343_s4] sm:$0x3] }
 0x2ab   : > { %v1438_v40 = vsub.f32 1.0, %v1437_v61  ;;  %v5771_v36 = vadd.f32 1.0, %v1474_v25  ;;  %v1538_v42 = vadd.f32 0.0036580483, %v1537_v38  ;;  %v1447_v14 = vand.u32 2147483648, %v5730_v48 }
 0x2ac   : > { %v1502_v62 = vadd.f32 0.18741608, %v1501_v37  ;;  %v1514_v49 = vmul.f32 %v1513_v53, %v5660_v60  ;;  %v1549_v43 = vadd.f32 0.014752088, %v1548_v52  ;;  %vm1442_vm9 = vweird.f32 %v4936_v34  ;;  %v4678_v37 = vld [vmem:[%s7343_s4 + $0x2] sm:$0x3] }
 0x2ad   : > { %v1439_v5 = vmul.f32 %v4936_v34, %v1438_v40  ;;  %v1445_v9 = vand.u32 2147483647, %v5730_v48  ;;  %4937 = vrcp.f32 %v5771_v36  ;;  %v4671_v16 = vclamps-f32 %v1330_v28, 1.0  ;;  %v4692_v53 = vld [vmem:[%s7343_s4 + $0x6] sm:$0x3] }
 0x2ae   : > { %v4672_v2 = vclamps-f32 %v1370_v18, 1.0  ;;  %v1425_v59 = vmul.f32 %v1424_v23, %v5539_v63  ;;  %v5778_v6 = vadd.f32 1.0, %v1514_v49  ;;  %vm1441_vm10 = vweird.f32 %v5730_v48 }
 0x2af   : > { %v1440_v17 = vadd.f32 %v4936_v34, %v1439_v5  ;;  %v1539_v8 = vmul.f32 %v1538_v42, %v5733_v45  ;;  %v1550_v10 = vmul.f32 %v1549_v43, %v5733_v45  ;;  %v4673_v0 = vclamps-f32 %v1410_v41, 1.0  ;;  %vm1443_vm11 = vmor %vm1441_vm10, %vm1442_vm9 }
 0x2b0   : > { %v1448_v4 = vor.u32 1.1754944e-38, %v1447_v14  ;;  %v1503_v11 = vmul.f32 %v1502_v62, %v5660_v60  ;;  %4939 = vrcp.f32 %v5778_v6  ;;  %vm1446_vm12 = vcmp.eq.f32.partialorder %v1445_v9, 8.507059e+37  ;;  %v4697_v62 = vld [vmem:[%s7343_s4 + $0x8] sm:$0x3] }
 0x2b1   : > { %v1444_v12 = vsel %vm1443_vm11, %v4936_v34, %v1440_v17  ;;  %v1464_v33 = vadd.f32 1.1283791, %v1463_v30  ;;  %v1573_v63 = vadd.f32 1.0, %v4670_v54  ;;  %vm1481_vm13 = vweird.f32 %v5771_v36 }
 0x2b2   : > { %v1449_v47 = vsel %vm1446_vm12, %v1448_v4, %v1444_v12  ;;  %v1551_v13 = vadd.f32 0.112945676, %v1550_v10  ;;  %v1574_v48 = vadd.f32 1.0, %v4671_v16  ;;  %v1575_v15 = vadd.f32 1.0, %v4672_v2  ;;  %v1713_v4 = vld [vmem:[#allocation2 + $0x2] sm:$0xff] }
 0x2b3   : > { %v4938_v21 = vpop.eup %4937  ;;  %v1450_v46 = vmul.f32 %v1449_v47, %v1425_v59  ;;  %v1485_v32 = vand.u32 2147483647, %v5771_v36  ;;  %v1487_v3 = vand.u32 2147483648, %v5771_v36  ;;  %v1540_v55 = vadd.f32 0.05243302, %v1539_v8  ;;  %v1598_v8 = vld [vmem:[#allocation2] sm:$0xff] }
 0x2b4   : > { %v1477_v60 = vmul.f32 %v4938_v21, %v5771_v36  ;;  %v1504_v57 = vadd.f32 1.1283791, %v1503_v11  ;;  %v1552_v26 = vmul.f32 %v1551_v13, %v5733_v45  ;;  %v1576_v28 = vadd.f32 1.0, %v4673_v0 }
 0x2b5   : > { %v4674_v31 = vclamps-f32 %v1450_v46, 1.0  ;;  %v1527_v44 = vand.u32 2147483648, %v5778_v6  ;;  %v1581_v34 = vmul.f32 %v1573_v63, %v5581_v19  ;;  %v1582_v35 = vmul.f32 %v1574_v48, %v5586_v29  ;;  %v4687_v19 = vld [vmem:[%s7343_s4 + $0x4] sm:$0x3] }
 0x2b6   : > { %v5799_v38 = vpop.eup %4939  ;;  %v1478_v54 = vsub.f32 1.0, %v1477_v60  ;;  %v1553_v18 = vadd.f32 0.4994258, %v1552_v26  ;;  %v1583_v61 = vmul.f32 %v1575_v15, %v5589_v39  ;;  %v1584_v25 = vmul.f32 %v1576_v28, %v5594_v56 }
 0x2b7   : > { %vm1482_vm14 = vweird.f32 %v4938_v21  ;;  %v1517_v29 = vmul.f32 %v5799_v38, %v5778_v6  ;;  %v1541_v23 = vmul.f32 %v1540_v55, %v5733_v45  ;;  %v1577_v30 = vadd.f32 1.0, %v4674_v31  ;;  %1590 = vst.msk [vmem:[#allocation2 + $0x11] sm:$0xff] %vm481_vm1, %v1581_v34 }
 0x2b8   : > { %v1479_v39 = vmul.f32 %v4938_v21, %v1478_v54  ;;  %v1554_v56 = vmul.f32 %v1553_v18, %v5733_v45  ;;  %1591 = vst.msk [vmem:[#allocation2 + $0x21] sm:$0xff] %vm481_vm1, %v1582_v35  ;;  %v1638_v52 = vsel %vm564_vm0, %v4678_v37, 0  ;;  %v1682_v41 = vsel %vm564_vm0, %v1610_v20, 0  ;;  %vm1483_vm2 = vmor %vm1481_vm13, %vm1482_vm14 }
 0x2b9   : > { %v1518_v40 = vsub.f32 1.0, %v1517_v29  ;;  %vm1522_vm15 = vweird.f32 %v5799_v38  ;;  %v1585_v42 = vmul.f32 %v1577_v30, %v5596_v1  ;;  %1592 = vst.msk [vmem:[#allocation2 + $0x31] sm:$0xff] %vm481_vm1, %v1583_v61  ;;  %1647 = vmatpush.bf16.msra.mxu1 %v1638_v52  ;;  %1691 = vmatpush.bf16.msra.mxu2 %v1682_v41  ;;  %v1740_v14 = vsel %vm564_vm0, %v4687_v19, 0 }
 0x2ba   : > { %v1480_v49 = vadd.f32 %v4938_v21, %v1479_v39  ;;  %v5824_v43 = vadd.f32 1.0, %v1554_v56  ;;  %1593 = vst.msk [vmem:[#allocation2 + $0x41] sm:$0xff] %vm481_vm1, %v1584_v25  ;;  %1749 = vmatpush.bf16.msra.mxu3 %v1740_v14  ;;  %v1806_v5 = vsel %vm564_vm0, %v4692_v53, 0  ;;  %v1872_v1 = vsel %vm564_vm0, %v4697_v62, 0 }
 0x2bb   : > { %v1465_v9 = vmul.f32 %v1464_v33, %v5545_v7  ;;  %v1488_v16 = vor.u32 1.1754944e-38, %v1487_v3  ;;  %v1519_v2 = vmul.f32 %v5799_v38, %v1518_v40  ;;  %v1525_v59 = vand.u32 2147483647, %v5778_v6  ;;  %1594 = vst.msk [vmem:[#allocation2 + $0x51] sm:$0xff] %vm481_vm1, %v1585_v42  ;;  %1815 = vmatpush.bf16.msrb.mxu0 %v1806_v5  ;;  %v1611_v7 = vld [vmem:[#allocation2 + $0x1] sm:$0xff] }
 0x2bc   : > { %v1484_v17 = vsel %vm1483_vm2, %v4938_v21, %v1480_v49  ;;  %vm1486_vm3 = vcmp.eq.f32.partialorder %v1485_v32, 8.507059e+37  ;;  %vm1521_vm4 = vweird.f32 %v5778_v6  ;;  %4941 = vrcp.f32 %v5824_v43 }
 0x2bd   : > { %1881 = vmatpush.bf16.msrb.mxu1 %v1872_v1  ;;  %v1489_v10 = vsel %vm1486_vm3, %v1488_v16, %v1484_v17  ;;  %v1520_v36 = vadd.f32 %v5799_v38, %v1519_v2  ;;  %vm5841_vm5 = vmor %vm1521_vm4, %vm1522_vm15  ;;  %v1505_v12 = vmul.f32 %v1504_v57, %v5602_v22  ;;  %v1528_v33 = vor.u32 1.1754944e-38, %v1527_v44  ;;  %v4702_v1 = vld [vmem:[%s7343_s4 + $0xa] sm:$0x3] }
 0x2be   : > { %v1490_v11 = vmul.f32 %v1489_v10, %v1465_v9  ;;  %v1542_v63 = vadd.f32 0.18741608, %v1541_v23  ;;  %v5846_v6 = vld [vmem:[#allocation2 + $0x11] sm:$0xff]  ;;  %vm1526_vm6 = vcmp.eq.f32.partialorder %v1525_v59, 8.507059e+37  ;;  %v1242_v26 = vmul.f32 0.5, %v5532_v51 }
 0x2bf   : > { %v1599_v47 = vld [vmem:[#allocation2 + $0x10] sm:$0xff]  ;;  %v1524_v48 = vsel %vm5841_vm5, %v5799_v38, %v1520_v36  ;;  %v1619_v15 = vpack.c.bf16 %v5846_v6, %v1611_v7  ;;  %v1780_v46 = vld [vmem:[#allocation2 + $0x20] sm:$0xff]  ;;  %v1243_v37 = vmul.f32 0.5, %v5573_v50  ;;  %v1567_v18 = vand.u32 2147483648, %v5824_v43  ;;  %v4707_v9 = vld [vmem:[%s7343_s4 + $0xc] sm:$0x3] }
 0x2c0   : > { %v5848_v13 = vld [vmem:[#allocation2 + $0x12] sm:$0xff]  ;;  %v1606_v21 = vpack.c.bf16 %v1599_v47, %v1598_v8  ;;  %v4675_v32 = vclamps-f32 %v1490_v11, 1.0  ;;  %v1529_v3 = vsel %vm1526_vm6, %v1528_v33, %v1524_v48  ;;  %v1787_v55 = vpack.c.bf16 %v1780_v46, %v1599_v47  ;;  %v5869_v30 = vld [vmem:[#allocation2 + $0x21] sm:$0xff]  ;;  %v4717_v47 = vld [vmem:[%s7343_s4 + $0x10] sm:$0x3] }
 0x2c1   : > { %v1721_v22 = vpack.c.bf16 %v5848_v13, %v1713_v4  ;;  %v1530_v60 = vmul.f32 %v1529_v3, %v1505_v12  ;;  %4679 = vmatmul.msk.bf16.vlgmr.msra.gmra.mxu1 %vm481_vm1, %v1619_v15  ;;  %v1543_v28 = vmul.f32 %v1542_v63, %v5733_v45  ;;  %v1565_v45 = vand.u32 2147483647, %v5824_v43  ;;  %v5871_v53 = vld [vmem:[#allocation2 + $0x31] sm:$0xff]  ;;  %v1715_v52 = vld [vmem:[#allocation2 + $0x22] sm:$0xff] }
 0x2c2   : > { %4683 = vmatmul.msk.bf16.vlgmr.msra.gmra.mxu2 %vm481_vm1, %v1606_v21  ;;  %v4942_v57 = vpop.eup %4941  ;;  %v1578_v31 = vadd.f32 1.0, %v4675_v32  ;;  %4693 = vmatmul.msk.bf16.vlgmr.msrb.gmra.mxu0 %vm481_vm1, %v1787_v55  ;;  %vm1561_vm8 = vweird.f32 %v5824_v43  ;;  %v1568_v19 = vor.u32 1.1754944e-38, %v1567_v18  ;;  %v1601_v39 = vld [vmem:[#allocation2 + $0x30] sm:$0xff]  ;;  %v1782_v40 = vld [vmem:[#allocation2 + $0x40] sm:$0xff]  ;;  %v1620_v14 = vpack.c.bf16 %v5871_v53, %v5869_v30 }
 0x2c3   : > { %4688 = vmatmul.msk.bf16.vlgmr.msra.gmra.mxu3 %vm481_vm1, %v1721_v22  ;;  %v4676_v44 = vclamps-f32 %v1530_v60, 1.0  ;;  %v1557_v34 = vmul.f32 %v4942_v57, %v5824_v43  ;;  %v1544_v54 = vadd.f32 1.1283791, %v1543_v28  ;;  %vm1562_vm7 = vweird.f32 %v4942_v57  ;;  %v5873_v41 = vld [vmem:[#allocation2 + $0x32] sm:$0xff]  ;;  %v1615_v7 = vld [vmem:[#allocation2 + $0x41] sm:$0xff] }
 0x2c4   : > { %v1586_v35 = vmul.f32 %v1578_v31, %v1242_v26  ;;  %vm1563_vm9 = vmor %vm1561_vm8, %vm1562_vm7  ;;  %vm1566_vm10 = vcmp.eq.f32.partialorder %v1565_v45, 8.507059e+37  ;;  %v1607_v62 = vpack.c.bf16 %v1601_v39, %v1780_v46  ;;  %v1788_v49 = vpack.c.bf16 %v1782_v40, %v1601_v39  ;;  %v1616_v8 = vld [vmem:[#allocation2 + $0x51] sm:$0xff]  ;;  %v1717_v36 = vld [vmem:[#allocation2 + $0x42] sm:$0xff] }
 0x2c5   : > { %v1558_v20 = vsub.f32 1.0, %v1557_v34  ;;  %v1579_v38 = vadd.f32 1.0, %v4676_v44  ;;  %v1545_v50 = vmul.f32 %v1544_v54, %v5613_v58  ;;  %v5878_v58 = vpack.c.bf16 %v5873_v41, %v1715_v52  ;;  %v1603_v10 = vld [vmem:[#allocation2 + $0x50] sm:$0xff] }
 0x2c6   : > { %1595 = vst.msk [vmem:[#allocation2 + $0x61] sm:$0xff] %vm481_vm1, %v1586_v35  ;;  %v1244_v43 = vmul.f32 0.5, %v5578_v27  ;;  %v4712_v27 = vld [vmem:[%s7343_s4 + $0xe] sm:$0x3]  ;;  %v1938_v2 = vsel %vm564_vm0, %v4702_v1, 0  ;;  %v2005_v59 = vsel %vm564_vm0, %v4707_v9, 0  ;;  %v1621_v11 = vpack.c.bf16 %v1616_v8, %v1615_v7 }
 0x2c7   : > { %v1559_v51 = vmul.f32 %v4942_v57, %v1558_v20  ;;  %v1587_v61 = vmul.f32 %v1579_v38, %v1243_v37  ;;  %v2071_v17 = vsel %vm564_vm0, %v4712_v27, 0  ;;  %1947 = vmatpush.bf16.msrb.mxu2 %v1938_v2  ;;  %2014 = vmatpush.bf16.msrb.mxu3 %v2005_v59  ;;  %v1718_v0 = vld [vmem:[#allocation2 + $0x52] sm:$0xff]  ;;  %v1608_v12 = vpack.c.bf16 %v1603_v10, %v1782_v40 }
 0x2c8   : > { %2080 = vmatpush.bf16.msra.mxu0 %v2071_v17  ;;  %v5899_v33 = vpack.c.bf16 %v1718_v0, %v1717_v36  ;;  %v2137_v48 = vsel %vm564_vm0, %v4717_v47, 0  ;;  %v1853_v28 = vpack.c.bf16 %v5869_v30, %v5846_v6  ;;  %v1919_v31 = vpack.c.bf16 %v1715_v52, %v5848_v13  ;;  %v1985_v20 = vld [vmem:[#allocation2 + $0x90] sm:$0xff] }
 0x2c9   : > { %v1560_v25 = vadd.f32 %v4942_v57, %v1559_v51  ;;  %1596 = vst.msk [vmem:[#allocation2 + $0x71] sm:$0xff] %vm481_vm1, %v1587_v61  ;;  %2146 = vmatpush.bf16.msra.mxu1 %v2137_v48  ;;  %v1854_v44 = vpack.c.bf16 %v1615_v7, %v5871_v53  ;;  %v1920_v34 = vpack.c.bf16 %v1717_v36, %v5873_v41  ;;  %v2051_v38 = vld [vmem:[#allocation2 + $0x91] sm:$0xff] }
 0x2ca   : > { %v2117_v36 = vld [vmem:[#allocation2 + $0x92] sm:$0xff] }
 0x2cb   : > { %v1564_v29 = vsel %vm1563_vm9, %v4942_v57, %v1560_v25 }
 0x2cc   : > { %v1569_v23 = vsel %vm1566_vm10, %v1568_v19, %v1564_v29 }
 0x2cd   : > { %v1570_v56 = vmul.f32 %v1569_v23, %v1545_v50  ;;  %v1784_v4 = vld [vmem:[#allocation2 + $0x60] sm:$0xff] }
 0x2ce   : > { %v1789_v63 = vpack.c.bf16 %v1784_v4, %v1603_v10  ;;  %v1617_v15 = vld [vmem:[#allocation2 + $0x61] sm:$0xff] }
 0x2cf   : > { %v4677_v42 = vclamps-f32 %v1570_v56, 1.0  ;;  %v1719_v32 = vld [vmem:[#allocation2 + $0x62] sm:$0xff]  ;;  %v1855_v6 = vpack.c.bf16 %v1617_v15, %v1616_v8 }
 0x2d0   : > { %v1618_v21 = vld [vmem:[#allocation2 + $0x71] sm:$0xff]  ;;  %v1921_v13 = vpack.c.bf16 %v1719_v32, %v1718_v0 }
 0x2d1   : > { %v1580_v5 = vadd.f32 1.0, %v4677_v42  ;;  %4680 = vmatmul.msk.bf16.gmra.mxu1 %vm481_vm1, %v1620_v14  ;;  %v1605_v46 = vld [vmem:[#allocation2 + $0x70] sm:$0xff]  ;;  %v1622_v55 = vpack.c.bf16 %v1618_v21, %v1617_v15 }
 0x2d2   : > { %4684 = vmatmul.msk.bf16.gmra.mxu2 %vm481_vm1, %v1607_v62  ;;  %4694 = vmatmul.msk.bf16.gmra.mxu0 %vm481_vm1, %v1788_v49  ;;  %v1720_v3 = vld [vmem:[#allocation2 + $0x72] sm:$0xff]  ;;  %v1609_v60 = vpack.c.bf16 %v1605_v46, %v1784_v4 }
 0x2d3   : > { %4689 = vmatmul.msk.bf16.gmra.mxu3 %vm481_vm1, %v5878_v58  ;;  %v1588_v16 = vmul.f32 %v1580_v5, %v1244_v43  ;;  %v1724_v57 = vpack.c.bf16 %v1720_v3, %v1719_v32 }
 0x2d5   : > { %1597 = vst.msk [vmem:[#allocation2 + $0x81] sm:$0xff] %vm481_vm1, %v1588_v16 }
 0x2dc   : > { %v1786_v22 = vld [vmem:[#allocation2 + $0x80] sm:$0xff] }
 0x2dd   : > { %v1790_v26 = vpack.c.bf16 %v1786_v22, %v1605_v46  ;;  %v1852_v35 = vld [vmem:[#allocation2 + $0x81] sm:$0xff]  ;;  %v1989_v51 = vpack.c.bf16 %v1985_v20, %v1786_v22 }
 0x2de   : > { %v1918_v37 = vld [vmem:[#allocation2 + $0x82] sm:$0xff]  ;;  %v1856_v54 = vpack.c.bf16 %v1852_v35, %v1618_v21  ;;  %v2055_v45 = vpack.c.bf16 %v2051_v38, %v1852_v35 }
 0x2df   : > { %v1922_v18 = vpack.c.bf16 %v1918_v37, %v1720_v3  ;;  %v2121_v4 = vpack.c.bf16 %v2117_v36, %v1918_v37 }
 0x2e1   : > { %4681 = vmatmul.msk.bf16.gmra.mxu1 %vm481_vm1, %v1621_v11 }
 0x2e2   : > { %4685 = vmatmul.msk.bf16.gmra.mxu2 %vm481_vm1, %v1608_v12  ;;  %4695 = vmatmul.msk.bf16.gmra.mxu0 %vm481_vm1, %v1789_v63 }
 0x2e3   : > { %4690 = vmatmul.msk.bf16.gmra.mxu3 %vm481_vm1, %v5899_v33 }
 0x2f1   : > { %4682 = vmatmul.msk.bf16.gmra.mxu1 %vm481_vm1, %v1622_v55 }
 0x2f2   : > { %4686 = vmatmul.msk.bf16.gmra.mxu2 %vm481_vm1, %v1609_v60  ;;  %4696 = vmatmul.msk.bf16.gmra.mxu0 %vm481_vm1, %v1790_v26 }
 0x2f3   : > { %4691 = vmatmul.msk.bf16.gmra.mxu3 %vm481_vm1, %v1724_v57 }
 0x301   : > { %4698 = vmatmul.msk.bf16.vlgmr.msrb.gmra.mxu1 %vm481_vm1, %v1853_v28 }
 0x302   : > { %4703 = vmatmul.msk.bf16.vlgmr.msrb.gmra.mxu2 %vm481_vm1, %v1919_v31  ;;  %4713 = vmatmul.msk.bf16.vlgmr.msra.gmra.mxu0 %vm481_vm1, %v1620_v14 }
 0x303   : > { %4708 = vmatmul.msk.bf16.vlgmr.msrb.gmra.mxu3 %vm481_vm1, %v1607_v62 }
 0x311   : > { %4699 = vmatmul.msk.bf16.gmra.mxu1 %vm481_vm1, %v1854_v44 }
 0x312   : > { %4704 = vmatmul.msk.bf16.gmra.mxu2 %vm481_vm1, %v1920_v34  ;;  %4714 = vmatmul.msk.bf16.gmra.mxu0 %vm481_vm1, %v1621_v11 }
 0x313   : > { %4709 = vmatmul.msk.bf16.gmra.mxu3 %vm481_vm1, %v1608_v12 }
 0x321   : > { %4700 = vmatmul.msk.bf16.gmra.mxu1 %vm481_vm1, %v1855_v6 }
 0x322   : > { %4705 = vmatmul.msk.bf16.gmra.mxu2 %vm481_vm1, %v1921_v13  ;;  %4715 = vmatmul.msk.bf16.gmra.mxu0 %vm481_vm1, %v1622_v55 }
 0x323   : > { %4710 = vmatmul.msk.bf16.gmra.mxu3 %vm481_vm1, %v1609_v60 }
 0x331   : > { %4701 = vmatmul.msk.bf16.gmra.mxu1 %vm481_vm1, %v1856_v54 }
 0x332   : > { %4706 = vmatmul.msk.bf16.gmra.mxu2 %vm481_vm1, %v1922_v18  ;;  %4716 = vmatmul.msk.bf16.gmra.mxu0 %vm481_vm1, %v2055_v45 }
 0x333   : > { %4711 = vmatmul.msk.bf16.gmra.mxu3 %vm481_vm1, %v1989_v51 }
 0x33e   : > { %v1649_v61 = vpop.f32.mrf.mxu1 }
 0x33f   : > { %v1817_v25 = vpop.f32.mrf.mxu0 }
 0x341   : > { %4718 = vmatmul.msk.bf16.vlgmr.msra.gmra.mxu1 %vm481_vm1, %v5878_v58 }
 0x345   : > { %v1693_v19 = vpop.f32.mrf.mxu2 }
 0x346   : > { %v1694_v50 = vadd.f32 %v1693_v19, %v1649_v61  ;;  %v1751_v29 = vpop.f32.mrf.mxu3  ;;  %v5937_v23 = vpop.f32.mrf.mxu1 }
 0x347   : > { %v5939_v39 = vpop.f32.mrf.mxu0 }
 0x348   : > { %v1771_v30 = vadd.f32 %v1751_v29, %v1694_v50 }
 0x34a   : > { %v1837_v53 = vadd.f32 %v1817_v25, %v1771_v30 }
 0x34d   : > { %v5941_v56 = vpop.f32.mrf.mxu2 }
 0x34e   : > { %v5943_v52 = vpop.f32.mrf.mxu3  ;;  %v1654_v41 = vpop.f32.mrf.mxu1 }
 0x34f   : > { %v1822_v40 = vpop.f32.mrf.mxu0 }
 0x351   : > { %4719 = vmatmul.msk.bf16.gmra.mxu1 %vm481_vm1, %v5899_v33 }
 0x355   : > { %v1698_v42 = vpop.f32.mrf.mxu2 }
 0x356   : > { %v1699_v14 = vadd.f32 %v1698_v42, %v1654_v41  ;;  %v1756_v62 = vpop.f32.mrf.mxu3  ;;  %v1656_v58 = vpop.f32.mrf.mxu1  ;;  %v1696_v41 = vadd.f32 %v5941_v56, %v5937_v23 }
 0x357   : > { %v5947_v9 = vpop.f32.mrf.mxu0 }
 0x358   : > { %v1773_v49 = vadd.f32 %v1756_v62, %v1699_v14  ;;  %v1772_v42 = vadd.f32 %v5943_v52, %v1696_v41 }
 0x35a   : > { %v1839_v43 = vadd.f32 %v1822_v40, %v1773_v49 }
 0x35d   : > { %v1700_v5 = vpop.f32.mrf.mxu2 }
 0x35e   : > { %v1758_v1 = vpop.f32.mrf.mxu3  ;;  %v1659_v27 = vpop.f32.mrf.mxu1  ;;  %v1701_v14 = vadd.f32 %v1700_v5, %v1656_v58 }
 0x35f   : > { %v1827_v8 = vpop.f32.mrf.mxu0 }
 0x361   : > { %4720 = vmatmul.msk.bf16.gmra.mxu1 %vm481_vm1, %v1724_v57 }
 0x365   : > { %v1703_v16 = vpop.f32.mrf.mxu2 }
 0x366   : > { %v1704_v2 = vadd.f32 %v1703_v16, %v1659_v27  ;;  %v1761_v59 = vpop.f32.mrf.mxu3  ;;  %v1661_v17 = vpop.f32.mrf.mxu1  ;;  %v1774_v27 = vadd.f32 %v1758_v1, %v1701_v14 }
 0x367   : > { %v1829_v21 = vpop.f32.mrf.mxu0 }
 0x368   : > { %v1775_v7 = vadd.f32 %v1761_v59, %v1704_v2  ;;  %v1838_v2 = vadd.f32 %v5939_v39, %v1772_v42 }
 0x36a   : > { %v1841_v10 = vadd.f32 %v1827_v8, %v1775_v7 }
 0x36d   : > { %v1705_v63 = vpop.f32.mrf.mxu2 }
 0x36e   : > { %v1664_v0 = vpop.f32.mrf.mxu1  ;;  %v1763_v48 = vpop.f32.mrf.mxu3  ;;  %v1706_v16 = vadd.f32 %v1705_v63, %v1661_v17 }
 0x36f   : > { %v1832_v55 = vpop.f32.mrf.mxu0 }
 0x371   : > { %4721 = vmatmul.msk.bf16.gmra.mxu1 %vm481_vm1, %v2121_v4  ;;  %v1840_v4 = vadd.f32 %v5947_v9, %v1774_v27 }
 0x375   : > { %v1708_v46 = vpop.f32.mrf.mxu2 }
 0x376   : > { %v1666_v11 = vpop.f32.mrf.mxu1  ;;  %v1766_v3 = vpop.f32.mrf.mxu3  ;;  %v1709_v59 = vadd.f32 %v1708_v46, %v1664_v0 }
 0x377   : > { %v5951_v31 = vpop.f32.mrf.mxu0 }
 0x378   : > { %v1777_v56 = vadd.f32 %v1766_v3, %v1709_v59 }
 0x37a   : > { %v1843_v46 = vadd.f32 %v1832_v55, %v1777_v56 }
 0x37d   : > { %v1710_v60 = vpop.f32.mrf.mxu2 }
 0x37e   : > { %v1883_v12 = vpop.f32.mrf.mxu1  ;;  %v1768_v26 = vpop.f32.mrf.mxu3 }
 0x37f   : > { %v1903_v33 = vadd.f32 %v1883_v12, %v1837_v53  ;;  %v2082_v13 = vpop.f32.mrf.mxu0 }
 0x385   : > { %v1949_v44 = vpop.f32.mrf.mxu2 }
 0x386   : > { %v1885_v47 = vpop.f32.mrf.mxu1  ;;  %v2016_v6 = vpop.f32.mrf.mxu3  ;;  %v1969_v12 = vadd.f32 %v1949_v44, %v1903_v33 }
 0x387   : > { %v2084_v54 = vpop.f32.mrf.mxu0  ;;  %v1904_v7 = vadd.f32 %v1885_v47, %v1838_v2 }
 0x388   : > { %v2036_v63 = vadd.f32 %v2016_v6, %v1969_v12 }
 0x38a   : > { %v2102_v3 = vadd.f32 %v2082_v13, %v2036_v63 }
 0x38d   : > { %v1951_v35 = vpop.f32.mrf.mxu2 }
 0x38e   : > { %v1888_v15 = vpop.f32.mrf.mxu1  ;;  %v2018_v20 = vpop.f32.mrf.mxu3  ;;  %v1970_v36 = vadd.f32 %v1951_v35, %v1904_v7 }
 0x38f   : > { %v1905_v32 = vadd.f32 %v1888_v15, %v1839_v43  ;;  %v2087_v61 = vpop.f32.mrf.mxu0 }
 0x390   : > { %v2037_v41 = vadd.f32 %v2018_v20, %v1970_v36 }
 0x392   : > { %v2103_v44 = vadd.f32 %v2084_v54, %v2037_v41 }
 0x395   : > { %v1954_v18 = vpop.f32.mrf.mxu2 }
 0x396   : > { %v1890_v22 = vpop.f32.mrf.mxu1  ;;  %v2021_v51 = vpop.f32.mrf.mxu3  ;;  %v1971_v15 = vadd.f32 %v1954_v18, %v1905_v32 }
 0x397   : > { %v2089_v29 = vpop.f32.mrf.mxu0  ;;  %v1906_v52 = vadd.f32 %v1890_v22, %v1840_v4 }
 0x398   : > { %v2038_v39 = vadd.f32 %v2021_v51, %v1971_v15 }
 0x39d   : > { %v1956_v25 = vpop.f32.mrf.mxu2 }
 0x39e   : > { %v1893_v57 = vpop.f32.mrf.mxu1  ;;  %v2023_v50 = vpop.f32.mrf.mxu3  ;;  %v1972_v1 = vadd.f32 %v1956_v25, %v1906_v52 }
 0x39f   : > { %v1907_v28 = vadd.f32 %v1893_v57, %v1841_v10  ;;  %v2092_v62 = vpop.f32.mrf.mxu0  ;;  %v1776_v10 = vadd.f32 %v1763_v48, %v1706_v16  ;;  %v1711_v57 = vadd.f32 %v1710_v60, %v1666_v11  ;;  %v2104_v11 = vadd.f32 %v2087_v61, %v2038_v39 }
 0x3a0   : > { %v2039_v35 = vadd.f32 %v2023_v50, %v1972_v1 }
 0x3a1   : > { %v1842_v17 = vadd.f32 %v1829_v21, %v1776_v10  ;;  %v1778_v48 = vadd.f32 %v1768_v26, %v1711_v57 }
 0x3a2   : > { %v2105_v26 = vadd.f32 %v2089_v29, %v2039_v35 }
 0x3a3   : > { %v1844_v21 = vadd.f32 %v5951_v31, %v1778_v48 }
 0x3a5   : > { %v1959_v30 = vpop.f32.mrf.mxu2 }
 0x3a6   : > { %v1895_v34 = vpop.f32.mrf.mxu1  ;;  %v2026_v40 = vpop.f32.mrf.mxu3  ;;  %v1973_v0 = vadd.f32 %v1959_v30, %v1907_v28 }
 0x3a7   : > { %v2094_v58 = vpop.f32.mrf.mxu0  ;;  %v1908_v47 = vadd.f32 %v1895_v34, %v1842_v17 }
 0x3a8   : > { %v2040_v22 = vadd.f32 %v2026_v40, %v1973_v0 }
 0x3aa   : > { %v2106_v51 = vadd.f32 %v2092_v62, %v2040_v22 }
 0x3ad   : > { %v1961_v49 = vpop.f32.mrf.mxu2 }
 0x3ae   : > { %v1898_v37 = vpop.f32.mrf.mxu1  ;;  %v2028_v8 = vpop.f32.mrf.mxu3  ;;  %v1974_v42 = vadd.f32 %v1961_v49, %v1908_v47 }
 0x3af   : > { %v1909_v9 = vadd.f32 %v1898_v37, %v1843_v46  ;;  %v2097_v6 = vpop.f32.mrf.mxu0 }
 0x3b0   : > { %v2041_v60 = vadd.f32 %v2028_v8, %v1974_v42 }
 0x3b5   : > { %v1964_v5 = vpop.f32.mrf.mxu2 }
 0x3b6   : > { %v5953_v38 = vpop.f32.mrf.mxu1  ;;  %v2031_v33 = vpop.f32.mrf.mxu3  ;;  %v1975_v18 = vadd.f32 %v1964_v5, %v1909_v9 }
 0x3b7   : > { %v1910_v37 = vadd.f32 %v5953_v38, %v1844_v21  ;;  %v2099_v8 = vpop.f32.mrf.mxu0 }
 0x3b8   : > { %v2042_v20 = vadd.f32 %v2031_v33, %v1975_v18 }
 0x3ba   : > { %v2108_v62 = vadd.f32 %v2097_v6, %v2042_v20 }
 0x3bd   : > { %v1966_v28 = vpop.f32.mrf.mxu2 }
 0x3be   : > { %v2148_v45 = vpop.f32.mrf.mxu1  ;;  %v1976_v61 = vadd.f32 %v1966_v28, %v1910_v37  ;;  %v2033_v38 = vpop.f32.mrf.mxu3 }
 0x3bf   : > { %v5963_v34 = vadd.f32 %v2148_v45, %v2102_v3 }
 0x3c0   : > { %v2043_v49 = vadd.f32 %v2033_v38, %v1976_v61 }
 0x3c1   : > { %v2178_v31 = vsel %vm481_vm1, %v5963_v34, 0.0  ;;  %v2202_v27 = vmul.f32 %v5963_v34, %v5963_v34 }
 0x3c2   : > { %v2109_v12 = vadd.f32 %v2099_v8, %v2043_v49 }
 0x3c3   : > { %v2210_v56 = vsel %vm481_vm1, %v2202_v27, 0.0 }
 0x3c6   : > { %v2150_v19 = vpop.f32.mrf.mxu1 }
 0x3c7   : > { %v5960_v14 = vadd.f32 %v2150_v19, %v2103_v44  ;;  %v2107_v19 = vadd.f32 %v2094_v58, %v2041_v60 }
 0x3c9   : > { %v2179_v13 = vsel %vm481_vm1, %v5960_v14, 0.0  ;;  %v2203_v30 = vmul.f32 %v5960_v14, %v5960_v14 }
 0x3ca   : > { %v2180_v50 = vadd.f32 %v2179_v13, %v2178_v31 }
 0x3cb   : > { %v2211_v10 = vsel %vm481_vm1, %v2203_v30, 0.0 }
 0x3cc   : > { %v2212_v5 = vadd.f32 %v2211_v10, %v2210_v56 }
 0x3ce   : > { %v2153_v53 = vpop.f32.mrf.mxu1 }
 0x3cf   : > { %v5965_v55 = vadd.f32 %v2153_v53, %v2104_v11 }
 0x3d1   : > { %v2181_v45 = vsel %vm481_vm1, %v5965_v55, 0.0  ;;  %v2204_v16 = vmul.f32 %v5965_v55, %v5965_v55 }
 0x3d3   : > { %v2213_v15 = vsel %vm481_vm1, %v2204_v16, 0.0 }
 0x3d4   : > { %v2214_v39 = vadd.f32 %v2213_v15, %v2212_v5  ;;  %v4723_v5 = vld [vmem:[%s5204_s20 + $0x21] sm:$0xff] }
 0x3d6   : > { %v2155_v43 = vpop.f32.mrf.mxu1 }
 0x3d7   : > { %v5970_v54 = vadd.f32 %v2155_v43, %v2105_v26  ;;  %v2182_v43 = vadd.f32 %v2181_v45, %v2180_v50 }
 0x3d9   : > { %v2183_v53 = vsel %vm481_vm1, %v5970_v54, 0.0  ;;  %v2205_v36 = vmul.f32 %v5970_v54, %v5970_v54 }
 0x3da   : > { %v2184_v7 = vadd.f32 %v2183_v53, %v2182_v43 }
 0x3db   : > { %v2215_v1 = vsel %vm481_vm1, %v2205_v36, 0.0  ;;  %v6034_v36 = vld [vmem:[%s7344_s5] ss:$0 sm:$0xff] }
 0x3dc   : > { %v2216_v35 = vadd.f32 %v2215_v1, %v2214_v39 }
 0x3de   : > { %v2158_v23 = vpop.f32.mrf.mxu1 }
 0x3df   : > { %v5976_v25 = vadd.f32 %v2158_v23, %v2106_v51 }
 0x3e1   : > { %v2185_v2 = vsel %vm481_vm1, %v5976_v25, 0.0  ;;  %v2206_v52 = vmul.f32 %v5976_v25, %v5976_v25 }
 0x3e2   : > { %v2186_v23 = vadd.f32 %v2185_v2, %v2184_v7 }
 0x3e3   : > { %v2217_v47 = vsel %vm481_vm1, %v2206_v52, 0.0 }
 0x3e4   : > { %v2218_v44 = vadd.f32 %v2217_v47, %v2216_v35 }
 0x3e6   : > { %v2160_v32 = vpop.f32.mrf.mxu1 }
 0x3e7   : > { %v5982_v40 = vadd.f32 %v2160_v32, %v2107_v19 }
 0x3e9   : > { %v2187_v4 = vsel %vm481_vm1, %v5982_v40, 0.0  ;;  %v2207_v17 = vmul.f32 %v5982_v40, %v5982_v40 }
 0x3ea   : > { %v2188_v41 = vadd.f32 %v2187_v4, %v2186_v23 }
 0x3eb   : > { %v2219_v33 = vsel %vm481_vm1, %v2207_v17, 0.0 }
 0x3ec   : > { %v2220_v32 = vadd.f32 %v2219_v33, %v2218_v44 }
 0x3ee   : > { %v2163_v29 = vpop.f32.mrf.mxu1 }
 0x3ef   : > { %v5990_v59 = vadd.f32 %v2163_v29, %v2108_v62 }
 0x3f1   : > { %v2189_v58 = vsel %vm481_vm1, %v5990_v59, 0.0  ;;  %v2208_v46 = vmul.f32 %v5990_v59, %v5990_v59 }
 0x3f2   : > { %v2190_v0 = vadd.f32 %v2189_v58, %v2188_v41  ;;  %v4722_v58 = vld [vmem:[%s5204_s20 + $0x11] sm:$0xff] }
 0x3f3   : > { %v2221_v3 = vsel %vm481_vm1, %v2208_v46, 0.0 }
 0x3f4   : > { %v2222_v18 = vadd.f32 %v2221_v3, %v2220_v32 }
 0x3f6   : > { %v2165_v57 = vpop.f32.mrf.mxu1 }
 0x3f7   : > { %v6006_v63 = vadd.f32 %v2165_v57, %v2109_v12  ;;  %v4724_v57 = vld [vmem:[%s5204_s20 + $0x31] sm:$0xff] }
 0x3f9   : > { %v2191_v48 = vsel %vm481_vm1, %v6006_v63, 0.0  ;;  %v2209_v9 = vmul.f32 %v6006_v63, %v6006_v63 }
 0x3fa   : > { %v2192_v42 = vadd.f32 %v2191_v48, %v2190_v0  ;;  %v4725_v0 = vld [vmem:[%s5204_s20 + $0x41] sm:$0xff] }
 0x3fb   : > { %v2223_v22 = vsel %vm481_vm1, %v2209_v9, 0.0 }
 0x3fc   : > { %2193 = vadd.xlane.f32.xlu1 %v2192_v42  ;;  %v2224_v11 = vadd.f32 %v2223_v22, %v2222_v18 }
 0x404   : > { %2225 = vadd.xlane.f32.xlu1 %v2224_v11 }
 0x46f   : > { %v2194_v21 = vpop.xlane.xlu1 %2193 }
 0x470   : > { %v2195_v60 = vrot.slane %v2194_v21, 4 }
 0x472   : > { %v2196_v6 = vadd.f32 %v2195_v60, %v2194_v21 }
 0x474   : > { %v2197_v28 = vrot.slane %v2196_v6, 2 }
 0x476   : > { %v2198_v26 = vadd.f32 %v2197_v28, %v2196_v6 }
 0x477   : > { %v2226_v37 = vpop.xlane.xlu1 %2225 }
 0x478   : > { %v2227_v20 = vrot.slane %v2226_v37, 4  ;;  %v2199_v13 = vrot.slane %v2198_v26, 1 }
 0x47a   : > { %v2228_v51 = vadd.f32 %v2227_v20, %v2226_v37  ;;  %v2200_v61 = vadd.f32 %v2199_v13, %v2198_v26 }
 0x47c   : > { %v2229_v31 = vrot.slane %v2228_v51, 2  ;;  %4849 = vpush %v2200_v61 }
 0x47e   : > { %v2230_v45 = vadd.f32 %v2229_v31, %v2228_v51 }
 0x480   : > { %v2231_v19 = vrot.slane %v2230_v45, 1 }
 0x482   : > { %v2232_v50 = vadd.f32 %v2231_v19, %v2230_v45 }
 0x484   : > { %4851 = vpush %v2232_v50 }
 0x4ad   : > { %s4850_s28 = spop %4849 }
 0x4ae   : > { %s2242_s0 = smul.f32 %s4850_s28, %s5383_s22 }
 0x4b0   : > { %s2252_s1 = smul.f32 %s2242_s0, %s2242_s0  ;;  %v6021_v16 = vstv %s2242_s0 }
 0x4b1   : > { %v2256_v2 = vsub.f32 %v5963_v34, %v6021_v16  ;;  %v2257_v7 = vsub.f32 %v5960_v14, %v6021_v16  ;;  %v2258_v8 = vsub.f32 %v5965_v55, %v6021_v16  ;;  %v2259_v10 = vsub.f32 %v5970_v54, %v6021_v16  ;;  %v6045_v54 = vld [vmem:[%s7345_s6] ss:$0 sm:$0xff] }
 0x4b2   : > { %v2260_v42 = vsub.f32 %v5976_v25, %v6021_v16  ;;  %v2261_v22 = vsub.f32 %v5982_v40, %v6021_v16  ;;  %v2262_v40 = vsub.f32 %v5990_v59, %v6021_v16  ;;  %v2263_v13 = vsub.f32 %v6006_v63, %v6021_v16 }
 0x4b5   : > { %s4852_s21 = spop %4851 }
 0x4b6   : > { %s2251_s18 = smul.f32 %s4852_s21, %s5383_s22 }
 0x4b8   : > { %s2253_s26 = ssub.f32 %s2251_s18, %s2252_s1 }
 0x4ba   : > { %s2254_s2 = smax.f32 %s5049_s27, %s2253_s26 }
 0x4bb   : > { %s2264_s3 = sadd.f32 1e-05, %s2254_s2 }
 0x4bd   : > { %v2265_v29 = vstv %s2264_s3 }
 0x4be   : > { %4943 = vrsqrt.f32 %v2265_v29  ;;  %vm2272_vm12 = vweird.f32 %v2265_v29 }
 0x4c4   : > { %v4944_v38 = vpop.eup %4943 }
 0x4c5   : > { %v2267_v30 = vmul.f32 %v4944_v38, %v2265_v29  ;;  %vm2273_vm11 = vweird.f32 %v4944_v38 }
 0x4c6   : > { %vm2274_vm13 = vmor %vm2272_vm12, %vm2273_vm11 }
 0x4c7   : > { %v2268_v53 = vmul.f32 %v4944_v38, %v2267_v30 }
 0x4c9   : > { %v2269_v62 = vmul.f32 0.5, %v2268_v53 }
 0x4cb   : > { %v2270_v49 = vsub.f32 1.5, %v2269_v62 }
 0x4cd   : > { %v2271_v43 = vmul.f32 %v4944_v38, %v2270_v49 }
 0x4cf   : > { %v2275_v27 = vsel %vm2274_vm13, %v4944_v38, %v2271_v43 }
 0x4d0   : > { %4853 = vpush %v2275_v27 }
 0x501   : > { %s4854_s2 = spop %4853 }
 0x502   : > { %v6036_v4 = vstv %s4854_s2 }
 0x503   : > { %v2278_v34 = vmul.f32 %v6036_v4, %v2256_v2  ;;  %v2279_v14 = vmul.f32 %v6036_v4, %v2257_v7  ;;  %v2280_v12 = vmul.f32 %v6036_v4, %v2258_v8  ;;  %v2281_v55 = vmul.f32 %v6036_v4, %v2259_v10  ;;  %v4726_v8 = vld [vmem:[%s5204_s20 + $0x51] sm:$0xff]  ;;  %v4727_v10 = vld [vmem:[%s5204_s20 + $0x61] sm:$0xff] }
 0x504   : > { %v2282_v3 = vmul.f32 %v6036_v4, %v2260_v42  ;;  %v2283_v60 = vmul.f32 %v6036_v4, %v2261_v22  ;;  %v2284_v45 = vmul.f32 %v6036_v4, %v2262_v40 }
 0x505   : > { %v2289_v23 = vmul.f32 %v6034_v36, %v2278_v34  ;;  %v2290_v56 = vmul.f32 %v6034_v36, %v2279_v14  ;;  %v2291_v15 = vmul.f32 %v6034_v36, %v2280_v12  ;;  %v2292_v52 = vmul.f32 %v6034_v36, %v2281_v55 }
 0x506   : > { %v2293_v26 = vmul.f32 %v6034_v36, %v2282_v3  ;;  %v2294_v29 = vmul.f32 %v6034_v36, %v2283_v60 }
 0x507   : > { %v2300_v41 = vadd.f32 %v6045_v54, %v2289_v23  ;;  %v2301_v1 = vadd.f32 %v6045_v54, %v2290_v56  ;;  %v2302_v17 = vadd.f32 %v6045_v54, %v2291_v15  ;;  %v2303_v39 = vadd.f32 %v6045_v54, %v2292_v52 }
 0x508   : > { %v2304_v53 = vadd.f32 %v6045_v54, %v2293_v26  ;;  %v2305_v23 = vadd.f32 %v6045_v54, %v2294_v29 }
 0x509   : > { %v6059_v47 = vadd.f32 %v4722_v58, %v2300_v41  ;;  %v6061_v46 = vadd.f32 %v4723_v5, %v2301_v1  ;;  %v6063_v48 = vadd.f32 %v4724_v57, %v2302_v17  ;;  %v6065_v35 = vadd.f32 %v4725_v0, %v2303_v39 }
 0x50a   : > { %v2285_v58 = vmul.f32 %v6036_v4, %v2263_v13  ;;  %v2320_v42 = vadd.f32 %v4726_v8, %v2304_v53 }
 0x50b   : > { %v6070_v9 = vmul.f32 0.70710677, %v6059_v47  ;;  %v6073_v33 = vmul.f32 0.70710677, %v6061_v46  ;;  %v6076_v44 = vmul.f32 0.70710677, %v6063_v48 }
 0x50c   : > { %v6080_v32 = vmul.f32 0.70710677, %v6065_v35 }
 0x50d   : > { %v2340_v25 = vmul.f32 %v6070_v9, %v6070_v9  ;;  %v2380_v18 = vmul.f32 %v6073_v33, %v6073_v33  ;;  %v2420_v11 = vmul.f32 %v6076_v44, %v6076_v44 }
 0x50e   : > { %v2460_v21 = vmul.f32 %v6080_v32, %v6080_v32 }
 0x50f   : > { %v6093_v6 = vmin.f32 %v2340_v25, 16.0  ;;  %v6095_v28 = vmin.f32 %v2380_v18, 16.0  ;;  %v6100_v37 = vmin.f32 %v2420_v11, 16.0  ;;  %v6132_v18 = vadd.f32 %v4727_v10, %v2305_v23 }
 0x510   : > { %v6102_v20 = vmin.f32 %v2460_v21, 16.0 }
 0x511   : > { %v2342_v51 = vmul.f32 2.1237322e-06, %v6093_v6  ;;  %v2353_v61 = vmul.f32 3.8918573e-05, %v6093_v6  ;;  %v2382_v31 = vmul.f32 2.1237322e-06, %v6095_v28 }
 0x512   : > { %v2393_v59 = vmul.f32 3.8918573e-05, %v6095_v28  ;;  %v2422_v19 = vmul.f32 2.1237322e-06, %v6100_v37  ;;  %v2433_v50 = vmul.f32 3.8918573e-05, %v6100_v37 }
 0x513   : > { %v2343_v38 = vadd.f32 0.00028619796, %v2342_v51  ;;  %v2354_v63 = vadd.f32 0.001143296, %v2353_v61  ;;  %v2383_v30 = vadd.f32 0.00028619796, %v2382_v31  ;;  %v2295_v51 = vmul.f32 %v6034_v36, %v2284_v45 }
 0x514   : > { %v2394_v62 = vadd.f32 0.001143296, %v2393_v59  ;;  %v2423_v49 = vadd.f32 0.00028619796, %v2422_v19  ;;  %v2434_v43 = vadd.f32 0.001143296, %v2433_v50 }
 0x515   : > { %v2344_v27 = vmul.f32 %v2343_v38, %v6093_v6  ;;  %v2355_v16 = vmul.f32 %v2354_v63, %v6093_v6  ;;  %v2384_v2 = vmul.f32 %v2383_v30, %v6095_v28  ;;  %v2462_v7 = vmul.f32 2.1237322e-06, %v6102_v20 }
 0x516   : > { %v2395_v34 = vmul.f32 %v2394_v62, %v6095_v28  ;;  %v2424_v14 = vmul.f32 %v2423_v49, %v6100_v37  ;;  %v2435_v12 = vmul.f32 %v2434_v43, %v6100_v37  ;;  %v2473_v55 = vmul.f32 3.8918573e-05, %v6102_v20 }
 0x517   : > { %v2345_v56 = vadd.f32 0.0036580483, %v2344_v27  ;;  %v2356_v15 = vadd.f32 0.014752088, %v2355_v16  ;;  %v2385_v52 = vadd.f32 0.0036580483, %v2384_v2  ;;  %v2296_v63 = vmul.f32 %v6034_v36, %v2285_v58 }
 0x518   : > { %v2396_v5 = vadd.f32 0.014752088, %v2395_v34  ;;  %v2425_v57 = vadd.f32 0.0036580483, %v2424_v14  ;;  %v2436_v41 = vadd.f32 0.014752088, %v2435_v12  ;;  %v2306_v14 = vadd.f32 %v6045_v54, %v2295_v51 }
 0x519   : > { %v2346_v1 = vmul.f32 %v2345_v56, %v6093_v6  ;;  %v2357_v17 = vmul.f32 %v2356_v15, %v6093_v6  ;;  %v2386_v39 = vmul.f32 %v2385_v52, %v6095_v28  ;;  %v2463_v0 = vadd.f32 0.00028619796, %v2462_v7  ;;  %v4728_v15 = vld [vmem:[%s5204_s20 + $0x71] sm:$0xff] }
 0x51a   : > { %v2397_v3 = vmul.f32 %v2396_v5, %v6095_v28  ;;  %v2437_v22 = vmul.f32 %v2436_v41, %v6100_v37  ;;  %v2474_v25 = vadd.f32 0.001143296, %v2473_v55  ;;  %v2426_v4 = vmul.f32 %v2425_v57, %v6100_v37  ;;  %v4729_v57 = vld [vmem:[%s5204_s20 + $0x81] sm:$0xff] }
 0x51b   : > { %v2358_v11 = vadd.f32 0.112945676, %v2357_v17  ;;  %v2464_v21 = vmul.f32 %v2463_v0, %v6102_v20  ;;  %v2347_v60 = vadd.f32 0.05243302, %v2346_v1  ;;  %v2387_v31 = vadd.f32 0.05243302, %v2386_v39 }
 0x51c   : > { %v2398_v40 = vadd.f32 0.112945676, %v2397_v3  ;;  %v2438_v26 = vadd.f32 0.112945676, %v2437_v22  ;;  %v2475_v13 = vmul.f32 %v2474_v25, %v6102_v20  ;;  %v6139_v19 = vmul.f32 0.70710677, %v2320_v42 }
 0x51d   : > { %v2359_v61 = vmul.f32 %v2358_v11, %v6093_v6  ;;  %v2465_v59 = vadd.f32 0.0036580483, %v2464_v21  ;;  %v6145_v30 = vmul.f32 0.70710677, %v6132_v18  ;;  %v2427_v62 = vadd.f32 0.05243302, %v2426_v4 }
 0x51e   : > { %v2399_v50 = vmul.f32 %v2398_v40, %v6095_v28  ;;  %v2439_v29 = vmul.f32 %v2438_v26, %v6100_v37  ;;  %v2476_v38 = vadd.f32 0.014752088, %v2475_v13  ;;  %v2348_v45 = vmul.f32 %v2347_v60, %v6093_v6 }
 0x51f   : > { %v2360_v53 = vadd.f32 0.4994258, %v2359_v61  ;;  %v2388_v2 = vmul.f32 %v2387_v31, %v6095_v28  ;;  %v2466_v7 = vmul.f32 %v2465_v59, %v6102_v20  ;;  %v2500_v34 = vmul.f32 %v6139_v19, %v6139_v19 }
 0x520   : > { %v2400_v49 = vadd.f32 0.4994258, %v2399_v50  ;;  %v2440_v43 = vadd.f32 0.4994258, %v2439_v29  ;;  %v2477_v27 = vmul.f32 %v2476_v38, %v6102_v20  ;;  %v2428_v55 = vmul.f32 %v2427_v62, %v6100_v37 }
 0x521   : > { %v2361_v16 = vmul.f32 %v2360_v53, %v6093_v6  ;;  %v2540_v23 = vmul.f32 %v6145_v30, %v6145_v30  ;;  %v2307_v56 = vadd.f32 %v6045_v54, %v2296_v63  ;;  %v2349_v52 = vadd.f32 0.18741608, %v2348_v45 }
 0x522   : > { %v2401_v36 = vmul.f32 %v2400_v49, %v6095_v28  ;;  %v2441_v8 = vmul.f32 %v2440_v43, %v6100_v37  ;;  %v2478_v10 = vadd.f32 0.112945676, %v2477_v27  ;;  %v2389_v41 = vadd.f32 0.18741608, %v2388_v2 }
 0x523   : > { %v6157_v12 = vadd.f32 1.0, %v2361_v16  ;;  %v2467_v1 = vadd.f32 0.05243302, %v2466_v7  ;;  %v6172_v39 = vmin.f32 %v2500_v34, 16.0  ;;  %v6174_v0 = vadd.f32 %v4728_v15, %v2306_v14 }
 0x524   : > { %v6164_v58 = vadd.f32 1.0, %v2401_v36  ;;  %v6166_v5 = vadd.f32 1.0, %v2441_v8  ;;  %v2479_v17 = vmul.f32 %v2478_v10, %v6102_v20  ;;  %v2429_v54 = vadd.f32 0.18741608, %v2428_v55 }
 0x525   : > { %4945 = vrcp.f32 %v6157_v12  ;;  %v6176_v3 = vmin.f32 %v2540_v23, 16.0  ;;  %v6178_v22 = vadd.f32 %v4729_v57, %v2307_v56  ;;  %v6181_v25 = vmul.f32 0.5, %v6059_v47 }
 0x526   : > { %4947 = vrcp.f32 %v6164_v58  ;;  %v2350_v11 = vmul.f32 %v2349_v52, %v6093_v6  ;;  %v6186_v4 = vmul.f32 0.5, %v6061_v46  ;;  %v6189_v21 = vmul.f32 0.5, %v6063_v48 }
 0x527   : > { %4949 = vrcp.f32 %v6166_v5  ;;  %v2390_v60 = vmul.f32 %v2389_v41, %v6095_v28  ;;  %v2468_v40 = vmul.f32 %v2467_v1, %v6102_v20  ;;  %v6194_v26 = vmul.f32 0.5, %v6065_v35 }
 0x528   : > { %v6196_v13 = vmul.f32 0.5, %v2320_v42  ;;  %v2480_v47 = vadd.f32 0.4994258, %v2479_v17  ;;  %v2502_v6 = vmul.f32 2.1237322e-06, %v6172_v39  ;;  %v2430_v48 = vmul.f32 %v2429_v54, %v6100_v37 }
 0x529   : > { %v6202_v46 = vmul.f32 0.70710677, %v6174_v0  ;;  %v2513_v61 = vmul.f32 3.8918573e-05, %v6172_v39  ;;  %v2542_v28 = vmul.f32 2.1237322e-06, %v6176_v3  ;;  %vm2368_vm14 = vweird.f32 %v6157_v12 }
 0x52a   : > { %v2351_v35 = vadd.f32 1.1283791, %v2350_v11  ;;  %v2481_v59 = vmul.f32 %v2480_v47, %v6102_v20  ;;  %v2503_v50 = vadd.f32 0.00028619796, %v2502_v6  ;;  %v6213_v29 = vmul.f32 0.70710677, %v6178_v22 }
 0x52b   : > { %v6199_v51 = vpop.eup %4945  ;;  %v2391_v38 = vadd.f32 1.1283791, %v2390_v60  ;;  %v2469_v63 = vadd.f32 0.18741608, %v2468_v40  ;;  %v2514_v45 = vadd.f32 0.001143296, %v2513_v61  ;;  %v2580_v2 = vmul.f32 %v6202_v46, %v6202_v46 }
 0x52c   : > { %v6207_v31 = vpop.eup %4947  ;;  %v2364_v42 = vmul.f32 %v6199_v51, %v6157_v12  ;;  %v6217_v37 = vadd.f32 1.0, %v2481_v59  ;;  %v2504_v62 = vmul.f32 %v2503_v50, %v6172_v39  ;;  %v2543_v49 = vadd.f32 0.00028619796, %v2542_v28 }
 0x52d   : > { %v6215_v53 = vpop.eup %4949  ;;  %v2404_v27 = vmul.f32 %v6207_v31, %v6164_v58  ;;  %v2431_v16 = vadd.f32 1.1283791, %v2430_v48  ;;  %v6225_v7 = vmul.f32 %v2351_v35, %v6070_v9  ;;  %v2374_v36 = vand.u32 2147483648, %v6157_v12 }
 0x52e   : > { %v2365_v43 = vsub.f32 1.0, %v2364_v42  ;;  %v2444_v8 = vmul.f32 %v6215_v53, %v6166_v5  ;;  %4951 = vrcp.f32 %v6217_v37  ;;  %v2414_v10 = vand.u32 2147483648, %v6164_v58 }
 0x52f   : > { %v2470_v34 = vmul.f32 %v2469_v63, %v6102_v20  ;;  %v2505_v14 = vadd.f32 0.0036580483, %v2504_v62  ;;  %v2372_v55 = vand.u32 2147483647, %v6157_v12  ;;  %v6236_v23 = vmul.f32 %v2391_v38, %v6073_v33 }
 0x530   : > { %v2515_v9 = vmul.f32 %v2514_v45, %v6172_v39  ;;  %v2544_v56 = vmul.f32 %v2543_v49, %v6176_v3  ;;  %v2366_v15 = vmul.f32 %v6199_v51, %v2365_v43  ;;  %v2405_v52 = vsub.f32 1.0, %v2404_v27 }
 0x531   : > { %v2412_v57 = vand.u32 2147483647, %v6164_v58  ;;  %v6243_v41 = vmul.f32 %v2431_v16, %v6076_v44  ;;  %v2375_v1 = vor.u32 1.1754944e-38, %v2374_v36  ;;  %v2445_v20 = vsub.f32 1.0, %v2444_v8 }
 0x532   : > { %v2454_v17 = vand.u32 2147483648, %v6166_v5  ;;  %v2516_v54 = vadd.f32 0.014752088, %v2515_v9  ;;  %vm2408_vm15 = vweird.f32 %v6164_v58  ;;  %v6247_v33 = vor.u32 1.1754944e-38, %v2414_v10 }
 0x533   : > { %v2452_v11 = vand.u32 2147483647, %v6166_v5  ;;  %v2471_v60 = vadd.f32 1.1283791, %v2470_v34  ;;  %v2506_v40 = vmul.f32 %v2505_v14, %v6172_v39  ;;  %vm6253_vm2 = vcmp.eq.f32.partialorder %v2372_v55, 8.507059e+37 }
 0x534   : > { %v6251_v47 = vpop.eup %4951  ;;  %vm2448_vm3 = vweird.f32 %v6166_v5  ;;  %v2517_v44 = vmul.f32 %v2516_v54, %v6172_v39  ;;  %v2545_v48 = vadd.f32 0.0036580483, %v2544_v56  ;;  %v2553_v61 = vmul.f32 3.8918573e-05, %v6176_v3 }
 0x535   : > { %v6260_v28 = vmin.f32 %v2580_v2, 16.0  ;;  %v2367_v35 = vadd.f32 %v6199_v51, %v2366_v15  ;;  %vm2369_vm4 = vweird.f32 %v6199_v51  ;;  %v2406_v42 = vmul.f32 %v6207_v31, %v2405_v52 }
 0x536   : > { %v2484_v59 = vmul.f32 %v6251_v47, %v6217_v37  ;;  %vm2409_vm5 = vweird.f32 %v6207_v31  ;;  %v2446_v50 = vmul.f32 %v6215_v53, %v2445_v20  ;;  %v2455_v38 = vor.u32 1.1754944e-38, %v2454_v17  ;;  %vm6275_vm7 = vmor %vm2368_vm14, %vm2369_vm4 }
 0x537   : > { %v2518_v63 = vadd.f32 0.112945676, %v2517_v44  ;;  %vm2449_vm6 = vweird.f32 %v6215_v53  ;;  %v6271_v62 = vmul.f32 %v2471_v60, %v6080_v32  ;;  %v2507_v49 = vadd.f32 0.05243302, %v2506_v40  ;;  %vm6306_vm11 = vmor %vm2408_vm15, %vm2409_vm5 }
 0x538   : > { %v2485_v45 = vsub.f32 1.0, %v2484_v59  ;;  %v2546_v16 = vmul.f32 %v2545_v48, %v6176_v3  ;;  %v2554_v2 = vadd.f32 0.001143296, %v2553_v61  ;;  %v2582_v36 = vmul.f32 2.1237322e-06, %v6260_v28  ;;  %vm6321_vm12 = vmor %vm2448_vm3, %vm2449_vm6 }
 0x539   : > { %v2519_v27 = vmul.f32 %v2518_v63, %v6172_v39  ;;  %v2371_v32 = vsel %vm6275_vm7, %v6199_v51, %v2367_v35  ;;  %v2407_v8 = vadd.f32 %v6207_v31, %v2406_v42  ;;  %vm6286_vm8 = vcmp.eq.f32.partialorder %v2412_v57, 8.507059e+37 }
 0x53a   : > { %vm6290_vm9 = vcmp.eq.f32.partialorder %v2452_v11, 8.507059e+37  ;;  %vm2488_vm10 = vweird.f32 %v6217_v37  ;;  %v2593_v34 = vmul.f32 3.8918573e-05, %v6260_v28  ;;  %v2447_v14 = vadd.f32 %v6215_v53, %v2446_v50 }
 0x53b   : > { %v2520_v55 = vadd.f32 0.4994258, %v2519_v27  ;;  %v2555_v9 = vmul.f32 %v2554_v2, %v6176_v3  ;;  %v2583_v51 = vadd.f32 0.00028619796, %v2582_v36  ;;  %v2486_v56 = vmul.f32 %v6251_v47, %v2485_v45 }
 0x53c   : > { %v2508_v15 = vmul.f32 %v2507_v49, %v6172_v39  ;;  %v2594_v52 = vadd.f32 0.001143296, %v2593_v34  ;;  %v2620_v57 = vmul.f32 %v6213_v29, %v6213_v29  ;;  %v2547_v54 = vadd.f32 0.05243302, %v2546_v16 }
 0x53d   : > { %v2521_v17 = vmul.f32 %v2520_v55, %v6172_v39  ;;  %v2556_v11 = vadd.f32 0.014752088, %v2555_v9  ;;  %v2584_v60 = vmul.f32 %v2583_v51, %v6260_v28  ;;  %v2376_v40 = vsel %vm6253_vm2, %v2375_v1, %v2371_v32 }
 0x53e   : > { %v2411_v44 = vsel %vm6306_vm11, %v6207_v31, %v2407_v8  ;;  %v2494_v48 = vand.u32 2147483648, %v6217_v37  ;;  %v2595_v61 = vmul.f32 %v2594_v52, %v6260_v28  ;;  %v2451_v1 = vsel %vm6321_vm12, %v6215_v53, %v2447_v14 }
 0x53f   : > { %v6330_v6 = vadd.f32 1.0, %v2521_v17  ;;  %v2557_v31 = vmul.f32 %v2556_v11, %v6176_v3  ;;  %v6333_v35 = vmin.f32 %v2620_v57, 16.0  ;;  %v2487_v5 = vadd.f32 %v6251_v47, %v2486_v56 }
 0x540   : > { %vm2489_vm13 = vweird.f32 %v6251_v47  ;;  %v2585_v42 = vadd.f32 0.0036580483, %v2584_v60  ;;  %v2596_v59 = vadd.f32 0.014752088, %v2595_v61  ;;  %v2492_v50 = vand.u32 2147483647, %v6217_v37 }
 0x541   : > { %v2509_v63 = vadd.f32 0.18741608, %v2508_v15  ;;  %4953 = vrcp.f32 %v6330_v6  ;;  %v2548_v45 = vmul.f32 %v2547_v54, %v6176_v3  ;;  %v2377_v53 = vmul.f32 %v2376_v40, %v6225_v7  ;;  %vm6349_vm14 = vmor %vm2488_vm10, %vm2489_vm13 }
 0x542   : > { %v2495_v49 = vor.u32 1.1754944e-38, %v2494_v48  ;;  %v2558_v43 = vadd.f32 0.112945676, %v2557_v31  ;;  %v2586_v27 = vmul.f32 %v2585_v42, %v6260_v28  ;;  %v2416_v16 = vsel %vm6286_vm8, %v6247_v33, %v2411_v44 }
 0x543   : > { %v2456_v2 = vsel %vm6290_vm9, %v2455_v38, %v2451_v1  ;;  %v2597_v32 = vmul.f32 %v2596_v59, %v6260_v28  ;;  %v2622_v7 = vmul.f32 2.1237322e-06, %v6333_v35  ;;  %v2491_v8 = vsel %vm6349_vm14, %v6251_v47, %v2487_v5 }
 0x544   : > { %v2559_v10 = vmul.f32 %v2558_v43, %v6176_v3  ;;  %v2587_v33 = vadd.f32 0.05243302, %v2586_v27  ;;  %v2633_v12 = vmul.f32 3.8918573e-05, %v6333_v35  ;;  %v2510_v38 = vmul.f32 %v2509_v63, %v6172_v39 }
 0x545   : > { %v2549_v37 = vadd.f32 0.18741608, %v2548_v45  ;;  %v2598_v34 = vadd.f32 0.112945676, %v2597_v32  ;;  %v2623_v14 = vadd.f32 0.00028619796, %v2622_v7  ;;  %v2417_v55 = vmul.f32 %v2416_v16, %v6236_v23 }
 0x546   : > { %vm2493_vm15 = vcmp.eq.f32.partialorder %v2492_v50, 8.507059e+37  ;;  %v2560_v9 = vadd.f32 0.4994258, %v2559_v10  ;;  %v2634_v51 = vadd.f32 0.001143296, %v2633_v12  ;;  %v2588_v52 = vmul.f32 %v2587_v33, %v6260_v28 }
 0x547   : > { %v4954_v56 = vpop.eup %4953  ;;  %v2496_v15 = vsel %vm2493_vm15, %v2495_v49, %v2491_v8  ;;  %v2599_v47 = vmul.f32 %v2598_v34, %v6260_v28  ;;  %v2624_v57 = vmul.f32 %v2623_v14, %v6333_v35  ;;  %v4730_v20 = vclamps-f32 %v2377_v53, 1.0 }
 0x548   : > { %v2457_v17 = vmul.f32 %v2456_v2, %v6243_v41  ;;  %v2524_v39 = vmul.f32 %v4954_v56, %v6330_v6  ;;  %v2561_v54 = vmul.f32 %v2560_v9, %v6176_v3  ;;  %v2511_v11 = vadd.f32 1.1283791, %v2510_v38 }
 0x549   : > { %v2550_v23 = vmul.f32 %v2549_v37, %v6176_v3  ;;  %v2600_v60 = vadd.f32 0.4994258, %v2599_v47  ;;  %v2635_v40 = vmul.f32 %v2634_v51, %v6333_v35  ;;  %v2497_v44 = vmul.f32 %v2496_v15, %v6271_v62  ;;  %v2696_v47 = vld [vmem:[%s7346_s7] sm:$0x3] }
 0x54a   : > { %v2525_v58 = vsub.f32 1.0, %v2524_v39  ;;  %v6371_v48 = vadd.f32 1.0, %v2561_v54  ;;  %v2625_v61 = vadd.f32 0.0036580483, %v2624_v57  ;;  %v2534_v1 = vand.u32 2147483648, %v6330_v6 }
 0x54b   : > { %v2589_v31 = vadd.f32 0.18741608, %v2588_v52  ;;  %v2601_v41 = vmul.f32 %v2600_v60, %v6260_v28  ;;  %v2636_v5 = vadd.f32 0.014752088, %v2635_v40  ;;  %vm2529_vm2 = vweird.f32 %v4954_v56  ;;  %v4738_v52 = vld [vmem:[%s7346_s7 + $0x2] sm:$0x3] }
 0x54c   : > { %v2526_v42 = vmul.f32 %v4954_v56, %v2525_v58  ;;  %v2532_v59 = vand.u32 2147483647, %v6330_v6  ;;  %4955 = vrcp.f32 %v6371_v48  ;;  %v4731_v3 = vclamps-f32 %v2417_v55, 1.0  ;;  %v4752_v60 = vld [vmem:[%s7346_s7 + $0x6] sm:$0x3] }
 0x54d   : > { %v4732_v50 = vclamps-f32 %v2457_v17, 1.0  ;;  %v2512_v62 = vmul.f32 %v2511_v11, %v6139_v19  ;;  %v6378_v63 = vadd.f32 1.0, %v2601_v41  ;;  %vm2528_vm3 = vweird.f32 %v6330_v6 }
 0x54e   : > { %v2527_v45 = vadd.f32 %v4954_v56, %v2526_v42  ;;  %v2626_v53 = vmul.f32 %v2625_v61, %v6333_v35  ;;  %v2637_v49 = vmul.f32 %v2636_v5, %v6333_v35  ;;  %v4733_v43 = vclamps-f32 %v2497_v44, 1.0  ;;  %vm2530_vm4 = vmor %vm2528_vm3, %vm2529_vm2 }
 0x54f   : > { %v2535_v27 = vor.u32 1.1754944e-38, %v2534_v1  ;;  %v2590_v16 = vmul.f32 %v2589_v31, %v6260_v28  ;;  %4957 = vrcp.f32 %v6378_v63  ;;  %vm2533_vm5 = vcmp.eq.f32.partialorder %v2532_v59, 8.507059e+37  ;;  %v4757_v31 = vld [vmem:[%s7346_s7 + $0x8] sm:$0x3] }
 0x550   : > { %v2531_v2 = vsel %vm2530_vm4, %v4954_v56, %v2527_v45  ;;  %v2551_v36 = vadd.f32 1.1283791, %v2550_v23  ;;  %v2660_v19 = vadd.f32 1.0, %v4730_v20  ;;  %vm2568_vm6 = vweird.f32 %v6371_v48 }
 0x551   : > { %v2536_v32 = vsel %vm2533_vm5, %v2535_v27, %v2531_v2  ;;  %v2638_v7 = vadd.f32 0.112945676, %v2637_v49  ;;  %v2661_v6 = vadd.f32 1.0, %v4731_v3  ;;  %v2662_v8 = vadd.f32 1.0, %v4732_v50  ;;  %v2799_v27 = vld [vmem:[#allocation2 + $0x2] sm:$0xff] }
 0x552   : > { %v4956_v10 = vpop.eup %4955  ;;  %v2537_v33 = vmul.f32 %v2536_v32, %v2512_v62  ;;  %v2572_v12 = vand.u32 2147483647, %v6371_v48  ;;  %v2574_v38 = vand.u32 2147483648, %v6371_v48  ;;  %v2627_v37 = vadd.f32 0.05243302, %v2626_v53  ;;  %v2684_v53 = vld [vmem:[#allocation2] sm:$0xff] }
 0x553   : > { %v2564_v28 = vmul.f32 %v4956_v10, %v6371_v48  ;;  %v2591_v34 = vadd.f32 1.1283791, %v2590_v16  ;;  %v2639_v14 = vmul.f32 %v2638_v7, %v6333_v35  ;;  %v2663_v55 = vadd.f32 1.0, %v4733_v43 }
 0x554   : > { %v4734_v9 = vclamps-f32 %v2537_v33, 1.0  ;;  %v2614_v51 = vand.u32 2147483648, %v6378_v63  ;;  %v2668_v56 = vmul.f32 %v2660_v19, %v6181_v25  ;;  %v2669_v15 = vmul.f32 %v2661_v6, %v6186_v4  ;;  %v4747_v25 = vld [vmem:[%s7346_s7 + $0x4] sm:$0x3] }
 0x555   : > { %v6399_v57 = vpop.eup %4957  ;;  %v2565_v20 = vsub.f32 1.0, %v2564_v28  ;;  %v2640_v17 = vadd.f32 0.4994258, %v2639_v14  ;;  %v2670_v39 = vmul.f32 %v2662_v8, %v6189_v21  ;;  %v2671_v54 = vmul.f32 %v2663_v55, %v6194_v26 }
 0x556   : > { %vm2569_vm7 = vweird.f32 %v4956_v10  ;;  %v2604_v4 = vmul.f32 %v6399_v57, %v6378_v63  ;;  %v2628_v11 = vmul.f32 %v2627_v37, %v6333_v35  ;;  %v2664_v23 = vadd.f32 1.0, %v4734_v9  ;;  %2676 = vst.msk [vmem:[#allocation2 + $0x11] sm:$0xff] %vm481_vm1, %v2668_v56 }
 0x557   : > { %v2566_v21 = vmul.f32 %v4956_v10, %v2565_v20  ;;  %v2641_v26 = vmul.f32 %v2640_v17, %v6333_v35  ;;  %2677 = vst.msk [vmem:[#allocation2 + $0x21] sm:$0xff] %vm481_vm1, %v2669_v15  ;;  %v2724_v40 = vsel %vm564_vm0, %v4738_v52, 0  ;;  %v2768_v44 = vsel %vm564_vm0, %v2696_v47, 0  ;;  %vm2570_vm9 = vmor %vm2568_vm6, %vm2569_vm7 }
 0x558   : > { %v2605_v58 = vsub.f32 1.0, %v2604_v4  ;;  %vm2609_vm8 = vweird.f32 %v6399_v57  ;;  %v2672_v61 = vmul.f32 %v2664_v23, %v6196_v13  ;;  %2678 = vst.msk [vmem:[#allocation2 + $0x31] sm:$0xff] %vm481_vm1, %v2670_v39  ;;  %2733 = vmatpush.bf16.msra.mxu2 %v2724_v40  ;;  %2777 = vmatpush.bf16.msra.mxu3 %v2768_v44  ;;  %v2826_v1 = vsel %vm564_vm0, %v4747_v25, 0 }
 0x559   : > { %v2567_v41 = vadd.f32 %v4956_v10, %v2566_v21  ;;  %v6424_v5 = vadd.f32 1.0, %v2641_v26  ;;  %2679 = vst.msk [vmem:[#allocation2 + $0x41] sm:$0xff] %vm481_vm1, %v2671_v54  ;;  %2835 = vmatpush.bf16.msrb.mxu0 %v2826_v1  ;;  %v2892_v42 = vsel %vm564_vm0, %v4752_v60, 0  ;;  %v2958_v13 = vsel %vm564_vm0, %v4757_v31, 0 }
 0x55a   : > { %v2552_v59 = vmul.f32 %v2551_v36, %v6145_v30  ;;  %v2575_v3 = vor.u32 1.1754944e-38, %v2574_v38  ;;  %v2606_v50 = vmul.f32 %v6399_v57, %v2605_v58  ;;  %v2612_v62 = vand.u32 2147483647, %v6378_v63  ;;  %2680 = vst.msk [vmem:[#allocation2 + $0x51] sm:$0xff] %vm481_vm1, %v2672_v61  ;;  %2901 = vmatpush.bf16.msrb.mxu1 %v2892_v42  ;;  %v2697_v30 = vld [vmem:[#allocation2 + $0x1] sm:$0xff] }
 0x55b   : > { %v2571_v45 = vsel %vm2570_vm9, %v4956_v10, %v2567_v41  ;;  %vm2573_vm10 = vcmp.eq.f32.partialorder %v2572_v12, 8.507059e+37  ;;  %vm2608_vm11 = vweird.f32 %v6378_v63  ;;  %4959 = vrcp.f32 %v6424_v5 }
 0x55c   : > { %2967 = vmatpush.bf16.msrb.mxu2 %v2958_v13  ;;  %v2576_v49 = vsel %vm2573_vm10, %v2575_v3, %v2571_v45  ;;  %v2607_v48 = vadd.f32 %v6399_v57, %v2606_v50  ;;  %vm6441_vm12 = vmor %vm2608_vm11, %vm2609_vm8  ;;  %v2592_v2 = vmul.f32 %v2591_v34, %v6202_v46  ;;  %v2615_v36 = vor.u32 1.1754944e-38, %v2614_v51  ;;  %v4762_v13 = vld [vmem:[%s7346_s7 + $0xa] sm:$0x3] }
 0x55d   : > { %v2577_v16 = vmul.f32 %v2576_v49, %v2552_v59  ;;  %v2629_v19 = vadd.f32 0.18741608, %v2628_v11  ;;  %v6446_v63 = vld [vmem:[#allocation2 + $0x11] sm:$0xff]  ;;  %vm2613_vm13 = vcmp.eq.f32.partialorder %v2612_v62, 8.507059e+37  ;;  %v2329_v14 = vmul.f32 0.5, %v6132_v18 }
 0x55e   : > { %v2685_v32 = vld [vmem:[#allocation2 + $0x10] sm:$0xff]  ;;  %v2611_v6 = vsel %vm6441_vm12, %v6399_v57, %v2607_v48  ;;  %v2705_v8 = vpack.c.bf16 %v6446_v63, %v2697_v30  ;;  %v2866_v33 = vld [vmem:[#allocation2 + $0x20] sm:$0xff]  ;;  %v2330_v52 = vmul.f32 0.5, %v6174_v0  ;;  %v2654_v17 = vand.u32 2147483648, %v6424_v5  ;;  %v4767_v59 = vld [vmem:[%s7346_s7 + $0xc] sm:$0x3] }
 0x55f   : > { %v6448_v7 = vld [vmem:[#allocation2 + $0x12] sm:$0xff]  ;;  %v2692_v10 = vpack.c.bf16 %v2685_v32, %v2684_v53  ;;  %v4735_v12 = vclamps-f32 %v2577_v16, 1.0  ;;  %v2616_v38 = vsel %vm2613_vm13, %v2615_v36, %v2611_v6  ;;  %v2873_v37 = vpack.c.bf16 %v2866_v33, %v2685_v32  ;;  %v6469_v23 = vld [vmem:[#allocation2 + $0x21] sm:$0xff]  ;;  %v4777_v32 = vld [vmem:[%s7346_s7 + $0x10] sm:$0x3] }
 0x560   : > { %v2807_v46 = vpack.c.bf16 %v6448_v7, %v2799_v27  ;;  %v2617_v28 = vmul.f32 %v2616_v38, %v2592_v2  ;;  %4739 = vmatmul.msk.bf16.vlgmr.msra.gmra.mxu2 %vm481_vm1, %v2705_v8  ;;  %v2630_v55 = vmul.f32 %v2629_v19, %v6333_v35  ;;  %v2652_v35 = vand.u32 2147483647, %v6424_v5  ;;  %v6471_v60 = vld [vmem:[#allocation2 + $0x31] sm:$0xff]  ;;  %v2801_v40 = vld [vmem:[#allocation2 + $0x22] sm:$0xff] }
 0x561   : > { %4743 = vmatmul.msk.bf16.vlgmr.msra.gmra.mxu3 %vm481_vm1, %v2692_v10  ;;  %v4960_v34 = vpop.eup %4959  ;;  %v2665_v9 = vadd.f32 1.0, %v4735_v12  ;;  %4753 = vmatmul.msk.bf16.vlgmr.msrb.gmra.mxu1 %vm481_vm1, %v2873_v37  ;;  %vm2648_vm15 = vweird.f32 %v6424_v5  ;;  %v2655_v25 = vor.u32 1.1754944e-38, %v2654_v17  ;;  %v2687_v21 = vld [vmem:[#allocation2 + $0x30] sm:$0xff]  ;;  %v2868_v58 = vld [vmem:[#allocation2 + $0x40] sm:$0xff]  ;;  %v2706_v1 = vpack.c.bf16 %v6471_v60, %v6469_v23 }
 0x562   : > { %4748 = vmatmul.msk.bf16.vlgmr.msrb.gmra.mxu0 %vm481_vm1, %v2807_v46  ;;  %v4736_v51 = vclamps-f32 %v2617_v28, 1.0  ;;  %v2644_v56 = vmul.f32 %v4960_v34, %v6424_v5  ;;  %v2631_v20 = vadd.f32 1.1283791, %v2630_v55  ;;  %vm2649_vm14 = vweird.f32 %v4960_v34  ;;  %v6473_v44 = vld [vmem:[#allocation2 + $0x32] sm:$0xff]  ;;  %v2701_v30 = vld [vmem:[#allocation2 + $0x41] sm:$0xff] }
 0x563   : > { %v2673_v15 = vmul.f32 %v2665_v9, %v2329_v14  ;;  %vm2650_vm2 = vmor %vm2648_vm15, %vm2649_vm14  ;;  %vm2653_vm3 = vcmp.eq.f32.partialorder %v2652_v35, 8.507059e+37  ;;  %v2693_v31 = vpack.c.bf16 %v2687_v21, %v2866_v33  ;;  %v2874_v41 = vpack.c.bf16 %v2868_v58, %v2687_v21  ;;  %v2702_v53 = vld [vmem:[#allocation2 + $0x51] sm:$0xff]  ;;  %v2803_v48 = vld [vmem:[#allocation2 + $0x42] sm:$0xff] }
 0x564   : > { %v2645_v47 = vsub.f32 1.0, %v2644_v56  ;;  %v2666_v57 = vadd.f32 1.0, %v4736_v51  ;;  %v2632_v0 = vmul.f32 %v2631_v20, %v6213_v29  ;;  %v6478_v29 = vpack.c.bf16 %v6473_v44, %v2801_v40  ;;  %v2689_v49 = vld [vmem:[#allocation2 + $0x50] sm:$0xff] }
 0x565   : > { %2681 = vst.msk [vmem:[#allocation2 + $0x61] sm:$0xff] %vm481_vm1, %v2673_v15  ;;  %v2331_v5 = vmul.f32 0.5, %v6178_v22  ;;  %v4772_v22 = vld [vmem:[%s7346_s7 + $0xe] sm:$0x3]  ;;  %v3024_v50 = vsel %vm564_vm0, %v4762_v13, 0  ;;  %v3090_v62 = vsel %vm564_vm0, %v4767_v59, 0  ;;  %v2707_v16 = vpack.c.bf16 %v2702_v53, %v2701_v30 }
 0x566   : > { %v2646_v18 = vmul.f32 %v4960_v34, %v2645_v47  ;;  %v2674_v39 = vmul.f32 %v2666_v57, %v2330_v52  ;;  %v3156_v45 = vsel %vm564_vm0, %v4772_v22, 0  ;;  %3033 = vmatpush.bf16.msrb.mxu3 %v3024_v50  ;;  %3099 = vmatpush.bf16.msra.mxu0 %v3090_v62  ;;  %v2804_v43 = vld [vmem:[#allocation2 + $0x52] sm:$0xff]  ;;  %v2694_v2 = vpack.c.bf16 %v2689_v49, %v2868_v58 }
 0x567   : > { %3165 = vmatpush.bf16.msra.mxu1 %v3156_v45  ;;  %v6499_v36 = vpack.c.bf16 %v2804_v43, %v2803_v48  ;;  %v3222_v6 = vsel %vm564_vm0, %v4777_v32, 0  ;;  %v2939_v55 = vpack.c.bf16 %v6469_v23, %v6446_v63  ;;  %v3005_v9 = vpack.c.bf16 %v2801_v40, %v6448_v7  ;;  %v3070_v47 = vld [vmem:[#allocation2 + $0x90] sm:$0xff] }
 0x568   : > { %v2647_v54 = vadd.f32 %v4960_v34, %v2646_v18  ;;  %2682 = vst.msk [vmem:[#allocation2 + $0x71] sm:$0xff] %vm481_vm1, %v2674_v39  ;;  %3231 = vmatpush.bf16.msra.mxu2 %v3222_v6  ;;  %v2940_v51 = vpack.c.bf16 %v2701_v30, %v6471_v60  ;;  %v3006_v56 = vpack.c.bf16 %v2803_v48, %v6473_v44  ;;  %v3136_v57 = vld [vmem:[#allocation2 + $0x91] sm:$0xff]  ;;  %vm503_vm0 = vcmask 64512  }
 0x569   : > { %v3202_v48 = vld [vmem:[#allocation2 + $0x92] sm:$0xff]  ;;  %504 = vst.msk [vmem:[#allocation3] sm:$0xff] %vm503_vm0, %v5048_v24  ;;  %vm505_vm4 = vcmask 58368  }
 0x56a   : > { %v2651_v4 = vsel %vm2650_vm2, %v4960_v34, %v2647_v54  ;;  %507 = vst.msk [vmem:[#allocation3 + $0x10] sm:$0xff] %vm503_vm0, %v5048_v24 }
 0x56b   : > { %v2656_v11 = vsel %vm2653_vm3, %v2655_v25, %v2651_v4  ;;  %509 = vst.msk [vmem:[#allocation3 + $0x20] sm:$0xff] %vm503_vm0, %v5048_v24 }
 0x56c   : > { %v2657_v26 = vmul.f32 %v2656_v11, %v2632_v0  ;;  %v2870_v27 = vld [vmem:[#allocation2 + $0x60] sm:$0xff]  ;;  %511 = vst.msk [vmem:[#allocation3 + $0x30] sm:$0xff] %vm503_vm0, %v5048_v24 }
 0x56d   : > { %v2875_v19 = vpack.c.bf16 %v2870_v27, %v2689_v49  ;;  %v2703_v8 = vld [vmem:[#allocation2 + $0x61] sm:$0xff]  ;;  %513 = vst.msk [vmem:[#allocation3 + $0x40] sm:$0xff] %vm503_vm0, %v5048_v24 }
 0x56e   : > { %v4737_v61 = vclamps-f32 %v2657_v26, 1.0  ;;  %v2805_v12 = vld [vmem:[#allocation2 + $0x62] sm:$0xff]  ;;  %v2941_v63 = vpack.c.bf16 %v2703_v8, %v2702_v53  ;;  %515 = vst.msk [vmem:[#allocation3 + $0x50] sm:$0xff] %vm503_vm0, %v5048_v24 }
 0x56f   : > { %v2704_v10 = vld [vmem:[#allocation2 + $0x71] sm:$0xff]  ;;  %v3007_v7 = vpack.c.bf16 %v2805_v12, %v2804_v43  ;;  %517 = vst.msk [vmem:[#allocation3 + $0x60] sm:$0xff] %vm503_vm0, %v5048_v24 }
 0x570   : > { %v2667_v42 = vadd.f32 1.0, %v4737_v61  ;;  %4740 = vmatmul.msk.bf16.gmra.mxu2 %vm481_vm1, %v2706_v1  ;;  %v2691_v33 = vld [vmem:[#allocation2 + $0x70] sm:$0xff]  ;;  %v2708_v37 = vpack.c.bf16 %v2704_v10, %v2703_v8  ;;  %519 = vst.msk [vmem:[#allocation3 + $0x70] sm:$0xff] %vm503_vm0, %v5048_v24 }
 0x571   : > { %4744 = vmatmul.msk.bf16.gmra.mxu3 %vm481_vm1, %v2693_v31  ;;  %4754 = vmatmul.msk.bf16.gmra.mxu1 %vm481_vm1, %v2874_v41  ;;  %v2806_v38 = vld [vmem:[#allocation2 + $0x72] sm:$0xff]  ;;  %v2695_v28 = vpack.c.bf16 %v2691_v33, %v2870_v27  ;;  %521 = vst.msk [vmem:[#allocation3 + $0x80] sm:$0xff] %vm503_vm0, %v5048_v24 }
 0x572   : > { %4749 = vmatmul.msk.bf16.gmra.mxu0 %vm481_vm1, %v6478_v29  ;;  %v2675_v3 = vmul.f32 %v2667_v42, %v2331_v5  ;;  %v2810_v34 = vpack.c.bf16 %v2806_v38, %v2805_v12  ;;  %523 = vst.msk [vmem:[#allocation3 + $0x90] sm:$0xff] %vm503_vm0, %v5048_v24 }
 0x573   : > { %508 = vst.msk [vmem:[#allocation3 + $0x18] sm:$0x3] %vm505_vm4, %v5048_v24 }
 0x574   : > { %2683 = vst.msk [vmem:[#allocation2 + $0x81] sm:$0xff] %vm481_vm1, %v2675_v3 }
 0x575   : > { %510 = vst.msk [vmem:[#allocation3 + $0x28] sm:$0x3] %vm505_vm4, %v5048_v24 }
 0x576   : > { %512 = vst.msk [vmem:[#allocation3 + $0x38] sm:$0x3] %vm505_vm4, %v5048_v24 }
 0x577   : > { %514 = vst.msk [vmem:[#allocation3 + $0x48] sm:$0x3] %vm505_vm4, %v5048_v24 }
 0x578   : > { %516 = vst.msk [vmem:[#allocation3 + $0x58] sm:$0x3] %vm505_vm4, %v5048_v24 }
 0x579   : > { %518 = vst.msk [vmem:[#allocation3 + $0x68] sm:$0x3] %vm505_vm4, %v5048_v24 }
 0x57a   : > { %520 = vst.msk [vmem:[#allocation3 + $0x78] sm:$0x3] %vm505_vm4, %v5048_v24 }
 0x57b   : > { %v2872_v46 = vld [vmem:[#allocation2 + $0x80] sm:$0xff]  ;;  %522 = vst.msk [vmem:[#allocation3 + $0x88] sm:$0x3] %vm505_vm4, %v5048_v24 }
 0x57c   : > { %v2876_v14 = vpack.c.bf16 %v2872_v46, %v2691_v33  ;;  %v2938_v15 = vld [vmem:[#allocation2 + $0x81] sm:$0xff]  ;;  %v3074_v18 = vpack.c.bf16 %v3070_v47, %v2872_v46  ;;  %506 = vst.msk [vmem:[#allocation3 + $0x8] sm:$0x3] %vm505_vm4, %v5048_v24 }
 0x57d   : > { %v3004_v52 = vld [vmem:[#allocation2 + $0x82] sm:$0xff]  ;;  %v2942_v20 = vpack.c.bf16 %v2938_v15, %v2704_v10  ;;  %v3140_v35 = vpack.c.bf16 %v3136_v57, %v2938_v15  ;;  %524 = vst.msk [vmem:[#allocation3 + $0x98] sm:$0x3] %vm505_vm4, %v5048_v24 }
 0x57e   : > { %v3008_v17 = vpack.c.bf16 %v3004_v52, %v2806_v38  ;;  %v3206_v43 = vpack.c.bf16 %v3202_v48, %v3004_v52 }
 0x580   : > { %4741 = vmatmul.msk.bf16.gmra.mxu2 %vm481_vm1, %v2707_v16 }
 0x581   : > { %4745 = vmatmul.msk.bf16.gmra.mxu3 %vm481_vm1, %v2694_v2  ;;  %4755 = vmatmul.msk.bf16.gmra.mxu1 %vm481_vm1, %v2875_v19 }
 0x582   : > { %4750 = vmatmul.msk.bf16.gmra.mxu0 %vm481_vm1, %v6499_v36 }
 0x590   : > { %4742 = vmatmul.msk.bf16.gmra.mxu2 %vm481_vm1, %v2708_v37 }
 0x591   : > { %4746 = vmatmul.msk.bf16.gmra.mxu3 %vm481_vm1, %v2695_v28  ;;  %4756 = vmatmul.msk.bf16.gmra.mxu1 %vm481_vm1, %v2876_v14 }
 0x592   : > { %4751 = vmatmul.msk.bf16.gmra.mxu0 %vm481_vm1, %v2810_v34 }
 0x5a0   : > { %4758 = vmatmul.msk.bf16.vlgmr.msrb.gmra.mxu2 %vm481_vm1, %v2939_v55 }
 0x5a1   : > { %4763 = vmatmul.msk.bf16.vlgmr.msrb.gmra.mxu3 %vm481_vm1, %v3005_v9  ;;  %4773 = vmatmul.msk.bf16.vlgmr.msra.gmra.mxu1 %vm481_vm1, %v2706_v1 }
 0x5a2   : > { %4768 = vmatmul.msk.bf16.vlgmr.msra.gmra.mxu0 %vm481_vm1, %v2693_v31 }
 0x5b0   : > { %4759 = vmatmul.msk.bf16.gmra.mxu2 %vm481_vm1, %v2940_v51 }
 0x5b1   : > { %4764 = vmatmul.msk.bf16.gmra.mxu3 %vm481_vm1, %v3006_v56  ;;  %4774 = vmatmul.msk.bf16.gmra.mxu1 %vm481_vm1, %v2707_v16 }
 0x5b2   : > { %4769 = vmatmul.msk.bf16.gmra.mxu0 %vm481_vm1, %v2694_v2 }
 0x5c0   : > { %4760 = vmatmul.msk.bf16.gmra.mxu2 %vm481_vm1, %v2941_v63 }
 0x5c1   : > { %4765 = vmatmul.msk.bf16.gmra.mxu3 %vm481_vm1, %v3007_v7  ;;  %4775 = vmatmul.msk.bf16.gmra.mxu1 %vm481_vm1, %v2708_v37 }
 0x5c2   : > { %4770 = vmatmul.msk.bf16.gmra.mxu0 %vm481_vm1, %v2695_v28 }
 0x5d0   : > { %4761 = vmatmul.msk.bf16.gmra.mxu2 %vm481_vm1, %v2942_v20 }
 0x5d1   : > { %4766 = vmatmul.msk.bf16.gmra.mxu3 %vm481_vm1, %v3008_v17  ;;  %4776 = vmatmul.msk.bf16.gmra.mxu1 %vm481_vm1, %v3140_v35 }
 0x5d2   : > { %4771 = vmatmul.msk.bf16.gmra.mxu0 %vm481_vm1, %v3074_v18 }
 0x5de   : > { %v2903_v54 = vpop.f32.mrf.mxu1 }
 0x5df   : > { %v2837_v39 = vpop.f32.mrf.mxu0 }
 0x5e0   : > { %4778 = vmatmul.msk.bf16.vlgmr.msra.gmra.mxu2 %vm481_vm1, %v6478_v29 }
 0x5e3   : > { %v2735_v25 = vpop.f32.mrf.mxu2 }
 0x5e4   : > { %v2779_v0 = vpop.f32.mrf.mxu3 }
 0x5e5   : > { %v2780_v4 = vadd.f32 %v2779_v0, %v2735_v25 }
 0x5e6   : > { %v6539_v60 = vpop.f32.mrf.mxu1 }
 0x5e7   : > { %v2857_v11 = vadd.f32 %v2837_v39, %v2780_v4  ;;  %v6537_v23 = vpop.f32.mrf.mxu0 }
 0x5e9   : > { %v2923_v21 = vadd.f32 %v2903_v54, %v2857_v11 }
 0x5eb   : > { %v6541_v26 = vpop.f32.mrf.mxu2 }
 0x5ec   : > { %v6543_v40 = vpop.f32.mrf.mxu3 }
 0x5ee   : > { %v2908_v58 = vpop.f32.mrf.mxu1 }
 0x5ef   : > { %v2842_v44 = vpop.f32.mrf.mxu0 }
 0x5f0   : > { %4779 = vmatmul.msk.bf16.gmra.mxu2 %vm481_vm1, %v6499_v36 }
 0x5f3   : > { %v2740_v61 = vpop.f32.mrf.mxu2 }
 0x5f4   : > { %v2784_v1 = vpop.f32.mrf.mxu3 }
 0x5f5   : > { %v2785_v31 = vadd.f32 %v2784_v1, %v2740_v61 }
 0x5f6   : > { %v6553_v59 = vpop.f32.mrf.mxu1 }
 0x5f7   : > { %v2859_v29 = vadd.f32 %v2842_v44, %v2785_v31  ;;  %v6547_v5 = vpop.f32.mrf.mxu0  ;;  %v2782_v44 = vadd.f32 %v6543_v40, %v6541_v26 }
 0x5f9   : > { %v2925_v41 = vadd.f32 %v2908_v58, %v2859_v29  ;;  %v2858_v61 = vadd.f32 %v6537_v23, %v2782_v44 }
 0x5fb   : > { %v6549_v42 = vpop.f32.mrf.mxu2 }
 0x5fc   : > { %v6551_v13 = vpop.f32.mrf.mxu3 }
 0x5fd   : > { %v2787_v1 = vadd.f32 %v6551_v13, %v6549_v42 }
 0x5fe   : > { %v2913_v30 = vpop.f32.mrf.mxu1 }
 0x5ff   : > { %v2847_v62 = vpop.f32.mrf.mxu0 }
 0x600   : > { %4780 = vmatmul.msk.bf16.gmra.mxu2 %vm481_vm1, %v2810_v34 }
 0x603   : > { %v2745_v22 = vpop.f32.mrf.mxu2 }
 0x604   : > { %v2789_v3 = vpop.f32.mrf.mxu3 }
 0x605   : > { %v2790_v50 = vadd.f32 %v2789_v3, %v2745_v22  ;;  %v2924_v3 = vadd.f32 %v6539_v60, %v2858_v61 }
 0x606   : > { %v6561_v10 = vpop.f32.mrf.mxu1 }
 0x607   : > { %v2861_v45 = vadd.f32 %v2847_v62, %v2790_v50  ;;  %v2849_v6 = vpop.f32.mrf.mxu0 }
 0x609   : > { %v2927_v53 = vadd.f32 %v2913_v30, %v2861_v45 }
 0x60b   : > { %v2747_v49 = vpop.f32.mrf.mxu2 }
 0x60c   : > { %v2791_v32 = vpop.f32.mrf.mxu3 }
 0x60d   : > { %v2792_v22 = vadd.f32 %v2791_v32, %v2747_v49 }
 0x60e   : > { %v6563_v37 = vpop.f32.mrf.mxu1 }
 0x60f   : > { %v2852_v38 = vpop.f32.mrf.mxu0  ;;  %v2862_v30 = vadd.f32 %v2849_v6, %v2792_v22 }
 0x610   : > { %4781 = vmatmul.msk.bf16.gmra.mxu2 %vm481_vm1, %v3206_v43 }
 0x611   : > { %v2928_v49 = vadd.f32 %v6561_v10, %v2862_v30 }
 0x613   : > { %v2750_v27 = vpop.f32.mrf.mxu2 }
 0x614   : > { %v2794_v12 = vpop.f32.mrf.mxu3 }
 0x615   : > { %v2795_v62 = vadd.f32 %v2794_v12, %v2750_v27 }
 0x616   : > { %v2920_v9 = vpop.f32.mrf.mxu1 }
 0x617   : > { %v2854_v14 = vpop.f32.mrf.mxu0  ;;  %v2863_v40 = vadd.f32 %v2852_v38, %v2795_v62 }
 0x61b   : > { %v6557_v16 = vpop.f32.mrf.mxu2 }
 0x61c   : > { %v2796_v28 = vpop.f32.mrf.mxu3 }
 0x61d   : > { %v2797_v43 = vadd.f32 %v2796_v28, %v6557_v16 }
 0x61e   : > { %v3167_v7 = vpop.f32.mrf.mxu1 }
 0x61f   : > { %v3101_v63 = vpop.f32.mrf.mxu0 }
 0x623   : > { %v2969_v2 = vpop.f32.mrf.mxu2 }
 0x624   : > { %v6559_v36 = vadd.f32 %v2969_v2, %v2923_v21  ;;  %v3035_v51 = vpop.f32.mrf.mxu3 }
 0x626   : > { %v3169_v20 = vpop.f32.mrf.mxu1  ;;  %v3055_v42 = vadd.f32 %v3035_v51, %v6559_v36 }
 0x627   : > { %v3103_v47 = vpop.f32.mrf.mxu0 }
 0x62b   : > { %v2971_v19 = vpop.f32.mrf.mxu2 }
 0x62c   : > { %v3037_v52 = vpop.f32.mrf.mxu3  ;;  %v2990_v45 = vadd.f32 %v2971_v19, %v2924_v3  ;;  %v2929_v19 = vadd.f32 %v6563_v37, %v2863_v40 }
 0x62e   : > { %v3172_v39 = vpop.f32.mrf.mxu1  ;;  %v3056_v48 = vadd.f32 %v3037_v52, %v2990_v45 }
 0x62f   : > { %v3106_v18 = vpop.f32.mrf.mxu0 }
 0x630   : > { %v3122_v60 = vadd.f32 %v3103_v47, %v3056_v48 }
 0x632   : > { %v3188_v36 = vadd.f32 %v3169_v20, %v3122_v60 }
 0x633   : > { %v2974_v8 = vpop.f32.mrf.mxu2 }
 0x634   : > { %v2991_v33 = vadd.f32 %v2974_v8, %v2925_v41  ;;  %v3040_v17 = vpop.f32.mrf.mxu3  ;;  %v2860_v41 = vadd.f32 %v6547_v5, %v2787_v1  ;;  %v3121_v8 = vadd.f32 %v3101_v63, %v3055_v42 }
 0x636   : > { %v3174_v4 = vpop.f32.mrf.mxu1  ;;  %v3057_v2 = vadd.f32 %v3040_v17, %v2991_v33  ;;  %v3187_v33 = vadd.f32 %v3167_v7, %v3121_v8 }
 0x637   : > { %v3108_v0 = vpop.f32.mrf.mxu0 }
 0x638   : > { %v3123_v12 = vadd.f32 %v3106_v18, %v3057_v2 }
 0x63b   : > { %v2976_v46 = vpop.f32.mrf.mxu2 }
 0x63c   : > { %v3042_v54 = vpop.f32.mrf.mxu3 }
 0x63e   : > { %v3177_v31 = vpop.f32.mrf.mxu1 }
 0x63f   : > { %v3111_v58 = vpop.f32.mrf.mxu0 }
 0x643   : > { %v2979_v34 = vpop.f32.mrf.mxu2 }
 0x644   : > { %v2993_v55 = vadd.f32 %v2979_v34, %v2927_v53  ;;  %v3045_v11 = vpop.f32.mrf.mxu3  ;;  %v2926_v53 = vadd.f32 %v6553_v59, %v2860_v41  ;;  %v2864_v59 = vadd.f32 %v2854_v14, %v2797_v43 }
 0x646   : > { %v2992_v23 = vadd.f32 %v2976_v46, %v2926_v53  ;;  %v3179_v5 = vpop.f32.mrf.mxu1  ;;  %v3059_v38 = vadd.f32 %v3045_v11, %v2993_v55  ;;  %v2930_v51 = vadd.f32 %v2920_v9, %v2864_v59 }
 0x647   : > { %v3113_v26 = vpop.f32.mrf.mxu0 }
 0x648   : > { %v3058_v32 = vadd.f32 %v3042_v54, %v2992_v23  ;;  %v3125_v17 = vadd.f32 %v3111_v58, %v3059_v38 }
 0x64a   : > { %v3124_v34 = vadd.f32 %v3108_v0, %v3058_v32  ;;  %v3191_v20 = vadd.f32 %v3177_v31, %v3125_v17 }
 0x64b   : > { %v2981_v56 = vpop.f32.mrf.mxu2 }
 0x64c   : > { %v3047_v50 = vpop.f32.mrf.mxu3  ;;  %v2994_v27 = vadd.f32 %v2981_v56, %v2928_v49  ;;  %v3189_v56 = vadd.f32 %v3172_v39, %v3123_v12  ;;  %v3190_v55 = vadd.f32 %v3174_v4, %v3124_v34 }
 0x64e   : > { %v3060_v16 = vadd.f32 %v3047_v50, %v2994_v27  ;;  %v3182_v44 = vpop.f32.mrf.mxu1 }
 0x64f   : > { %v3116_v28 = vpop.f32.mrf.mxu0 }
 0x650   : > { %v3126_v37 = vadd.f32 %v3113_v26, %v3060_v16 }
 0x653   : > { %v2984_v15 = vpop.f32.mrf.mxu2 }
 0x654   : > { %v3050_v6 = vpop.f32.mrf.mxu3  ;;  %v2995_v46 = vadd.f32 %v2984_v15, %v2929_v19 }
 0x656   : > { %v3061_v10 = vadd.f32 %v3050_v6, %v2995_v46  ;;  %v3184_v30 = vpop.f32.mrf.mxu1 }
 0x658   : > { %v3127_v15 = vadd.f32 %v3116_v28, %v3061_v10 }
 0x65a   : > { %v3193_v31 = vadd.f32 %v3182_v44, %v3127_v15 }
 0x65b   : > { %v2986_v57 = vpop.f32.mrf.mxu2 }
 0x65c   : > { %v2996_v54 = vadd.f32 %v2986_v57, %v2930_v51  ;;  %v3052_v18 = vpop.f32.mrf.mxu3 }
 0x65e   : > { %v3062_v0 = vadd.f32 %v3052_v18, %v2996_v54 }
 0x663   : > { %v3233_v35 = vpop.f32.mrf.mxu2 }
 0x664   : > { %v6599_v14 = vadd.f32 %v3233_v35, %v3187_v33 }
 0x666   : > { %v3263_v39 = vsel %vm503_vm0, %v6599_v14, 0.0  ;;  %v3287_v22 = vmul.f32 %v6599_v14, %v6599_v14 }
 0x668   : > { %v3295_v43 = vsel %vm503_vm0, %v3287_v22, 0.0 }
 0x66b   : > { %v3235_v25 = vpop.f32.mrf.mxu2 }
 0x66c   : > { %v6597_v47 = vadd.f32 %v3235_v25, %v3188_v36  ;;  %v3192_v25 = vadd.f32 %v3179_v5, %v3126_v37 }
 0x66e   : > { %v3264_v9 = vsel %vm503_vm0, %v6597_v47, 0.0  ;;  %v3288_v58 = vmul.f32 %v6597_v47, %v6597_v47 }
 0x66f   : > { %v3265_v11 = vadd.f32 %v3264_v9, %v3263_v39 }
 0x670   : > { %v3296_v53 = vsel %vm503_vm0, %v3288_v58, 0.0 }
 0x671   : > { %v3297_v5 = vadd.f32 %v3296_v53, %v3295_v43 }
 0x673   : > { %v3238_v21 = vpop.f32.mrf.mxu2 }
 0x674   : > { %v6601_v63 = vadd.f32 %v3238_v21, %v3189_v56  ;;  %v3118_v21 = vpop.f32.mrf.mxu0  ;;  %v5050_v56 = vmov 512.0  }
 0x675   : > { %4961 = vrcp.f32 %v5050_v56 }
 0x676   : > { %v3266_v57 = vsel %vm503_vm0, %v6601_v63, 0.0  ;;  %v3289_v3 = vmul.f32 %v6601_v63, %v6601_v63 }
 0x677   : > { %v3267_v41 = vadd.f32 %v3266_v57, %v3265_v11 }
 0x678   : > { %v3298_v42 = vsel %vm503_vm0, %v3289_v3, 0.0 }
 0x679   : > { %v3299_v6 = vadd.f32 %v3298_v42, %v3297_v5 }
 0x67b   : > { %v3240_v29 = vpop.f32.mrf.mxu2  ;;  %v4962_v54 = vpop.eup %4961 }
 0x67c   : > { %v6605_v7 = vadd.f32 %v3240_v29, %v3190_v55  ;;  %v3128_v29 = vadd.f32 %v3118_v21, %v3062_v0  ;;  %v3320_v15 = vmul.f32 512.0, %v4962_v54  ;;  %vm3324_vm1 = vweird.f32 %v4962_v54 }
 0x67e   : > { %v3268_v61 = vsel %vm503_vm0, %v6605_v7, 0.0  ;;  %v3290_v26 = vmul.f32 %v6605_v7, %v6605_v7  ;;  %v3194_v48 = vadd.f32 %v3184_v30, %v3128_v29 }
 0x67f   : > { %v3269_v45 = vadd.f32 %v3268_v61, %v3267_v41 }
 0x680   : > { %v3300_v32 = vsel %vm503_vm0, %v3290_v26, 0.0 }
 0x681   : > { %v3301_v46 = vadd.f32 %v3300_v32, %v3299_v6 }
 0x683   : > { %v3243_v13 = vpop.f32.mrf.mxu2 }
 0x684   : > { %v6611_v35 = vadd.f32 %v3243_v13, %v3191_v20  ;;  %v3321_v20 = vsub.f32 1.0, %v3320_v15 }
 0x686   : > { %v3270_v50 = vsel %vm503_vm0, %v6611_v35, 0.0  ;;  %v3291_v13 = vmul.f32 %v6611_v35, %v6611_v35 }
 0x687   : > { %v3271_v23 = vadd.f32 %v3270_v50, %v3269_v45 }
 0x688   : > { %v3302_v8 = vsel %vm503_vm0, %v3291_v13, 0.0  ;;  %v6691_v13 = vld [vmem:[%s7347_s8] ss:$0 sm:$0xff] }
 0x689   : > { %v3303_v36 = vadd.f32 %v3302_v8, %v3301_v46 }
 0x68b   : > { %v3245_v52 = vpop.f32.mrf.mxu2 }
 0x68c   : > { %v6617_v1 = vadd.f32 %v3245_v52, %v3192_v25 }
 0x68e   : > { %v3272_v40 = vsel %vm503_vm0, %v6617_v1, 0.0  ;;  %v3292_v27 = vmul.f32 %v6617_v1, %v6617_v1 }
 0x68f   : > { %v3273_v60 = vadd.f32 %v3272_v40, %v3271_v23 }
 0x690   : > { %v3304_v28 = vsel %vm503_vm0, %v3292_v27, 0.0 }
 0x691   : > { %v3305_v33 = vadd.f32 %v3304_v28, %v3303_v36 }
 0x693   : > { %v3248_v4 = vpop.f32.mrf.mxu2 }
 0x694   : > { %v6625_v62 = vadd.f32 %v3248_v4, %v3193_v31  ;;  %v3322_v4 = vmul.f32 %v4962_v54, %v3321_v20 }
 0x696   : > { %v3274_v2 = vsel %vm503_vm0, %v6625_v62, 0.0  ;;  %v3293_v12 = vmul.f32 %v6625_v62, %v6625_v62  ;;  %v3323_v61 = vadd.f32 %v4962_v54, %v3322_v4 }
 0x697   : > { %v3275_v59 = vadd.f32 %v3274_v2, %v3273_v60 }
 0x698   : > { %v3306_v51 = vsel %vm503_vm0, %v3293_v12, 0.0  ;;  %v3325_v41 = vsel %vm3324_vm1, %v4962_v54, %v3323_v61 }
 0x699   : > { %v3307_v17 = vadd.f32 %v3306_v51, %v3305_v33 }
 0x69b   : > { %v3250_v49 = vpop.f32.mrf.mxu2 }
 0x69c   : > { %v6641_v19 = vadd.f32 %v3250_v49, %v3194_v48 }
 0x69e   : > { %v3276_v38 = vsel %vm503_vm0, %v6641_v19, 0.0  ;;  %v3294_v16 = vmul.f32 %v6641_v19, %v6641_v19 }
 0x69f   : > { %v3277_v34 = vadd.f32 %v3276_v38, %v3275_v59 }
 0x6a0   : > { %v3308_v52 = vsel %vm503_vm0, %v3294_v16, 0.0 }
 0x6a1   : > { %3278 = vadd.xlane.f32.xlu2 %v3277_v34  ;;  %v3309_v10 = vadd.f32 %v3308_v52, %v3307_v17 }
 0x6a9   : > { %3310 = vadd.xlane.f32.xlu2 %v3309_v10 }
 0x714   : > { %v3279_v37 = vpop.xlane.xlu2 %3278 }
 0x715   : > { %v3280_v44 = vrot.slane %v3279_v37, 4 }
 0x717   : > { %v3281_v55 = vadd.f32 %v3280_v44, %v3279_v37 }
 0x719   : > { %v3282_v18 = vrot.slane %v3281_v55, 2 }
 0x71b   : > { %v3283_v9 = vadd.f32 %v3282_v18, %v3281_v55 }
 0x71c   : > { %v3311_v0 = vpop.xlane.xlu2 %3310 }
 0x71d   : > { %v3312_v39 = vrot.slane %v3311_v0, 4  ;;  %v3284_v57 = vrot.slane %v3283_v9, 1 }
 0x71f   : > { %v3313_v25 = vadd.f32 %v3312_v39, %v3311_v0  ;;  %v3285_v11 = vadd.f32 %v3284_v57, %v3283_v9 }
 0x721   : > { %v3314_v21 = vrot.slane %v3313_v25, 2  ;;  %4855 = vpush %v3285_v11 }
 0x723   : > { %v3315_v58 = vadd.f32 %v3314_v21, %v3313_v25 }
 0x725   : > { %v3316_v31 = vrot.slane %v3315_v58, 1 }
 0x727   : > { %v3317_v29 = vadd.f32 %v3316_v31, %v3315_v58 }
 0x729   : > { %4857 = vpush %v3317_v29 }
 0x72a   : > { %4859 = vpush %v3325_v41 }
 0x752   : > { %s4856_s28 = spop %4855 }
 0x75a   : > { %s4858_s0 = spop %4857 }
 0x75b   : > { %s6657_s20 = spop %4859 }
 0x75c   : > { %s3327_s1 = smul.f32 %s6657_s20, %s4856_s28 }
 0x75d   : > { %s3336_s21 = smul.f32 %s6657_s20, %s4858_s0 }
 0x75e   : > { %s3337_s18 = smul.f32 %s3327_s1, %s3327_s1  ;;  %v6678_v48 = vstv %s3327_s1 }
 0x75f   : > { %v3341_v23 = vsub.f32 %v6599_v14, %v6678_v48  ;;  %v3342_v24 = vsub.f32 %v6597_v47, %v6678_v48  ;;  %v3343_v43 = vsub.f32 %v6601_v63, %v6678_v48  ;;  %v3344_v42 = vsub.f32 %v6605_v7, %v6678_v48  ;;  %v6702_v63 = vld [vmem:[%s7348_s9] ss:$0 sm:$0xff] }
 0x760   : > { %s3338_s26 = ssub.f32 %s3336_s21, %s3337_s18  ;;  %v3345_v28 = vsub.f32 %v6611_v35, %v6678_v48  ;;  %v3346_v33 = vsub.f32 %v6617_v1, %v6678_v48  ;;  %v3347_v18 = vsub.f32 %v6625_v62, %v6678_v48 }
 0x762   : > { %s3339_s2 = smax.f32 %s5049_s27, %s3338_s26 }
 0x763   : > { %s3349_s3 = sadd.f32 1e-05, %s3339_s2  ;;  %s479_s2 = scalar_lea.vmem %s7352_s13, %s5194_s25 }
 0x765   : > { %v3350_v22 = vstv %s3349_s3 }
 0x766   : > { %4963 = vrsqrt.f32 %v3350_v22  ;;  %vm3357_vm6 = vweird.f32 %v3350_v22 }
 0x76c   : > { %v4964_v3 = vpop.eup %4963 }
 0x76d   : > { %v3352_v50 = vmul.f32 %v4964_v3, %v3350_v22  ;;  %vm3358_vm5 = vweird.f32 %v4964_v3 }
 0x76e   : > { %vm3359_vm7 = vmor %vm3357_vm6, %vm3358_vm5 }
 0x76f   : > { %v3353_v45 = vmul.f32 %v4964_v3, %v3352_v50 }
 0x771   : > { %v3354_v30 = vmul.f32 0.5, %v3353_v45 }
 0x773   : > { %v3355_v53 = vsub.f32 1.5, %v3354_v30  ;;  %v3348_v30 = vsub.f32 %v6641_v19, %v6678_v48 }
 0x775   : > { %v3356_v26 = vmul.f32 %v4964_v3, %v3355_v53 }
 0x777   : > { %v3360_v40 = vsel %vm3359_vm7, %v4964_v3, %v3356_v26 }
 0x778   : > { %4861 = vpush %v3360_v40 }
 0x7a9   : > { %s4862_s22 = spop %4861 }
 0x7aa   : > { %v6693_v2 = vstv %s4862_s22 }
 0x7ab   : > { %v3363_v5 = vmul.f32 %v6693_v2, %v3341_v23  ;;  %v3364_v14 = vmul.f32 %v6693_v2, %v3342_v24  ;;  %v3365_v47 = vmul.f32 %v6693_v2, %v3343_v43  ;;  %v3366_v49 = vmul.f32 %v6693_v2, %v3344_v42 }
 0x7ac   : > { %v3367_v10 = vmul.f32 %v6693_v2, %v3345_v28  ;;  %v3368_v54 = vmul.f32 %v6693_v2, %v3346_v33 }
 0x7ad   : > { %v3374_v7 = vmul.f32 %v6691_v13, %v3363_v5  ;;  %v3375_v60 = vmul.f32 %v6691_v13, %v3364_v14  ;;  %v3376_v32 = vmul.f32 %v6691_v13, %v3365_v47  ;;  %v3377_v27 = vmul.f32 %v6691_v13, %v3366_v49 }
 0x7ae   : > { %v3378_v39 = vmul.f32 %v6691_v13, %v3367_v10  ;;  %v3379_v4 = vmul.f32 %v6691_v13, %v3368_v54  ;;  %v3370_v10 = vmul.f32 %v6693_v2, %v3348_v30 }
 0x7af   : > { %v6709_v6 = vadd.f32 %v6702_v63, %v3374_v7  ;;  %v6712_v59 = vadd.f32 %v6702_v63, %v3375_v60  ;;  %v6715_v8 = vadd.f32 %v6702_v63, %v3376_v32  ;;  %v6718_v12 = vadd.f32 %v6702_v63, %v3377_v27 }
 0x7b0   : > { %v6775_v23 = vadd.f32 %v6702_v63, %v3378_v39  ;;  %v6781_v7 = vadd.f32 %v6702_v63, %v3379_v4 }
 0x7b1   : > { %v6721_v38 = vmul.f32 0.70710677, %v6709_v6  ;;  %v6724_v46 = vmul.f32 0.70710677, %v6712_v59  ;;  %v6727_v34 = vmul.f32 0.70710677, %v6715_v8 }
 0x7b2   : > { %v6730_v16 = vmul.f32 0.70710677, %v6718_v12 }
 0x7b3   : > { %v3409_v36 = vmul.f32 %v6721_v38, %v6721_v38  ;;  %v3449_v51 = vmul.f32 %v6724_v46, %v6724_v46  ;;  %v3489_v52 = vmul.f32 %v6727_v34, %v6727_v34 }
 0x7b4   : > { %v3529_v17 = vmul.f32 %v6730_v16, %v6730_v16 }
 0x7b5   : > { %v6745_v56 = vmin.f32 %v3409_v36, 16.0  ;;  %v6747_v35 = vmin.f32 %v3449_v51, 16.0  ;;  %v6750_v37 = vmin.f32 %v3489_v52, 16.0  ;;  %v3369_v51 = vmul.f32 %v6693_v2, %v3347_v18 }
 0x7b6   : > { %v6752_v44 = vmin.f32 %v3529_v17, 16.0  ;;  %v6797_v18 = vmul.f32 0.70710677, %v6781_v7 }
 0x7b7   : > { %v3411_v1 = vmul.f32 2.1237322e-06, %v6745_v56  ;;  %v3422_v55 = vmul.f32 3.8918573e-05, %v6745_v56  ;;  %v3451_v15 = vmul.f32 2.1237322e-06, %v6747_v35 }
 0x7b8   : > { %v3462_v9 = vmul.f32 3.8918573e-05, %v6747_v35  ;;  %v3491_v20 = vmul.f32 2.1237322e-06, %v6750_v37  ;;  %v3502_v0 = vmul.f32 3.8918573e-05, %v6750_v37  ;;  %v3609_v30 = vmul.f32 %v6797_v18, %v6797_v18 }
 0x7b9   : > { %v3412_v57 = vadd.f32 0.00028619796, %v3411_v1  ;;  %v3423_v25 = vadd.f32 0.001143296, %v3422_v55  ;;  %v3452_v11 = vadd.f32 0.00028619796, %v3451_v15 }
 0x7ba   : > { %v3463_v21 = vadd.f32 0.001143296, %v3462_v9  ;;  %v3492_v58 = vadd.f32 0.00028619796, %v3491_v20  ;;  %v3503_v61 = vadd.f32 0.001143296, %v3502_v0 }
 0x7bb   : > { %v3413_v31 = vmul.f32 %v3412_v57, %v6745_v56  ;;  %v3424_v62 = vmul.f32 %v3423_v25, %v6745_v56  ;;  %v3453_v29 = vmul.f32 %v3452_v11, %v6747_v35  ;;  %v3531_v41 = vmul.f32 2.1237322e-06, %v6752_v44 }
 0x7bc   : > { %v3464_v22 = vmul.f32 %v3463_v21, %v6747_v35  ;;  %v3493_v3 = vmul.f32 %v3492_v58, %v6750_v37  ;;  %v3504_v50 = vmul.f32 %v3503_v61, %v6750_v37  ;;  %v3542_v45 = vmul.f32 3.8918573e-05, %v6752_v44 }
 0x7bd   : > { %v3414_v53 = vadd.f32 0.0036580483, %v3413_v31  ;;  %v3425_v26 = vadd.f32 0.014752088, %v3424_v62  ;;  %v3454_v40 = vadd.f32 0.0036580483, %v3453_v29  ;;  %v3380_v58 = vmul.f32 %v6691_v13, %v3369_v51 }
 0x7be   : > { %v3465_v24 = vadd.f32 0.014752088, %v3464_v22  ;;  %v3494_v43 = vadd.f32 0.0036580483, %v3493_v3  ;;  %v3505_v42 = vadd.f32 0.014752088, %v3504_v50 }
 0x7bf   : > { %v3415_v5 = vmul.f32 %v3414_v53, %v6745_v56  ;;  %v3426_v14 = vmul.f32 %v3425_v26, %v6745_v56  ;;  %v3455_v47 = vmul.f32 %v3454_v40, %v6747_v35  ;;  %v3532_v49 = vadd.f32 0.00028619796, %v3531_v41 }
 0x7c0   : > { %v3466_v19 = vmul.f32 %v3465_v24, %v6747_v35  ;;  %v3506_v48 = vmul.f32 %v3505_v42, %v6750_v37  ;;  %v3543_v60 = vadd.f32 0.001143296, %v3542_v45  ;;  %v3495_v28 = vmul.f32 %v3494_v43, %v6750_v37 }
 0x7c1   : > { %v3416_v32 = vadd.f32 0.05243302, %v3415_v5  ;;  %v3427_v27 = vadd.f32 0.112945676, %v3426_v14  ;;  %v3533_v36 = vmul.f32 %v3532_v49, %v6752_v44  ;;  %v3456_v1 = vadd.f32 0.05243302, %v3455_v47 }
 0x7c2   : > { %v3467_v33 = vadd.f32 0.112945676, %v3466_v19  ;;  %v3507_v52 = vadd.f32 0.112945676, %v3506_v48  ;;  %v3544_v17 = vmul.f32 %v3543_v60, %v6752_v44  ;;  %v6792_v15 = vmul.f32 0.70710677, %v6775_v23 }
 0x7c3   : > { %v3428_v54 = vmul.f32 %v3427_v27, %v6745_v56  ;;  %v3534_v55 = vadd.f32 0.0036580483, %v3533_v36  ;;  %v3417_v39 = vmul.f32 %v3416_v32, %v6745_v56  ;;  %v3496_v25 = vadd.f32 0.05243302, %v3495_v28 }
 0x7c4   : > { %v3468_v9 = vmul.f32 %v3467_v33, %v6747_v35  ;;  %v3508_v20 = vmul.f32 %v3507_v52, %v6750_v37  ;;  %v3545_v0 = vadd.f32 0.014752088, %v3544_v17  ;;  %v3457_v31 = vmul.f32 %v3456_v1, %v6747_v35 }
 0x7c5   : > { %v3429_v57 = vadd.f32 0.4994258, %v3428_v54  ;;  %v3535_v4 = vmul.f32 %v3534_v55, %v6752_v44  ;;  %v3569_v22 = vmul.f32 %v6792_v15, %v6792_v15  ;;  %v3418_v3 = vadd.f32 0.18741608, %v3417_v39 }
 0x7c6   : > { %v3469_v2 = vadd.f32 0.4994258, %v3468_v9  ;;  %v3509_v11 = vadd.f32 0.4994258, %v3508_v20  ;;  %v3546_v21 = vmul.f32 %v3545_v0, %v6752_v44  ;;  %v3497_v45 = vmul.f32 %v3496_v25, %v6750_v37 }
 0x7c7   : > { %v3430_v61 = vmul.f32 %v3429_v57, %v6745_v56  ;;  %v3381_v53 = vmul.f32 %v6691_v13, %v3370_v10  ;;  %v3536_v40 = vadd.f32 0.05243302, %v3535_v4  ;;  %v6818_v24 = vadd.f32 %v6702_v63, %v3380_v58 }
 0x7c8   : > { %v3470_v62 = vmul.f32 %v3469_v2, %v6747_v35  ;;  %v3510_v29 = vmul.f32 %v3509_v11, %v6750_v37  ;;  %v3547_v41 = vadd.f32 0.112945676, %v3546_v21  ;;  %v3458_v43 = vadd.f32 0.18741608, %v3457_v31 }
 0x7c9   : > { %v6809_v50 = vadd.f32 1.0, %v3430_v61  ;;  %v6825_v14 = vmin.f32 %v3569_v22, 16.0  ;;  %v3419_v47 = vmul.f32 %v3418_v3, %v6745_v56  ;;  %v3498_v13 = vadd.f32 0.18741608, %v3497_v45 }
 0x7ca   : > { %v6815_v26 = vadd.f32 1.0, %v3470_v62  ;;  %v6822_v42 = vadd.f32 1.0, %v3510_v29  ;;  %v3548_v5 = vmul.f32 %v3547_v41, %v6752_v44  ;;  %v6828_v49 = vmin.f32 %v3609_v30, 16.0 }
 0x7cb   : > { %4965 = vrcp.f32 %v6809_v50  ;;  %v6831_v19 = vadd.f32 %v6702_v63, %v3381_v53  ;;  %v6834_v48 = vmul.f32 0.5, %v6709_v6  ;;  %v6837_v60 = vmul.f32 0.5, %v6712_v59 }
 0x7cc   : > { %4967 = vrcp.f32 %v6815_v26  ;;  %v3537_v32 = vmul.f32 %v3536_v40, %v6752_v44  ;;  %v6841_v27 = vmul.f32 0.5, %v6715_v8  ;;  %v6844_v28 = vmul.f32 0.5, %v6718_v12 }
 0x7cd   : > { %v6847_v56 = vmul.f32 0.5, %v6775_v23  ;;  %v3459_v63 = vmul.f32 %v3458_v43, %v6747_v35  ;;  %v6851_v36 = vmul.f32 0.70710677, %v6818_v24  ;;  %4969 = vrcp.f32 %v6822_v42 }
 0x7ce   : > { %v3549_v6 = vadd.f32 0.4994258, %v3548_v5  ;;  %v3571_v59 = vmul.f32 2.1237322e-06, %v6825_v14  ;;  %v3420_v8 = vadd.f32 1.1283791, %v3419_v47  ;;  %v3499_v33 = vmul.f32 %v3498_v13, %v6750_v37 }
 0x7cf   : > { %v3582_v12 = vmul.f32 3.8918573e-05, %v6825_v14  ;;  %v3611_v23 = vmul.f32 2.1237322e-06, %v6828_v49  ;;  %v3538_v17 = vadd.f32 0.18741608, %v3537_v32  ;;  %v3649_v4 = vmul.f32 %v6851_v36, %v6851_v36 }
 0x7d0   : > { %v3550_v10 = vmul.f32 %v3549_v6, %v6752_v44  ;;  %v3572_v54 = vadd.f32 0.00028619796, %v3571_v59  ;;  %v6866_v1 = vmul.f32 0.70710677, %v6831_v19  ;;  %v3460_v55 = vadd.f32 1.1283791, %v3459_v63 }
 0x7d1   : > { %v6855_v51 = vpop.eup %4965  ;;  %v3583_v9 = vadd.f32 0.001143296, %v3582_v12  ;;  %v3612_v57 = vadd.f32 0.00028619796, %v3611_v23  ;;  %v6874_v25 = vmul.f32 %v3420_v8, %v6721_v38  ;;  %v3443_v2 = vand.u32 2147483648, %v6809_v50 }
 0x7d2   : > { %v6860_v52 = vpop.eup %4967  ;;  %v3433_v35 = vmul.f32 %v6855_v51, %v6809_v50  ;;  %v6870_v0 = vadd.f32 1.0, %v3550_v10  ;;  %v3573_v39 = vmul.f32 %v3572_v54, %v6825_v14  ;;  %v3500_v11 = vadd.f32 1.1283791, %v3499_v33 }
 0x7d3   : > { %v3473_v37 = vmul.f32 %v6860_v52, %v6815_v26  ;;  %v6879_v21 = vpop.eup %4969  ;;  %vm3437_vm8 = vweird.f32 %v6809_v50  ;;  %v3441_v58 = vand.u32 2147483647, %v6809_v50  ;;  %v3539_v61 = vmul.f32 %v3538_v17, %v6752_v44 }
 0x7d4   : > { %v3434_v20 = vsub.f32 1.0, %v3433_v35  ;;  %4971 = vrcp.f32 %v6870_v0  ;;  %v6887_v38 = vmul.f32 %v3460_v55, %v6724_v46  ;;  %v3483_v29 = vand.u32 2147483648, %v6815_v26 }
 0x7d5   : > { %v3474_v62 = vsub.f32 1.0, %v3473_v37  ;;  %v3481_v41 = vand.u32 2147483647, %v6815_v26  ;;  %v3574_v22 = vadd.f32 0.0036580483, %v3573_v39  ;;  %v3584_v3 = vmul.f32 %v3583_v9, %v6825_v14 }
 0x7d6   : > { %v3435_v31 = vmul.f32 %v6855_v51, %v3434_v20  ;;  %v3613_v45 = vmul.f32 %v3612_v57, %v6828_v49  ;;  %v3444_v30 = vor.u32 1.1754944e-38, %v3443_v2  ;;  %vm3477_vm9 = vweird.f32 %v6815_v26 }
 0x7d7   : > { %v3513_v44 = vmul.f32 %v6879_v21, %v6822_v42  ;;  %v3521_v53 = vand.u32 2147483647, %v6822_v42  ;;  %v3523_v46 = vand.u32 2147483648, %v6822_v42  ;;  %vm6898_vm10 = vcmp.eq.f32.partialorder %v3441_v58, 8.507059e+37 }
 0x7d8   : > { %v6903_v43 = vmul.f32 %v3500_v11, %v6727_v34  ;;  %v3540_v5 = vadd.f32 1.1283791, %v3539_v61  ;;  %v3585_v47 = vadd.f32 0.014752088, %v3584_v3  ;;  %v3614_v13 = vadd.f32 0.0036580483, %v3613_v45 }
 0x7d9   : > { %v3436_v32 = vadd.f32 %v6855_v51, %v3435_v31  ;;  %vm3438_vm11 = vweird.f32 %v6855_v51  ;;  %v3475_v63 = vmul.f32 %v6860_v52, %v3474_v62  ;;  %v3484_v6 = vor.u32 1.1754944e-38, %v3483_v29 }
 0x7da   : > { %v6908_v59 = vpop.eup %4971  ;;  %v3575_v8 = vmul.f32 %v3574_v22, %v6825_v14  ;;  %v3586_v33 = vmul.f32 %v3585_v47, %v6825_v14  ;;  %v3622_v12 = vmul.f32 3.8918573e-05, %v6828_v49  ;;  %v6913_v34 = vmin.f32 %v3649_v4, 16.0  ;;  %vm6922_vm12 = vmor %vm3437_vm8, %vm3438_vm11 }
 0x7db   : > { %v3514_v23 = vsub.f32 1.0, %v3513_v44  ;;  %v6915_v35 = vor.u32 1.1754944e-38, %v3523_v46  ;;  %v3553_v17 = vmul.f32 %v6908_v59, %v6870_v0  ;;  %v3615_v10 = vmul.f32 %v3614_v13, %v6828_v49 }
 0x7dc   : > { %vm3478_vm13 = vweird.f32 %v6860_v52  ;;  %vm3518_vm14 = vweird.f32 %v6879_v21  ;;  %v6929_v55 = vmul.f32 %v3540_v5, %v6730_v16  ;;  %v3587_v37 = vadd.f32 0.112945676, %v3586_v33 }
 0x7dd   : > { %v3440_v9 = vsel %vm6922_vm12, %v6855_v51, %v3436_v32  ;;  %v3476_v20 = vadd.f32 %v6860_v52, %v3475_v63  ;;  %vm6935_vm15 = vcmp.eq.f32.partialorder %v3481_v41, 8.507059e+37  ;;  %vm3517_vm2 = vweird.f32 %v6822_v42  ;;  %vm6950_vm3 = vmor %vm3477_vm9, %vm3478_vm13 }
 0x7de   : > { %v3554_v39 = vsub.f32 1.0, %v3553_v17  ;;  %v3561_v57 = vand.u32 2147483647, %v6870_v0  ;;  %v3576_v2 = vadd.f32 0.05243302, %v3575_v8  ;;  %v3588_v16 = vmul.f32 %v3587_v37, %v6825_v14  ;;  %vm6991_vm7 = vmor %vm3517_vm2, %vm3518_vm14 }
 0x7df   : > { %v3623_v11 = vadd.f32 0.001143296, %v3622_v12  ;;  %v3651_v4 = vmul.f32 2.1237322e-06, %v6913_v34  ;;  %v3515_v58 = vmul.f32 %v6879_v21, %v3514_v23  ;;  %v3563_v51 = vand.u32 2147483648, %v6870_v0 }
 0x7e0   : > { %v3616_v61 = vadd.f32 0.05243302, %v3615_v10  ;;  %v3662_v31 = vmul.f32 3.8918573e-05, %v6913_v34  ;;  %v3555_v29 = vmul.f32 %v6908_v59, %v3554_v39  ;;  %v3589_v41 = vadd.f32 0.4994258, %v3588_v16 }
 0x7e1   : > { %v3624_v22 = vmul.f32 %v3623_v11, %v6828_v49  ;;  %v3652_v3 = vadd.f32 0.00028619796, %v3651_v4  ;;  %v3445_v45 = vsel %vm6898_vm10, %v3444_v30, %v3440_v9  ;;  %v3480_v44 = vsel %vm6950_vm3, %v6860_v52, %v3476_v20 }
 0x7e2   : > { %vm6961_vm1 = vcmp.eq.f32.partialorder %v3521_v53, 8.507059e+37  ;;  %v3663_v26 = vadd.f32 0.001143296, %v3662_v31  ;;  %v3689_v5 = vmul.f32 %v6866_v1, %v6866_v1  ;;  %v3577_v47 = vmul.f32 %v3576_v2, %v6825_v14 }
 0x7e3   : > { %v3590_v13 = vmul.f32 %v3589_v41, %v6825_v14  ;;  %v3625_v32 = vadd.f32 0.014752088, %v3624_v22  ;;  %v3653_v40 = vmul.f32 %v3652_v3, %v6913_v34  ;;  %v3516_v30 = vadd.f32 %v6879_v21, %v3515_v58 }
 0x7e4   : > { %vm3558_vm4 = vweird.f32 %v6908_v59  ;;  %v3617_v52 = vmul.f32 %v3616_v61, %v6828_v49  ;;  %v3664_v53 = vmul.f32 %v3663_v26, %v6913_v34  ;;  %v3556_v63 = vadd.f32 %v6908_v59, %v3555_v29 }
 0x7e5   : > { %v6975_v8 = vadd.f32 1.0, %v3590_v13  ;;  %v3626_v33 = vmul.f32 %v3625_v32, %v6828_v49  ;;  %v6978_v12 = vmin.f32 %v3689_v5, 16.0  ;;  %vm3557_vm5 = vweird.f32 %v6870_v0 }
 0x7e6   : > { %vm6981_vm6 = vcmp.eq.f32.partialorder %v3561_v57, 8.507059e+37  ;;  %v3654_v17 = vadd.f32 0.0036580483, %v3653_v40  ;;  %v3665_v10 = vadd.f32 0.014752088, %v3664_v53  ;;  %v3485_v54 = vsel %vm6935_vm15, %v3484_v6, %v3480_v44  ;;  %vm7002_vm8 = vmor %vm3557_vm5, %vm3558_vm4 }
 0x7e7   : > { %v3564_v9 = vor.u32 1.1754944e-38, %v3563_v51  ;;  %v3578_v20 = vadd.f32 0.18741608, %v3577_v47  ;;  %4973 = vrcp.f32 %v6975_v8  ;;  %v3446_v0 = vmul.f32 %v3445_v45, %v6874_v25 }
 0x7e8   : > { %v3520_v39 = vsel %vm6991_vm7, %v6879_v21, %v3516_v30  ;;  %v3627_v42 = vadd.f32 0.112945676, %v3626_v33  ;;  %v3655_v50 = vmul.f32 %v3654_v17, %v6913_v34  ;;  %v3560_v57 = vsel %vm7002_vm8, %v6908_v59, %v3556_v63 }
 0x7e9   : > { %v3618_v2 = vadd.f32 0.18741608, %v3617_v52  ;;  %v3666_v25 = vmul.f32 %v3665_v10, %v6913_v34  ;;  %v3691_v16 = vmul.f32 2.1237322e-06, %v6978_v12  ;;  %v3486_v21 = vmul.f32 %v3485_v54, %v6887_v38 }
 0x7ea   : > { %v3628_v11 = vmul.f32 %v3627_v42, %v6828_v49  ;;  %v3656_v4 = vadd.f32 0.05243302, %v3655_v50  ;;  %v3702_v58 = vmul.f32 3.8918573e-05, %v6978_v12  ;;  %v3525_v51 = vsel %vm6961_vm1, %v6915_v35, %v3520_v39 }
 0x7eb   : > { %v3579_v61 = vmul.f32 %v3578_v20, %v6825_v14  ;;  %v3667_v31 = vadd.f32 0.112945676, %v3666_v25  ;;  %v3692_v59 = vadd.f32 0.00028619796, %v3691_v16  ;;  %v3565_v62 = vsel %vm6981_vm6, %v3564_v9, %v3560_v57 }
 0x7ec   : > { %v3629_v29 = vadd.f32 0.4994258, %v3628_v11  ;;  %v3657_v41 = vmul.f32 %v3656_v4, %v6913_v34  ;;  %v3703_v38 = vadd.f32 0.001143296, %v3702_v58  ;;  %v4782_v3 = vclamps-f32 %v3446_v0, 1.0 }
 0x7ed   : > { %v4974_v22 = vpop.eup %4973  ;;  %v3619_v45 = vmul.f32 %v3618_v2, %v6828_v49  ;;  %v3668_v44 = vmul.f32 %v3667_v31, %v6913_v34  ;;  %v3693_v46 = vmul.f32 %v3692_v59, %v6978_v12  ;;  %v4783_v35 = vclamps-f32 %v3486_v21, 1.0 }
 0x7ee   : > { %v3526_v14 = vmul.f32 %v3525_v51, %v6903_v43  ;;  %v3593_v26 = vmul.f32 %v4974_v22, %v6975_v8  ;;  %v3630_v5 = vmul.f32 %v3629_v29, %v6828_v49  ;;  %v3566_v47 = vmul.f32 %v3565_v62, %v6929_v55 }
 0x7ef   : > { %v3580_v13 = vadd.f32 1.1283791, %v3579_v61  ;;  %v3669_v32 = vadd.f32 0.4994258, %v3668_v44  ;;  %v3704_v40 = vmul.f32 %v3703_v38, %v6978_v12  ;;  %v3658_v53 = vadd.f32 0.18741608, %v3657_v41 }
 0x7f0   : > { %v3594_v30 = vsub.f32 1.0, %v3593_v26  ;;  %v7030_v52 = vadd.f32 1.0, %v3630_v5  ;;  %v3694_v63 = vadd.f32 0.0036580483, %v3693_v46  ;;  %v3603_v33 = vand.u32 2147483648, %v6975_v8 }
 0x7f1   : > { %v3620_v23 = vadd.f32 1.1283791, %v3619_v45  ;;  %v3670_v43 = vmul.f32 %v3669_v32, %v6913_v34  ;;  %v3705_v17 = vadd.f32 0.014752088, %v3704_v40  ;;  %vm3598_vm9 = vweird.f32 %v4974_v22 }
 0x7f2   : > { %v3595_v10 = vmul.f32 %v4974_v22, %v3594_v30  ;;  %v3601_v49 = vand.u32 2147483647, %v6975_v8  ;;  %4975 = vrcp.f32 %v7030_v52  ;;  %v4784_v55 = vclamps-f32 %v3526_v14, 1.0  ;;  %v4809_v30 = vld [vmem:[%s7349_s10 + $0x10] sm:$0xf] }
 0x7f3   : > { %v3581_v54 = vmul.f32 %v3580_v13, %v6792_v15  ;;  %vm3597_vm10 = vweird.f32 %v6975_v8  ;;  %v7038_v37 = vadd.f32 1.0, %v3670_v43  ;;  %v3659_v20 = vmul.f32 %v3658_v53, %v6913_v34 }
 0x7f4   : > { %v3596_v9 = vadd.f32 %v4974_v22, %v3595_v10  ;;  %v3695_v0 = vmul.f32 %v3694_v63, %v6978_v12  ;;  %v3706_v39 = vmul.f32 %v3705_v17, %v6978_v12  ;;  %v4785_v6 = vclamps-f32 %v3566_v47, 1.0  ;;  %vm3599_vm11 = vmor %vm3597_vm10, %vm3598_vm9  ;;  %v4804_v47 = vld [vmem:[%s7349_s10 + $0xc] sm:$0xf] }
 0x7f5   : > { %v3604_v42 = vor.u32 1.1754944e-38, %v3603_v33  ;;  %v3643_v50 = vand.u32 2147483648, %v7030_v52  ;;  %4977 = vrcp.f32 %v7038_v37  ;;  %vm3602_vm12 = vcmp.eq.f32.partialorder %v3601_v49, 8.507059e+37 }
 0x7f6   : > { %v3600_v57 = vsel %vm3599_vm11, %v4974_v22, %v3596_v9  ;;  %v7046_v15 = vmul.f32 %v3620_v23, %v6797_v18  ;;  %v3729_v8 = vadd.f32 1.0, %v4782_v3  ;;  %v3707_v25 = vadd.f32 0.112945676, %v3706_v39  ;;  %v3870_v39 = vld [vmem:[#allocation3 + $0x2] sm:$0xff] }
 0x7f7   : > { %v3605_v2 = vsel %vm3602_vm12, %v3604_v42, %v3600_v57  ;;  %v3730_v34 = vadd.f32 1.0, %v4783_v35  ;;  %v3731_v16 = vadd.f32 1.0, %v4784_v55  ;;  %v3641_v4 = vand.u32 2147483647, %v7030_v52  ;;  %v4790_v35 = vld [vmem:[%s7349_s10 + $0x4] sm:$0xf] }
 0x7f8   : > { %v4976_v21 = vpop.eup %4975  ;;  %v3606_v11 = vmul.f32 %v3605_v2, %v3581_v54  ;;  %v3660_v58 = vadd.f32 1.1283791, %v3659_v20  ;;  %v3696_v51 = vadd.f32 0.05243302, %v3695_v0  ;;  %v3644_v31 = vor.u32 1.1754944e-38, %v3643_v50  ;;  %v3754_v54 = vld [vmem:[#allocation3] sm:$0xff] }
 0x7f9   : > { %v3633_v61 = vmul.f32 %v4976_v21, %v7030_v52  ;;  %v3708_v59 = vmul.f32 %v3707_v25, %v6978_v12  ;;  %v3732_v62 = vadd.f32 1.0, %v4785_v6  ;;  %v3683_v18 = vand.u32 2147483648, %v7038_v37 }
 0x7fa   : > { %v4786_v29 = vclamps-f32 %v3606_v11, 1.0  ;;  %v3737_v41 = vmul.f32 %v3729_v8, %v6834_v48  ;;  %v3738_v38 = vmul.f32 %v3730_v34, %v6837_v60  ;;  %v3739_v44 = vmul.f32 %v3731_v16, %v6841_v27  ;;  %v3766_v27 = vld [vmem:[%s7349_s10] sm:$0xf] }
 0x7fb   : > { %v7054_v22 = vpop.eup %4977  ;;  %v3634_v3 = vsub.f32 1.0, %v3633_v61  ;;  %v3709_v45 = vadd.f32 0.4994258, %v3708_v59  ;;  %v3740_v46 = vmul.f32 %v3732_v62, %v6844_v28  ;;  %vm3637_vm13 = vweird.f32 %v7030_v52  ;;  %v4799_v28 = vld [vmem:[%s7349_s10 + $0x8] sm:$0xf] }
 0x7fc   : > { %v3673_v14 = vmul.f32 %v7054_v22, %v7038_v37  ;;  %v3697_v48 = vmul.f32 %v3696_v51, %v6978_v12  ;;  %v3733_v60 = vadd.f32 1.0, %v4786_v29  ;;  %3746 = vst.msk [vmem:[#allocation3 + $0x11] sm:$0xff] %vm503_vm0, %v3737_v41  ;;  %vm3638_vm14 = vweird.f32 %v4976_v21  ;;  %v3767_v52 = vld [vmem:[#allocation3 + $0x1] sm:$0xff] }
 0x7fd   : > { %v3635_v26 = vmul.f32 %v4976_v21, %v3634_v3  ;;  %v3710_v5 = vmul.f32 %v3709_v45, %v6978_v12  ;;  %3747 = vst.msk [vmem:[#allocation3 + $0x21] sm:$0xff] %vm503_vm0, %v3738_v38  ;;  %vm3793_vm15 = vcmask 1043456   ;;  %vm3678_vm2 = vweird.f32 %v7054_v22  ;;  %vm7092_vm3 = vmor %vm3637_vm13, %vm3638_vm14 }
 0x7fe   : > { %v3674_v13 = vsub.f32 1.0, %v3673_v14  ;;  %v3741_v32 = vmul.f32 %v3733_v60, %v6847_v56  ;;  %3748 = vst.msk [vmem:[#allocation3 + $0x31] sm:$0xff] %vm503_vm0, %v3739_v44  ;;  %v3795_v40 = vsel %vm3793_vm15, %v4790_v35, 0  ;;  %v3839_v33 = vsel %vm3793_vm15, %v3766_v27, 0  ;;  %v4819_v56 = vld [vmem:[%s7349_s10 + $0x18] sm:$0xf] }
 0x7ff   : > { %v3636_v53 = vadd.f32 %v4976_v21, %v3635_v26  ;;  %v7084_v63 = vadd.f32 1.0, %v3710_v5  ;;  %3749 = vst.msk [vmem:[#allocation3 + $0x41] sm:$0xff] %vm503_vm0, %v3740_v46  ;;  %3804 = vmatpush.bf16.msra.mxu3 %v3795_v40  ;;  %v3897_v23 = vsel %vm3793_vm15, %v4799_v28, 0  ;;  %v3681_v17 = vand.u32 2147483647, %v7038_v37  ;;  %3848 = vmatpush.bf16.msrb.mxu0 %v3839_v33 }
 0x800   : > { %v3675_v43 = vmul.f32 %v7054_v22, %v3674_v13  ;;  %3750 = vst.msk [vmem:[#allocation3 + $0x51] sm:$0xff] %vm503_vm0, %v3741_v32  ;;  %3906 = vmatpush.bf16.msrb.mxu1 %v3897_v23  ;;  %v3963_v10 = vsel %vm3793_vm15, %v4804_v47, 0  ;;  %v4029_v49 = vsel %vm3793_vm15, %v4809_v30, 0  ;;  %vm3642_vm1 = vcmp.eq.f32.partialorder %v3641_v4, 8.507059e+37  ;;  %v4814_v23 = vld [vmem:[%s7349_s10 + $0x14] sm:$0xf] }
 0x801   : > { %v3640_v55 = vsel %vm7092_vm3, %v4976_v21, %v3636_v53  ;;  %vm3677_vm4 = vweird.f32 %v7038_v37  ;;  %4979 = vrcp.f32 %v7084_v63  ;;  %3972 = vmatpush.bf16.msrb.mxu2 %v3963_v10  ;;  %v3661_v37 = vmul.f32 %v3660_v58, %v6851_v36 }
 0x802   : > { %v3645_v9 = vsel %vm3642_vm1, %v3644_v31, %v3640_v55  ;;  %v3676_v20 = vadd.f32 %v7054_v22, %v3675_v43  ;;  %vm7108_vm5 = vmor %vm3677_vm4, %vm3678_vm2  ;;  %v3684_v42 = vor.u32 1.1754944e-38, %v3683_v18  ;;  %v3698_v50 = vadd.f32 0.18741608, %v3697_v48 }
 0x803   : > { %4038 = vmatpush.bf16.msrb.mxu3 %v4029_v49  ;;  %v3646_v6 = vmul.f32 %v3645_v9, %v7046_v15  ;;  %v7114_v57 = vld [vmem:[#allocation3 + $0x11] sm:$0xff]  ;;  %vm3682_vm6 = vcmp.eq.f32.partialorder %v3681_v17, 8.507059e+37  ;;  %v3398_v61 = vmul.f32 0.5, %v6781_v7  ;;  %v3399_v41 = vmul.f32 0.5, %v6818_v24 }
 0x804   : > { %v3755_v8 = vld [vmem:[#allocation3 + $0x10] sm:$0xff]  ;;  %v3680_v25 = vsel %vm7108_vm5, %v7054_v22, %v3676_v20  ;;  %v3775_v34 = vpack.c.bf16 %v7114_v57, %v3767_v52  ;;  %v3937_v21 = vld [vmem:[#allocation3 + $0x20] sm:$0xff]  ;;  %v3699_v31 = vmul.f32 %v3698_v50, %v6978_v12  ;;  %v3723_v45 = vand.u32 2147483648, %v7084_v63 }
 0x805   : > { %v7116_v2 = vld [vmem:[#allocation3 + $0x12] sm:$0xff]  ;;  %v3762_v16 = vpack.c.bf16 %v3755_v8, %v3754_v54  ;;  %v4787_v11 = vclamps-f32 %v3646_v6, 1.0  ;;  %v3685_v15 = vsel %vm3682_vm6, %v3684_v42, %v3680_v25  ;;  %v3944_v4 = vpack.c.bf16 %v3937_v21, %v3755_v8  ;;  %v7137_v60 = vld [vmem:[#allocation3 + $0x21] sm:$0xff] }
 0x806   : > { %v3878_v36 = vpack.c.bf16 %v7116_v2, %v3870_v39  ;;  %v3686_v58 = vmul.f32 %v3685_v15, %v3661_v37  ;;  %4791 = vmatmul.msk.bf16.vlgmr.msra.gmra.mxu3 %vm503_vm0, %v3775_v34  ;;  %v3700_v3 = vadd.f32 1.1283791, %v3699_v31  ;;  %v3721_v12 = vand.u32 2147483647, %v7084_v63  ;;  %v7139_v27 = vld [vmem:[#allocation3 + $0x31] sm:$0xff]  ;;  %v3872_v5 = vld [vmem:[#allocation3 + $0x22] sm:$0xff] }
 0x807   : > { %4795 = vmatmul.msk.bf16.vlgmr.msrb.gmra.mxu0 %vm503_vm0, %v3762_v16  ;;  %v4980_v51 = vpop.eup %4979  ;;  %v3734_v59 = vadd.f32 1.0, %v4787_v11  ;;  %4805 = vmatmul.msk.bf16.vlgmr.msrb.gmra.mxu2 %vm503_vm0, %v3944_v4  ;;  %vm3717_vm8 = vweird.f32 %v7084_v63  ;;  %v3724_v35 = vor.u32 1.1754944e-38, %v3723_v45  ;;  %v3757_v28 = vld [vmem:[#allocation3 + $0x30] sm:$0xff]  ;;  %v3939_v13 = vld [vmem:[#allocation3 + $0x40] sm:$0xff]  ;;  %v3776_v40 = vpack.c.bf16 %v7139_v27, %v7137_v60 }
 0x808   : > { %4800 = vmatmul.msk.bf16.vlgmr.msrb.gmra.mxu1 %vm503_vm0, %v3878_v36  ;;  %v4788_v62 = vclamps-f32 %v3686_v58, 1.0  ;;  %v3713_v29 = vmul.f32 %v4980_v51, %v7084_v63  ;;  %vm3718_vm7 = vweird.f32 %v4980_v51  ;;  %v3701_v24 = vmul.f32 %v3700_v3, %v6866_v1  ;;  %v7141_v47 = vld [vmem:[#allocation3 + $0x32] sm:$0xff]  ;;  %v3771_v55 = vld [vmem:[#allocation3 + $0x41] sm:$0xff] }
 0x809   : > { %v3742_v18 = vmul.f32 %v3734_v59, %v3398_v61  ;;  %vm3719_vm9 = vmor %vm3717_vm8, %vm3718_vm7  ;;  %vm3722_vm10 = vcmp.eq.f32.partialorder %v3721_v12, 8.507059e+37  ;;  %v3763_v30 = vpack.c.bf16 %v3757_v28, %v3937_v21  ;;  %v7146_v1 = vpack.c.bf16 %v7141_v47, %v3872_v5  ;;  %v3772_v52 = vld [vmem:[#allocation3 + $0x51] sm:$0xff]  ;;  %v3874_v9 = vld [vmem:[#allocation3 + $0x42] sm:$0xff] }
 0x80a   : > { %v3714_v38 = vsub.f32 1.0, %v3713_v29  ;;  %v3735_v22 = vadd.f32 1.0, %v4788_v62  ;;  %v3945_v53 = vpack.c.bf16 %v3939_v13, %v3757_v28  ;;  %v3400_v63 = vmul.f32 0.5, %v6831_v19  ;;  %v4824_v19 = vld [vmem:[%s7349_s10 + $0x1c] sm:$0xf]  ;;  %v3759_v54 = vld [vmem:[#allocation3 + $0x50] sm:$0xff] }
 0x80b   : > { %3751 = vst.msk [vmem:[#allocation3 + $0x61] sm:$0xff] %vm503_vm0, %v3742_v18  ;;  %v4095_v17 = vsel %vm3793_vm15, %v4814_v23, 0  ;;  %v4162_v10 = vsel %vm3793_vm15, %v4819_v56, 0  ;;  %v4228_v49 = vsel %vm3793_vm15, %v4824_v19, 0  ;;  %v3875_v20 = vld [vmem:[#allocation3 + $0x52] sm:$0xff]  ;;  %v3777_v39 = vpack.c.bf16 %v3772_v52, %v3771_v55 }
 0x80c   : > { %v3715_v7 = vmul.f32 %v4980_v51, %v3714_v38  ;;  %v3743_v44 = vmul.f32 %v3735_v22, %v3399_v41  ;;  %4104 = vmatpush.bf16.msra.mxu0 %v4095_v17  ;;  %4171 = vmatpush.bf16.msra.mxu1 %v4162_v10  ;;  %v3764_v6 = vpack.c.bf16 %v3759_v54, %v3939_v13  ;;  %v4829_v50 = vld [vmem:[%s7349_s10 + $0x20] sm:$0xf]  ;;  %v4142_v41 = vld [vmem:[#allocation3 + $0x90] sm:$0xff] }
 0x80d   : > { %4237 = vmatpush.bf16.msra.mxu2 %v4228_v49  ;;  %v7167_v37 = vpack.c.bf16 %v3875_v20, %v3874_v9  ;;  %v4294_v8 = vsel %vm3793_vm15, %v4829_v50, 0  ;;  %v4010_v61 = vpack.c.bf16 %v7137_v60, %v7114_v57  ;;  %v4076_v31 = vpack.c.bf16 %v3872_v5, %v7116_v2  ;;  %v4208_v38 = vld [vmem:[#allocation3 + $0x91] sm:$0xff] }
 0x80e   : > { %v3716_v46 = vadd.f32 %v4980_v51, %v3715_v7  ;;  %3752 = vst.msk [vmem:[#allocation3 + $0x71] sm:$0xff] %vm503_vm0, %v3743_v44  ;;  %4303 = vmatpush.bf16.msra.mxu3 %v4294_v8  ;;  %v4011_v59 = vpack.c.bf16 %v3771_v55, %v7139_v27  ;;  %v4077_v62 = vpack.c.bf16 %v3874_v9, %v7141_v47 }
 0x810   : > { %v3720_v14 = vsel %vm3719_vm9, %v4980_v51, %v3716_v46 }
 0x811   : > { %v3725_v48 = vsel %vm3722_vm10, %v3724_v35, %v3720_v14 }
 0x812   : > { %v3726_v26 = vmul.f32 %v3725_v48, %v3701_v24  ;;  %v3941_v0 = vld [vmem:[#allocation3 + $0x60] sm:$0xff] }
 0x813   : > { %v3946_v42 = vpack.c.bf16 %v3941_v0, %v3759_v54  ;;  %v3773_v25 = vld [vmem:[#allocation3 + $0x61] sm:$0xff] }
 0x814   : > { %v4789_v32 = vclamps-f32 %v3726_v26, 1.0  ;;  %v3876_v21 = vld [vmem:[#allocation3 + $0x62] sm:$0xff]  ;;  %v4012_v57 = vpack.c.bf16 %v3773_v25, %v3772_v52 }
 0x815   : > { %v3774_v34 = vld [vmem:[#allocation3 + $0x71] sm:$0xff]  ;;  %v4078_v2 = vpack.c.bf16 %v3876_v21, %v3875_v20 }
 0x816   : > { %v3736_v33 = vadd.f32 1.0, %v4789_v32  ;;  %4792 = vmatmul.msk.bf16.gmra.mxu3 %vm503_vm0, %v3776_v40  ;;  %v3761_v16 = vld [vmem:[#allocation3 + $0x70] sm:$0xff]  ;;  %v3778_v36 = vpack.c.bf16 %v3774_v34, %v3773_v25 }
 0x817   : > { %4796 = vmatmul.msk.bf16.gmra.mxu0 %vm503_vm0, %v3763_v30  ;;  %4806 = vmatmul.msk.bf16.gmra.mxu2 %vm503_vm0, %v3945_v53  ;;  %v3877_v11 = vld [vmem:[#allocation3 + $0x72] sm:$0xff]  ;;  %v3765_v4 = vpack.c.bf16 %v3761_v16, %v3941_v0 }
 0x818   : > { %4801 = vmatmul.msk.bf16.gmra.mxu1 %vm503_vm0, %v7146_v1  ;;  %v3744_v43 = vmul.f32 %v3736_v33, %v3400_v63  ;;  %v7178_v58 = vpack.c.bf16 %v3877_v11, %v3876_v21 }
 0x81a   : > { %3753 = vst.msk [vmem:[#allocation3 + $0x81] sm:$0xff] %vm503_vm0, %v3744_v43 }
 0x821   : > { %v3943_v15 = vld [vmem:[#allocation3 + $0x80] sm:$0xff] }
 0x822   : > { %v3947_v51 = vpack.c.bf16 %v3943_v15, %v3761_v16  ;;  %v4009_v29 = vld [vmem:[#allocation3 + $0x81] sm:$0xff]  ;;  %v4146_v45 = vpack.c.bf16 %v4142_v41, %v3943_v15 }
 0x823   : > { %v4075_v18 = vld [vmem:[#allocation3 + $0x82] sm:$0xff]  ;;  %v4013_v22 = vpack.c.bf16 %v4009_v29, %v3774_v34  ;;  %v4212_v7 = vpack.c.bf16 %v4208_v38, %v4009_v29 }
 0x824   : > { %v4079_v3 = vpack.c.bf16 %v4075_v18, %v3877_v11 }
 0x826   : > { %4793 = vmatmul.msk.bf16.gmra.mxu3 %vm503_vm0, %v3777_v39 }
 0x827   : > { %4797 = vmatmul.msk.bf16.gmra.mxu0 %vm503_vm0, %v3764_v6  ;;  %4807 = vmatmul.msk.bf16.gmra.mxu2 %vm503_vm0, %v3946_v42  ;;  %v4274_v42 = vld [vmem:[#allocation3 + $0x92] sm:$0xff] }
 0x828   : > { %4802 = vmatmul.msk.bf16.gmra.mxu1 %vm503_vm0, %v7167_v37  ;;  %v4278_v34 = vpack.c.bf16 %v4274_v42, %v4075_v18 }
 0x836   : > { %4794 = vmatmul.msk.bf16.gmra.mxu3 %vm503_vm0, %v3778_v36 }
 0x837   : > { %4798 = vmatmul.msk.bf16.gmra.mxu0 %vm503_vm0, %v3765_v4  ;;  %4808 = vmatmul.msk.bf16.gmra.mxu2 %vm503_vm0, %v3947_v51 }
 0x838   : > { %4803 = vmatmul.msk.bf16.gmra.mxu1 %vm503_vm0, %v7178_v58 }
 0x846   : > { %4810 = vmatmul.msk.bf16.vlgmr.msrb.gmra.mxu3 %vm503_vm0, %v4010_v61 }
 0x847   : > { %4815 = vmatmul.msk.bf16.vlgmr.msra.gmra.mxu0 %vm503_vm0, %v4076_v31  ;;  %4825 = vmatmul.msk.bf16.vlgmr.msra.gmra.mxu2 %vm503_vm0, %v3776_v40 }
 0x848   : > { %4820 = vmatmul.msk.bf16.vlgmr.msra.gmra.mxu1 %vm503_vm0, %v3763_v30 }
 0x856   : > { %4811 = vmatmul.msk.bf16.gmra.mxu3 %vm503_vm0, %v4011_v59 }
 0x857   : > { %4816 = vmatmul.msk.bf16.gmra.mxu0 %vm503_vm0, %v4077_v62  ;;  %4826 = vmatmul.msk.bf16.gmra.mxu2 %vm503_vm0, %v3777_v39 }
 0x858   : > { %4821 = vmatmul.msk.bf16.gmra.mxu1 %vm503_vm0, %v3764_v6 }
 0x866   : > { %4812 = vmatmul.msk.bf16.gmra.mxu3 %vm503_vm0, %v4012_v57 }
 0x867   : > { %4817 = vmatmul.msk.bf16.gmra.mxu0 %vm503_vm0, %v4078_v2  ;;  %4827 = vmatmul.msk.bf16.gmra.mxu2 %vm503_vm0, %v3778_v36 }
 0x868   : > { %4822 = vmatmul.msk.bf16.gmra.mxu1 %vm503_vm0, %v3765_v4 }
 0x876   : > { %4813 = vmatmul.msk.bf16.gmra.mxu3 %vm503_vm0, %v4013_v22 }
 0x877   : > { %4818 = vmatmul.msk.bf16.gmra.mxu0 %vm503_vm0, %v4079_v3  ;;  %4828 = vmatmul.msk.bf16.gmra.mxu2 %vm503_vm0, %v4212_v7 }
 0x878   : > { %4823 = vmatmul.msk.bf16.gmra.mxu1 %vm503_vm0, %v4146_v45 }
 0x884   : > { %v3850_v12 = vpop.f32.mrf.mxu0 }
 0x885   : > { %v3908_v44 = vpop.f32.mrf.mxu1 }
 0x886   : > { %4830 = vmatmul.msk.bf16.vlgmr.msra.gmra.mxu3 %vm503_vm0, %v7146_v1 }
 0x889   : > { %v3806_v46 = vpop.f32.mrf.mxu3 }
 0x88a   : > { %v3851_v35 = vadd.f32 %v3850_v12, %v3806_v46  ;;  %v3974_v24 = vpop.f32.mrf.mxu2 }
 0x88c   : > { %v3852_v14 = vpop.f32.mrf.mxu0  ;;  %v3928_v48 = vadd.f32 %v3908_v44, %v3851_v35 }
 0x88d   : > { %v3910_v60 = vpop.f32.mrf.mxu1 }
 0x88e   : > { %v3994_v27 = vadd.f32 %v3974_v24, %v3928_v48 }
 0x891   : > { %v3808_v28 = vpop.f32.mrf.mxu3 }
 0x892   : > { %v3853_v26 = vadd.f32 %v3852_v14, %v3808_v28  ;;  %v3976_v5 = vpop.f32.mrf.mxu2 }
 0x894   : > { %v3855_v47 = vpop.f32.mrf.mxu0  ;;  %v3929_v13 = vadd.f32 %v3910_v60, %v3853_v26 }
 0x895   : > { %v3913_v32 = vpop.f32.mrf.mxu1 }
 0x896   : > { %v3995_v40 = vadd.f32 %v3976_v5, %v3929_v13  ;;  %4831 = vmatmul.msk.bf16.gmra.mxu3 %vm503_vm0, %v7167_v37 }
 0x899   : > { %v3811_v30 = vpop.f32.mrf.mxu3 }
 0x89a   : > { %v3856_v53 = vadd.f32 %v3855_v47, %v3811_v30  ;;  %v3979_v1 = vpop.f32.mrf.mxu2 }
 0x89c   : > { %v3930_v63 = vadd.f32 %v3913_v32, %v3856_v53  ;;  %v3857_v33 = vpop.f32.mrf.mxu0 }
 0x89d   : > { %v3915_v56 = vpop.f32.mrf.mxu1 }
 0x89e   : > { %v3996_v23 = vadd.f32 %v3979_v1, %v3930_v63 }
 0x8a1   : > { %v3813_v19 = vpop.f32.mrf.mxu3 }
 0x8a2   : > { %v3858_v43 = vadd.f32 %v3857_v33, %v3813_v19  ;;  %v3981_v17 = vpop.f32.mrf.mxu2 }
 0x8a4   : > { %v3931_v10 = vadd.f32 %v3915_v56, %v3858_v43  ;;  %v3860_v55 = vpop.f32.mrf.mxu0 }
 0x8a5   : > { %v3918_v52 = vpop.f32.mrf.mxu1 }
 0x8a6   : > { %v3997_v49 = vadd.f32 %v3981_v17, %v3931_v10  ;;  %4832 = vmatmul.msk.bf16.gmra.mxu3 %vm503_vm0, %v7178_v58 }
 0x8a9   : > { %v3816_v54 = vpop.f32.mrf.mxu3 }
 0x8aa   : > { %v3861_v9 = vadd.f32 %v3860_v55, %v3816_v54  ;;  %v3984_v20 = vpop.f32.mrf.mxu2 }
 0x8ac   : > { %v3932_v0 = vadd.f32 %v3918_v52, %v3861_v9  ;;  %v3862_v6 = vpop.f32.mrf.mxu0 }
 0x8ad   : > { %v3920_v8 = vpop.f32.mrf.mxu1 }
 0x8ae   : > { %v3998_v39 = vadd.f32 %v3984_v20, %v3932_v0 }
 0x8b1   : > { %v3818_v37 = vpop.f32.mrf.mxu3 }
 0x8b2   : > { %v3863_v50 = vadd.f32 %v3862_v6, %v3818_v37  ;;  %v3986_v16 = vpop.f32.mrf.mxu2 }
 0x8b4   : > { %v3933_v25 = vadd.f32 %v3920_v8, %v3863_v50  ;;  %v3865_v59 = vpop.f32.mrf.mxu0 }
 0x8b5   : > { %v3923_v62 = vpop.f32.mrf.mxu1 }
 0x8b6   : > { %v3999_v21 = vadd.f32 %v3986_v16, %v3933_v25  ;;  %4833 = vmatmul.msk.bf16.gmra.mxu3 %vm503_vm0, %v4278_v34 }
 0x8b9   : > { %v3821_v11 = vpop.f32.mrf.mxu3 }
 0x8ba   : > { %v3989_v29 = vpop.f32.mrf.mxu2  ;;  %v3866_v63 = vadd.f32 %v3865_v59, %v3821_v11 }
 0x8bc   : > { %v3867_v41 = vpop.f32.mrf.mxu0  ;;  %v3934_v19 = vadd.f32 %v3923_v62, %v3866_v63 }
 0x8bd   : > { %v3925_v22 = vpop.f32.mrf.mxu1 }
 0x8be   : > { %v4000_v55 = vadd.f32 %v3989_v29, %v3934_v19 }
 0x8c1   : > { %v3823_v15 = vpop.f32.mrf.mxu3 }
 0x8c2   : > { %v3991_v3 = vpop.f32.mrf.mxu2  ;;  %v3868_v52 = vadd.f32 %v3867_v41, %v3823_v15 }
 0x8c4   : > { %v4106_v45 = vpop.f32.mrf.mxu0  ;;  %v3935_v8 = vadd.f32 %v3925_v22, %v3868_v52 }
 0x8c5   : > { %v4173_v44 = vpop.f32.mrf.mxu1 }
 0x8c6   : > { %v4001_v15 = vadd.f32 %v3991_v3, %v3935_v8 }
 0x8c9   : > { %v4040_v36 = vpop.f32.mrf.mxu3 }
 0x8ca   : > { %v4060_v4 = vadd.f32 %v4040_v36, %v3994_v27  ;;  %v4239_v46 = vpop.f32.mrf.mxu2 }
 0x8cc   : > { %v4108_v24 = vpop.f32.mrf.mxu0  ;;  %v4126_v17 = vadd.f32 %v4106_v45, %v4060_v4 }
 0x8cd   : > { %v4175_v14 = vpop.f32.mrf.mxu1 }
 0x8ce   : > { %v4193_v0 = vadd.f32 %v4173_v44, %v4126_v17 }
 0x8d1   : > { %v4042_v58 = vpop.f32.mrf.mxu3 }
 0x8d2   : > { %v4061_v51 = vadd.f32 %v4042_v58, %v3995_v40  ;;  %v4241_v60 = vpop.f32.mrf.mxu2 }
 0x8d4   : > { %v4111_v27 = vpop.f32.mrf.mxu0  ;;  %v4127_v43 = vadd.f32 %v4108_v24, %v4061_v51 }
 0x8d5   : > { %v4178_v28 = vpop.f32.mrf.mxu1 }
 0x8d6   : > { %v4194_v9 = vadd.f32 %v4175_v14, %v4127_v43 }
 0x8d8   : > { %v4260_v25 = vadd.f32 %v4241_v60, %v4194_v9 }
 0x8d9   : > { %v4045_v61 = vpop.f32.mrf.mxu3 }
 0x8da   : > { %v4062_v31 = vadd.f32 %v4045_v61, %v3996_v23  ;;  %v4244_v5 = vpop.f32.mrf.mxu2 }
 0x8dc   : > { %v4113_v47 = vpop.f32.mrf.mxu0 }
 0x8dd   : > { %v4180_v32 = vpop.f32.mrf.mxu1 }
 0x8e1   : > { %v4047_v57 = vpop.f32.mrf.mxu3 }
 0x8e2   : > { %v4063_v2 = vadd.f32 %v4047_v57, %v3997_v49  ;;  %v4246_v40 = vpop.f32.mrf.mxu2  ;;  %v4128_v49 = vadd.f32 %v4111_v27, %v4062_v31 }
 0x8e4   : > { %v4116_v30 = vpop.f32.mrf.mxu0  ;;  %v4129_v20 = vadd.f32 %v4113_v47, %v4063_v2  ;;  %v4195_v37 = vadd.f32 %v4178_v28, %v4128_v49 }
 0x8e5   : > { %v4183_v1 = vpop.f32.mrf.mxu1 }
 0x8e6   : > { %v4196_v34 = vadd.f32 %v4180_v32, %v4129_v20  ;;  %v4261_v36 = vadd.f32 %v4244_v5, %v4195_v37 }
 0x8e8   : > { %v4262_v59 = vadd.f32 %v4246_v40, %v4196_v34 }
 0x8e9   : > { %v4050_v38 = vpop.f32.mrf.mxu3 }
 0x8ea   : > { %v4064_v18 = vadd.f32 %v4050_v38, %v3998_v39  ;;  %v4249_v33 = vpop.f32.mrf.mxu2 }
 0x8ec   : > { %v4118_v56 = vpop.f32.mrf.mxu0  ;;  %v4130_v42 = vadd.f32 %v4116_v30, %v4064_v18 }
 0x8ed   : > { %v4185_v10 = vpop.f32.mrf.mxu1 }
 0x8ee   : > { %v4197_v4 = vadd.f32 %v4183_v1, %v4130_v42 }
 0x8f0   : > { %v4263_v41 = vadd.f32 %v4249_v33, %v4197_v4 }
 0x8f1   : > { %v4052_v7 = vpop.f32.mrf.mxu3 }
 0x8f2   : > { %v4065_v12 = vadd.f32 %v4052_v7, %v3999_v21  ;;  %v4251_v39 = vpop.f32.mrf.mxu2  ;;  %v4259_v21 = vadd.f32 %v4239_v46, %v4193_v0 }
 0x8f4   : > { %v4121_v50 = vpop.f32.mrf.mxu0  ;;  %v4131_v16 = vadd.f32 %v4118_v56, %v4065_v12 }
 0x8f5   : > { %v4188_v51 = vpop.f32.mrf.mxu1 }
 0x8f6   : > { %v4198_v62 = vadd.f32 %v4185_v10, %v4131_v16 }
 0x8f8   : > { %v4264_v45 = vadd.f32 %v4251_v39, %v4198_v62 }
 0x8f9   : > { %v4055_v35 = vpop.f32.mrf.mxu3 }
 0x8fa   : > { %v4066_v6 = vadd.f32 %v4055_v35, %v4000_v55  ;;  %v4254_v22 = vpop.f32.mrf.mxu2 }
 0x8fc   : > { %v4132_v11 = vadd.f32 %v4121_v50, %v4066_v6  ;;  %v4123_v7 = vpop.f32.mrf.mxu0 }
 0x8fe   : > { %v4199_v2 = vadd.f32 %v4188_v51, %v4132_v11 }
 0x900   : > { %v4265_v35 = vadd.f32 %v4254_v22, %v4199_v2 }
 0x901   : > { %v4057_v48 = vpop.f32.mrf.mxu3 }
 0x902   : > { %v4067_v29 = vadd.f32 %v4057_v48, %v4001_v15  ;;  %v4256_v52 = vpop.f32.mrf.mxu2 }
 0x904   : > { %v4133_v24 = vadd.f32 %v4123_v7, %v4067_v29 }
 0x909   : > { %v4305_v26 = vpop.f32.mrf.mxu3 }
 0x90a   : > { %v7215_v61 = vadd.f32 %v4305_v26, %v4259_v21 }
 0x90c   : > { %v4359_v3 = vmul.f32 %v7215_v61, %v7215_v61  ;;  %v4335_v14 = vsel %vm503_vm0, %v7215_v61, 0.0 }
 0x90e   : > { %v4367_v26 = vsel %vm503_vm0, %v4359_v3, 0.0 }
 0x911   : > { %v4307_v13 = vpop.f32.mrf.mxu3 }
 0x912   : > { %v7213_v58 = vadd.f32 %v4307_v13, %v4260_v25 }
 0x914   : > { %v4360_v38 = vmul.f32 %v7213_v58, %v7213_v58  ;;  %v4336_v12 = vsel %vm503_vm0, %v7213_v58, 0.0 }
 0x915   : > { %v4337_v5 = vadd.f32 %v4336_v12, %v4335_v14 }
 0x916   : > { %v4368_v48 = vsel %vm503_vm0, %v4360_v38, 0.0 }
 0x917   : > { %v4369_v1 = vadd.f32 %v4368_v48, %v4367_v26 }
 0x919   : > { %v4310_v53 = vpop.f32.mrf.mxu3 }
 0x91a   : > { %v7217_v57 = vadd.f32 %v4310_v53, %v4261_v36  ;;  %v4190_v53 = vpop.f32.mrf.mxu1 }
 0x91b   : > { %v4200_v33 = vadd.f32 %v4190_v53, %v4133_v24 }
 0x91c   : > { %v4361_v44 = vmul.f32 %v7217_v57, %v7217_v57  ;;  %v4338_v60 = vsel %vm503_vm0, %v7217_v57, 0.0 }
 0x91d   : > { %v4339_v63 = vadd.f32 %v4338_v60, %v4337_v5  ;;  %v4266_v20 = vadd.f32 %v4256_v52, %v4200_v33 }
 0x91e   : > { %v4370_v13 = vsel %vm503_vm0, %v4361_v44, 0.0 }
 0x91f   : > { %v4371_v43 = vadd.f32 %v4370_v13, %v4369_v1 }
 0x921   : > { %v4312_v23 = vpop.f32.mrf.mxu3 }
 0x922   : > { %v7221_v18 = vadd.f32 %v4312_v23, %v4262_v59 }
 0x924   : > { %v4362_v27 = vmul.f32 %v7221_v18, %v7221_v18  ;;  %v4340_v32 = vsel %vm503_vm0, %v7221_v18, 0.0 }
 0x925   : > { %v4341_v17 = vadd.f32 %v4340_v32, %v4339_v63  ;;  %v4920_v63 = vld [vmem:[%s7350_s11] ss:$0 sm:$0xff] }
 0x926   : > { %v4372_v23 = vsel %vm503_vm0, %v4362_v27, 0.0 }
 0x929   : > { %v4315_v54 = vpop.f32.mrf.mxu3 }
 0x92a   : > { %v7229_v46 = vadd.f32 %v4315_v54, %v4263_v41  ;;  %v4373_v54 = vadd.f32 %v4372_v23, %v4371_v43 }
 0x92c   : > { %v4363_v40 = vmul.f32 %v7229_v46, %v7229_v46  ;;  %v4342_v56 = vsel %vm503_vm0, %v7229_v46, 0.0 }
 0x92d   : > { %v4343_v9 = vadd.f32 %v4342_v56, %v4341_v17 }
 0x92e   : > { %v4374_v10 = vsel %vm503_vm0, %v4363_v40, 0.0 }
 0x92f   : > { %v4375_v42 = vadd.f32 %v4374_v10, %v4373_v54  ;;  %v4922_v54 = vld [vmem:[%s479_s2] ss:$0 sm:$0xff] }
 0x931   : > { %v4317_v31 = vpop.f32.mrf.mxu3 }
 0x932   : > { %v7238_v28 = vadd.f32 %v4317_v31, %v4264_v45 }
 0x934   : > { %v4364_v19 = vmul.f32 %v7238_v28, %v7238_v28  ;;  %v4344_v49 = vsel %vm503_vm0, %v7238_v28, 0.0 }
 0x935   : > { %v4345_v37 = vadd.f32 %v4344_v49, %v4343_v9 }
 0x936   : > { %v4376_v39 = vsel %vm503_vm0, %v4364_v19, 0.0 }
 0x937   : > { %v4377_v34 = vadd.f32 %v4376_v39, %v4375_v42 }
 0x939   : > { %v4320_v47 = vpop.f32.mrf.mxu3 }
 0x93a   : > { %v7246_v30 = vadd.f32 %v4320_v47, %v4265_v35 }
 0x93c   : > { %v4365_v55 = vmul.f32 %v7246_v30, %v7246_v30  ;;  %v4346_v0 = vsel %vm503_vm0, %v7246_v30, 0.0 }
 0x93d   : > { %v4347_v25 = vadd.f32 %v4346_v0, %v4345_v37 }
 0x93e   : > { %v4378_v8 = vsel %vm503_vm0, %v4365_v55, 0.0 }
 0x93f   : > { %v4379_v36 = vadd.f32 %v4378_v8, %v4377_v34 }
 0x941   : > { %v4322_v6 = vpop.f32.mrf.mxu3 }
 0x942   : > { %v7261_v50 = vadd.f32 %v4322_v6, %v4266_v20 }
 0x944   : > { %v4348_v16 = vsel %vm503_vm0, %v7261_v50, 0.0  ;;  %v4366_v21 = vmul.f32 %v7261_v50, %v7261_v50 }
 0x945   : > { %v4349_v11 = vadd.f32 %v4348_v16, %v4347_v25 }
 0x946   : > { %v4380_v4 = vsel %vm503_vm0, %v4366_v21, 0.0 }
 0x947   : > { %4350 = vadd.xlane.f32.xlu0 %v4349_v11  ;;  %v4381_v15 = vadd.f32 %v4380_v4, %v4379_v36 }
 0x949   : > { %4382 = vadd.xlane.f32.xlu1 %v4381_v15 }
 0x9ba   : > { %v4351_v51 = vpop.xlane.xlu0 %4350 }
 0x9bb   : > { %v4352_v31 = vrot.slane %v4351_v51, 4 }
 0x9bc   : > { %v4383_v59 = vpop.xlane.xlu1 %4382 }
 0x9bd   : > { %v4353_v62 = vadd.f32 %v4352_v31, %v4351_v51  ;;  %v4384_v2 = vrot.slane %v4383_v59, 4 }
 0x9bf   : > { %v4354_v29 = vrot.slane %v4353_v62, 2  ;;  %v4385_v41 = vadd.f32 %v4384_v2, %v4383_v59 }
 0x9c1   : > { %v4355_v38 = vadd.f32 %v4354_v29, %v4353_v62  ;;  %v4386_v22 = vrot.slane %v4385_v41, 2 }
 0x9c3   : > { %v4387_v3 = vadd.f32 %v4386_v22, %v4385_v41  ;;  %v4356_v45 = vrot.slane %v4355_v38, 1 }
 0x9c5   : > { %v4357_v7 = vadd.f32 %v4356_v45, %v4355_v38  ;;  %v4388_v12 = vrot.slane %v4387_v3, 1 }
 0x9c7   : > { %4863 = vpush %v4357_v7  ;;  %v4389_v44 = vadd.f32 %v4388_v12, %v4387_v3 }
 0x9c9   : > { %4865 = vpush %v4389_v44 }
 0x9f8   : > { %s4864_s3 = spop %4863 }
 0x9f9   : > { %s4399_s22 = smul.f32 %s4864_s3, %s6657_s20 }
 0x9fa   : > { %s4866_s28 = spop %4865 }
 0x9fb   : > { %s4409_s0 = smul.f32 %s4399_s22, %s4399_s22  ;;  %v4412_v47 = vstv %s4399_s22 }
 0x9fc   : > { %s4408_s1 = smul.f32 %s4866_s28, %s6657_s20  ;;  %v4413_v13 = vsub.f32 %v7215_v61, %v4412_v47  ;;  %v4414_v32 = vsub.f32 %v7213_v58, %v4412_v47  ;;  %v4415_v40 = vsub.f32 %v7217_v57, %v4412_v47  ;;  %v4416_v53 = vsub.f32 %v7221_v18, %v4412_v47  ;;  %s469_s28 = sand.u32 1, %s5037_s30  }
 0x9fd   : > { %v4417_v1 = vsub.f32 %v7229_v46, %v4412_v47  ;;  %v4418_v33 = vsub.f32 %v7238_v28, %v4412_v47  ;;  %v4419_v23 = vsub.f32 %v7246_v30, %v4412_v47  ;;  %v4420_v61 = vsub.f32 %v7261_v50, %v4412_v47  ;;  %v4921_v46 = vld [vmem:[%s7351_s12] ss:$0 sm:$0xff]  ;;  %s4486_s22 = scalar_lea.sflag [#allocation5], %s469_s28 }
 0x9fe   : > { %s4410_s21 = ssub.f32 %s4408_s1, %s4409_s0  ;;  %s4576_s1 = sshll.u32 %s469_s28, 6 }
 0x9ff   : > { %s471_s2 = scalar_lea.vmem [#allocation4], %s4576_s1 }
 0xa00   : > { %s4411_s18 = smax.f32 %s5049_s27, %s4410_s21 }
 0xa01   : > { %s4421_s26 = sadd.f32 1e-05, %s4411_s18 }
 0xa03   : > { %v4422_v35 = vstv %s4421_s26  ;;  %s4839_s26 = sshll.u32 %s5149_s17, 6  ;;  %s4498_s17 = sshll.u32 %s471_s2, 4  ;;  %s4499_s17 = int_to_ptr.vmem [resolvable:$true] %s4498_s17 }
 0xa04   : > { %4981 = vrsqrt.f32 %v4422_v35  ;;  %vm4429_vm12 = vweird.f32 %v4422_v35  ;;  %s4497_s25 = scalar_lea.hbm %s7353_s14, %s4839_s26  ;;  %s5003_s26 = scalar_lea.hbm %s7353_s14, 128 }
 0xa05   : > { %s4500_s3 = sshll.u32 %s4497_s25, 4  ;;  %s4501_s3 = int_to_ptr.hbm [resolvable:$true] %s4500_s3 }
 0xa06   : > { %s4997_s0 = sshra.s32 %s4501_s3, 4  ;;  %s4998_s0 = int_to_ptr.hbm [resolvable:$true] %s4997_s0 }
 0xa07   : > { %s4999_s1 = scalar_lea.hbm %s4998_s0, 64  ;;  %p5004_p0 = scmp.lt.s32.totalorder %s4998_s0, %s7353_s14 }
 0xa08   : > { %p5000_p11 = scmp.ne.s32.totalorder %s4998_s0, %s4999_s1  ;;  %p5005_p1 = scmp.lt.s32.totalorder %s5003_s26, %s4999_s1 }
 0xa0a   : > { %v4982_v24 = vpop.eup %4981  ;;  %p5001_p12 = pnand %p5000_p11, %p5166_p5  ;;  %p5006_p2 = por %p5005_p1, %p5004_p0 }
 0xa0b   : > { %v4424_v14 = vmul.f32 %v4982_v24, %v4422_v35  ;;  %vm4430_vm11 = vweird.f32 %v4982_v24 }
 0xa0c   : > { %vm4431_vm13 = vmor %vm4429_vm12, %vm4430_vm11  ;;  %p5002_p13 = pneg %p5001_p12 }
 0xa0d   : > { %v4425_v48 = vmul.f32 %v4982_v24, %v4424_v14 }
 0xa0e   : > { %p5007_p3 = pnand %p5006_p2, %p5002_p13 }
 0xa0f   : > { %v4426_v60 = vmul.f32 0.5, %v4425_v48 }
 0xa11   : > { %v4427_v27 = vsub.f32 1.5, %v4426_v60 }
 0xa13   : > { %v4428_v26 = vmul.f32 %v4982_v24, %v4427_v27 }
 0xa15   : > { %v4432_v5 = vsel %vm4431_vm13, %v4982_v24, %v4428_v26 }
 0xa16   : > { %4867 = vpush %v4432_v5 }
 0xa47   : > { %s4868_s27 = spop %4867 }
 0xa48   : > { %v4434_v58 = vstv %s4868_s27 }
 0xa49   : > { %v4435_v57 = vmul.f32 %v4434_v58, %v4413_v13  ;;  %v4436_v56 = vmul.f32 %v4434_v58, %v4414_v32  ;;  %v4437_v18 = vmul.f32 %v4434_v58, %v4415_v40  ;;  %v4438_v19 = vmul.f32 %v4434_v58, %v4416_v53 }
 0xa4a   : > { %v4439_v43 = vmul.f32 %v4434_v58, %v4417_v1  ;;  %v4440_v17 = vmul.f32 %v4434_v58, %v4418_v33  ;;  %v4441_v10 = vmul.f32 %v4434_v58, %v4419_v23  ;;  %v4442_v49 = vmul.f32 %v4434_v58, %v4420_v61 }
 0xa4b   : > { %v4446_v28 = vmul.f32 %v4920_v63, %v4435_v57  ;;  %v4447_v30 = vmul.f32 %v4920_v63, %v4436_v56  ;;  %v4448_v55 = vmul.f32 %v4920_v63, %v4437_v18  ;;  %v4449_v52 = vmul.f32 %v4920_v63, %v4438_v19 }
 0xa4c   : > { %v4450_v9 = vmul.f32 %v4920_v63, %v4439_v43  ;;  %v4451_v20 = vmul.f32 %v4920_v63, %v4440_v17  ;;  %v4452_v0 = vmul.f32 %v4920_v63, %v4441_v10  ;;  %v4453_v39 = vmul.f32 %v4920_v63, %v4442_v49 }
 0xa4d   : > { %v4457_v6 = vadd.f32 %v4921_v46, %v4446_v28  ;;  %v4458_v37 = vadd.f32 %v4921_v46, %v4447_v30  ;;  %v4459_v42 = vadd.f32 %v4921_v46, %v4448_v55  ;;  %v4460_v50 = vadd.f32 %v4921_v46, %v4449_v52 }
 0xa4e   : > { %v4461_v8 = vadd.f32 %v4921_v46, %v4450_v9  ;;  %v4462_v25 = vadd.f32 %v4921_v46, %v4451_v20  ;;  %v4463_v34 = vadd.f32 %v4921_v46, %v4452_v0  ;;  %v4464_v36 = vadd.f32 %v4921_v46, %v4453_v39 }
 0xa4f   : > { %v4469_v16 = vadd.f32 %v4922_v54, %v4457_v6  ;;  %v4470_v21 = vadd.f32 %v4922_v54, %v4458_v37  ;;  %v4471_v11 = vadd.f32 %v4922_v54, %v4459_v42  ;;  %v4472_v4 = vadd.f32 %v4922_v54, %v4460_v50 }
 0xa50   : > { %v4473_v15 = vadd.f32 %v4922_v54, %v4461_v8  ;;  %v4474_v51 = vadd.f32 %v4922_v54, %v4462_v25  ;;  %v4475_v31 = vadd.f32 %v4922_v54, %v4463_v34  ;;  %v4476_v59 = vadd.f32 %v4922_v54, %v4464_v36 }
 0xa51   : > { %4477 = vst.msk [vmem:[%s471_s2] sm:$0xff] %vm503_vm0, %v4469_v16 }
 0xa52   : > { %4478 = vst.msk [vmem:[%s471_s2 + $0x8] sm:$0xff] %vm503_vm0, %v4470_v21 }
 0xa53   : > { %4479 = vst.msk [vmem:[%s471_s2 + $0x10] sm:$0xff] %vm503_vm0, %v4471_v11 }
 0xa54   : > { %4480 = vst.msk [vmem:[%s471_s2 + $0x18] sm:$0xff] %vm503_vm0, %v4472_v4 }
 0xa55   : > { %4481 = vst.msk [vmem:[%s471_s2 + $0x20] sm:$0xff] %vm503_vm0, %v4473_v15 }
 0xa56   : > { %4482 = vst.msk [vmem:[%s471_s2 + $0x28] sm:$0xff] %vm503_vm0, %v4474_v51 }
 0xa57   : > { %4483 = vst.msk [vmem:[%s471_s2 + $0x30] sm:$0xff] %vm503_vm0, %v4475_v31 }
 0xa58   : > { %4484 = vst.msk [vmem:[%s471_s2 + $0x38] sm:$0xff] %vm503_vm0, %v4476_v59 }
 0xa59   : > { %5010 = shalt.err (!%p5007_p3)
}
 0xa5a   : > { %s5051_s28 = smov 128   ;;  %s5052_s25 = smov 8  }
 0xa5b   : > { %4869 = dma.vmem_to_hbm [thread:$0]  (%p5166_p5), %s4499_s17, 1024, %s4501_s3, %s4486_s22, %s5051_s28, %s5051_s28, %s5052_s25  }
 0xa5c PF: > { %p4875_p4 = scmp.ge.s32.totalorder %s5045_s16, 2  ;;  %s4515_s2 = sand.u32 1, %s5033_s29  }
 0xa5d   : > { %s4516_s21 = scalar_lea.sflag [#allocation5], %s4515_s2 }
 0xa5e   : > { %p4872_p7 = pnand %p4875_p4, %p5170_p6 }
 0xa60   : > { %p4873_p8 = pneg %p4872_p7 }
 0xa62   : > { %5028 = dma.done.wait (%p4873_p8), %s4516_s21, 1024  }
 0xa63   : > { %5030 = vsyncadd (%p4873_p8), %s4516_s21, 4294966272  ;;  %s7417_s0 = sld [smem:[#allocation7_spill]]  ;;  %p24_p9 = scmp.ge.s32.totalorder %s5153_s19, 4  }
 0xa64   : > { %s7418_s29 = smov %s5037_s30  ;;  %s7419_s30 = smov %s5041_s15 }
 0xa65   : > { %s7421_s16 = smov %s5153_s19  ;;  %26 = sbr.rel (!%p24_p9) target bundleno = 8 (0x8), region = 152 }
 0xa69   : > { %s7420_s15 = smov %s7417_s0 }
 0xa6a   :  { %4522 = vsyncpa [#allocation5], 1 }
 0xa6b   :  { %4524 = vsyncpa [#allocation5 + $0x1], 1 }

</bundles_post_ra>
